<compile_context>
chip_gen: v7x
topology: tpu7x:2x2x1
jax: 0.10.0
libtpu: 0.0.40
codegen_flags: <defaults>
</compile_context>

<pallas_src>
import math

import jax
import jax.numpy as jnp
from jax.experimental import pallas as pl
from jax.experimental.pallas import tpu as pltpu

# ----------------------------- configuration --------------------------------
D_MODEL = 32
NHEAD = 4
D_HEAD = D_MODEL // NHEAD
DIM_FF = 64
NUM_LAYERS = 2
EPS = 1e-5
NEG = -1e30  # finite "-inf" so fully-masked rows stay NaN-free
_SLAB_WIDTH = 128  # lane width of the packed weight slab


# ----------------------- pure-jnp math helpers (shared) ----------------------
def _ln(x, g, b):
    """LayerNorm over the last dim."""
    mu = jnp.mean(x, axis=-1, keepdims=True)
    xc = x - mu
    var = jnp.mean(xc * xc, axis=-1, keepdims=True)
    return xc * jax.lax.rsqrt(var + EPS) * g + b


def _gelu(x):
    # exact (erf-based) GELU, matching torch.nn.functional.gelu default
    return 0.5 * x * (1.0 + jax.lax.erf(x * (1.0 / math.sqrt(2.0))))


def _to_additive(mask, shape):
    if mask is None:
        return jnp.zeros(shape, jnp.float32)
    m = jnp.asarray(mask)
    if m.dtype == jnp.bool_:
        return jnp.where(m, NEG, 0.0).astype(jnp.float32)
    # clamp -inf to a large finite negative (NaN-proof for fully masked rows)
    return jnp.maximum(m.astype(jnp.float32), NEG)


# ------------------------------ in-kernel ops --------------------------------
def _mha(W, pfx, x_q, x_kv, n_groups, bb, t_q, t_k, masks):
    """nn.MultiheadAttention forward (eval) on row-concatenated slabs.

    x_q : (n_groups*bb*t_q, D) query rows, ordered [group, batch, position]
    x_kv: (bb*t_k, D)          key/value rows, ordered [batch, position]
    masks: None, or (bb, >=n_groups*t_q, t_k) additive; group g of item b uses
           masks[b, g*t_q:(g+1)*t_q, :].
    Per-head weights are separate slab blocks; the output projection is
    accumulated per head (no lane slicing / lane concatenation of heads).
    """
    scale = 1.0 / math.sqrt(D_HEAD)
    acc = [[None] * bb for _ in range(n_groups)]
    for h in range(NHEAD):
        q = jnp.dot(x_q, W(f"{pfx}.wq{h}"),
                    preferred_element_type=jnp.float32) + W(f"{pfx}.bq{h}")
        k = jnp.dot(x_kv, W(f"{pfx}.wk{h}"),
                    preferred_element_type=jnp.float32) + W(f"{pfx}.bk{h}")
        v = jnp.dot(x_kv, W(f"{pfx}.wv{h}"),
                    preferred_element_type=jnp.float32) + W(f"{pfx}.bv{h}")
        wo_h = W(f"{pfx}.wo{h}")
        for b in range(bb):
            kb = k[b * t_k:(b + 1) * t_k]
            vb = v[b * t_k:(b + 1) * t_k]
            for g in range(n_groups):
                r0 = (g * bb + b) * t_q
                qb = q[r0:r0 + t_q]
                s = jax.lax.dot_general(qb, kb, (((1,), (1,)), ((), ())),
                                        preferred_element_type=jnp.float32) * scale
                if masks is not None:
                    s = s + masks[b, g * t_q:(g + 1) * t_q, :]
                s = s - jnp.max(s, axis=-1, keepdims=True)
                p = jnp.exp(s)
                p = p * pl.reciprocal(jnp.sum(p, axis=-1, keepdims=True), approx=True)
                ctx = jnp.dot(p, vb, preferred_element_type=jnp.float32)          # (t_q, Dh)
                contrib = jnp.dot(ctx, wo_h, preferred_element_type=jnp.float32)  # (t_q, D)
                acc[g][b] = contrib if acc[g][b] is None else acc[g][b] + contrib
    rows = [acc[g][b] for g in range(n_groups) for b in range(bb)]
    out = rows[0] if len(rows) == 1 else jnp.concatenate(rows, axis=0)
    return out + W(f"{pfx}.bo")


def _stream(W, l, tgt, tgt_norm, tgt_kv, mem_flat, n_groups, bb, t, s_len, masks):
    """DecoderLayer.forward_stream on a row-concatenated block (eval: dropout = id)."""
    sa = _mha(W, f"{l}.sa", tgt_norm, tgt_kv, n_groups, bb, t, t, masks)
    tgt = tgt + sa                                               # dropout1 = identity
    x = _ln(tgt, W(f"{l}.n1.g"), W(f"{l}.n1.b"))
    ca = _mha(W, f"{l}.ca", x, mem_flat, n_groups, bb, t, s_len, None)
    tgt = tgt + ca                                               # dropout2 = identity
    x = _ln(tgt, W(f"{l}.n2.g"), W(f"{l}.n2.b"))
    h = _gelu(jnp.dot(x, W(f"{l}.w1"), preferred_element_type=jnp.float32) + W(f"{l}.b1"))
    ff = jnp.dot(h, W(f"{l}.w2"), preferred_element_type=jnp.float32) + W(f"{l}.b2")
    return tgt + ff                                              # dropout3 = identity


def _build_kernel(meta, bb, t, s_len):
    d = D_MODEL

    def kernel(q_ref, c_ref, m_ref, mask_ref, w_ref, o_ref):
        def W(name):
            off, r, c = meta[name]          # static offsets -> static slices
            return w_ref[off:off + r, 0:c]

        query = q_ref[...].reshape(bb * t, d).astype(jnp.float32)
        content = c_ref[...].reshape(bb * t, d).astype(jnp.float32)
        mem = m_ref[...].reshape(bb * s_len, d).astype(jnp.float32)
        masks = mask_ref[...].astype(jnp.float32)                  # (bb, 2t, t)

        for l in range(NUM_LAYERS):                                # static unroll
            q_norm = _ln(query, W(f"{l}.nq.g"), W(f"{l}.nq.b"))
            c_norm = _ln(content, W(f"{l}.nc.g"), W(f"{l}.nc.b"))
            if l < NUM_LAYERS - 1:
                # batched two-stream pass:
                #   rows [0 : bb*t]      = query stream  (mask rows 0:t per item)
                #   rows [bb*t : 2*bb*t] = content stream (mask rows t:2t per item)
                tgt = jnp.concatenate([query, content], axis=0)
                tgt_norm = jnp.concatenate([q_norm, c_norm], axis=0)
                out = _stream(W, l, tgt, tgt_norm, c_norm, mem, 2, bb, t, s_len, masks)
                query, content = out[:bb * t], out[bb * t:]
            else:
                # last layer: only the query stream is updated (update_content=False)
                query = _stream(W, l, query, q_norm, c_norm, mem, 1, bb, t, s_len, masks)

        y = _ln(query, W("fin.g"), W("fin.b"))                     # final Decoder norm
        o_ref[...] = y.reshape(bb, t, d).astype(o_ref.dtype)

    return kernel


# ------------------------------ wrapper ---------------------------------------
def decoder_forward(w_slab, query, content, memory,
                    query_mask=None, content_mask=None,
                    content_key_padding_mask=None, *, meta):
    B, T, D = query.shape
    S = memory.shape[1]

    # combined additive masks, computed once outside the kernel
    qm = _to_additive(query_mask, (T, T))
    cm = _to_additive(content_mask, (T, T))
    if content_key_padding_mask is None:
        kpm = jnp.zeros((B, 1, T), jnp.float32)
    else:
        kpm = _to_additive(content_key_padding_mask, (B, T)).reshape(B, 1, T)
    masks = jnp.concatenate([qm[None, :, :] + kpm, cm[None, :, :] + kpm], axis=1)  # (B, 2T, T)

    # batch blocking: BB items per grid step; keep >= 2 steps for v7x's two TCs
    if B <= 1:
        BB = 1
    else:
        BB = min(8, (B + 1) // 2)
    steps = -(-B // BB)
    B_pad = steps * BB
    if B_pad != B:
        pad = ((0, B_pad - B), (0, 0), (0, 0))
        query = jnp.pad(query, pad)
        content = jnp.pad(content, pad)
        memory = jnp.pad(memory, pad)
        masks = jnp.pad(masks, pad)

    kernel = _build_kernel(meta, BB, T, S)
    fused = pl.pallas_call(
        kernel,
        out_shape=jax.ShapeDtypeStruct((B_pad, T, D), query.dtype),
        grid=(steps,),
        in_specs=[
            pl.BlockSpec((BB, T, D), lambda i: (i, 0, 0)),        # query block
            pl.BlockSpec((BB, T, D), lambda i: (i, 0, 0)),        # content block
            pl.BlockSpec((BB, S, D), lambda i: (i, 0, 0)),        # memory block
            pl.BlockSpec((BB, 2 * T, T), lambda i: (i, 0, 0)),    # combined additive masks
            pl.BlockSpec(w_slab.shape, lambda i: (0, 0)),         # packed weight slab (resident)
        ],
        out_specs=pl.BlockSpec((BB, T, D), lambda i: (i, 0, 0)),
        compiler_params=pltpu.CompilerParams(dimension_semantics=("parallel",)),
    )
    out = fused(query, content, memory, masks, w_slab)
    return out[:B]


# ------------------------------ parameters -----------------------------------
def init_params(key):
    """PyTorch-convention parameters (weights stored as (out, in))."""
    keys = iter(jax.random.split(key, 128))

    def w(shape, scale=0.02):
        return jax.random.normal(next(keys), shape, jnp.float32) * scale

    def mha_params():
        return {
            "in_proj_weight": w((3 * D_MODEL, D_MODEL)),
            "in_proj_bias": w((3 * D_MODEL,)),
            "out_proj_weight": w((D_MODEL, D_MODEL)),
            "out_proj_bias": w((D_MODEL,)),
        }

    def ln():
        return 1.0 + w((D_MODEL,), 0.1), w((D_MODEL,), 0.1)

    layers = []
    for _ in range(NUM_LAYERS):
        n1w, n1b = ln(); n2w, n2b = ln(); nqw, nqb = ln(); ncw, ncb = ln()
        layers.append({
            "self_attn": mha_params(),
            "cross_attn": mha_params(),
            "linear1_w": w((DIM_FF, D_MODEL)), "linear1_b": w((DIM_FF,)),
            "linear2_w": w((D_MODEL, DIM_FF)), "linear2_b": w((D_MODEL,)),
            "norm1_w": n1w, "norm1_b": n1b,
            "norm2_w": n2w, "norm2_b": n2b,
            "norm_q_w": nqw, "norm_q_b": nqb,
            "norm_c_w": ncw, "norm_c_b": ncb,
        })
    nw, nb = ln()
    return {"layers": layers, "norm_w": nw, "norm_b": nb}


def pack_decoder_params(params):
    """One-time packing (outside jit): all weights -> a single (R, 128) f32 slab.

    Per-head Q/K/V/out-proj weights are stored as separate (D, Dh) / (Dh, D)
    blocks so the kernel never lane-slices activations.  Returns (slab, meta)
    where meta[name] = (row_offset, rows, cols) with 8-aligned row offsets.
    """
    entries = []

    def add(name, arr):
        a = jnp.asarray(arr, jnp.float32)
        if a.ndim == 1:
            a = a.reshape(1, -1)
        entries.append((name, a))

    D, Dh = D_MODEL, D_HEAD
    for l, p in enumerate(params["layers"]):
        add(f"{l}.nq.g", p["norm_q_w"]); add(f"{l}.nq.b", p["norm_q_b"])
        add(f"{l}.nc.g", p["norm_c_w"]); add(f"{l}.nc.b", p["norm_c_b"])
        add(f"{l}.n1.g", p["norm1_w"]); add(f"{l}.n1.b", p["norm1_b"])
        add(f"{l}.n2.g", p["norm2_w"]); add(f"{l}.n2.b", p["norm2_b"])
        for pfx, att in (("sa", p["self_attn"]), ("ca", p["cross_attn"])):
            ipw, ipb = att["in_proj_weight"], att["in_proj_bias"]
            ow, ob = att["out_proj_weight"], att["out_proj_bias"]
            Wq, Wk, Wv = ipw[:D], ipw[D:2 * D], ipw[2 * D:]
            bq, bk, bv = ipb[:D], ipb[D:2 * D], ipb[2 * D:]
            for h in range(NHEAD):
                sl = slice(h * Dh, (h + 1) * Dh)
                add(f"{l}.{pfx}.wq{h}", Wq[sl].T)      # (D, Dh)
                add(f"{l}.{pfx}.wk{h}", Wk[sl].T)
                add(f"{l}.{pfx}.wv{h}", Wv[sl].T)
                add(f"{l}.{pfx}.wo{h}", ow[:, sl].T)   # (Dh, D)
                add(f"{l}.{pfx}.bq{h}", bq[sl])
                add(f"{l}.{pfx}.bk{h}", bk[sl])
                add(f"{l}.{pfx}.bv{h}", bv[sl])
            add(f"{l}.{pfx}.bo", ob)
        add(f"{l}.w1", p["linear1_w"].T)   # (D, FF)
        add(f"{l}.b1", p["linear1_b"])
        add(f"{l}.w2", p["linear2_w"].T)   # (FF, D)
        add(f"{l}.b2", p["linear2_b"])
    add("fin.g", params["norm_w"]); add("fin.b", params["norm_b"])

    meta, blocks, off = {}, [], 0
    for name, a in entries:
        r, c = a.shape
        rp = ((r + 7) // 8) * 8            # 8-aligned sublane offsets
        blk = jnp.zeros((rp, _SLAB_WIDTH), jnp.float32).at[:r, :c].set(a)
        blocks.append(blk)
        meta[name] = (off, r, c)
        off += rp
    slab = jnp.concatenate(blocks, axis=0)
    return slab, meta


# --------------------------- pure-JAX reference --------------------------------
def _decoder_reference(params, query, content, memory,
                       query_mask=None, content_mask=None,
                       content_key_padding_mask=None):
    B, T, D = query.shape
    Dh = D // NHEAD
    qm = _to_additive(query_mask, (T, T))
    cm = _to_additive(content_mask, (T, T))
    if content_key_padding_mask is None:
        kpm = jnp.zeros((B, 1, T), jnp.float32)
    else:
        kpm = _to_additive(content_key_padding_mask, (B, T)).reshape(B, 1, T)
    mask_q = qm[None] + kpm
    mask_c = cm[None] + kpm

    def mha(xq, xkv, mp, mask):
        ipw, ipb = mp["in_proj_weight"], mp["in_proj_bias"]
        ow, ob = mp["out_proj_weight"], mp["out_proj_bias"]
        q = xq @ ipw[:D].T + ipb[:D]
        k = xkv @ ipw[D:2 * D].T + ipb[D:2 * D]
        v = xkv @ ipw[2 * D:].T + ipb[2 * D:]
        Tq, Tk = q.shape[1], k.shape[1]
        q = q.reshape(B, Tq, NHEAD, Dh).transpose(0, 2, 1, 3)
        k = k.reshape(B, Tk, NHEAD, Dh).transpose(0, 2, 1, 3)
        v = v.reshape(B, Tk, NHEAD, Dh).transpose(0, 2, 1, 3)
        s = jnp.einsum("bhqd,bhkd->bhqk", q, k) / math.sqrt(Dh)
        if mask is not None:
            s = s + mask[:, None]
        p = jax.nn.softmax(s, axis=-1)
        ctx = jnp.einsum("bhqk,bhkd->bhqd", p, v)
        ctx = ctx.transpose(0, 2, 1, 3).reshape(B, Tq, D)
        return ctx @ ow.T + ob

    def stream(tgt, tgt_norm, tgt_kv, mem, mask, lp):
        tgt = tgt + mha(tgt_norm, tgt_kv, lp["self_attn"], mask)
        tgt = tgt + mha(_ln(tgt, lp["norm1_w"], lp["norm1_b"]), mem, lp["cross_attn"], None)
        x = _ln(tgt, lp["norm2_w"], lp["norm2_b"])
        h = _gelu(x @ lp["linear1_w"].T + lp["linear1_b"])
        return tgt + h @ lp["linear2_w"].T + lp["linear2_b"]

    for i, lp in enumerate(params["layers"]):
        last = i == len(params["layers"]) - 1
        qn = _ln(query, lp["norm_q_w"], lp["norm_q_b"])
        cn = _ln(content, lp["norm_c_w"], lp["norm_c_b"])
        new_q = stream(query, qn, cn, memory, mask_q, lp)
        if not last:
            content = stream(content, cn, cn, memory, mask_c, lp)
        query = new_q
    return _ln(query, params["norm_w"], params["norm_b"])


# --------------------------------- main ---------------------------------------
if __name__ == "__main__":
    B, T, S = 2, 8, 16   # batch, query/content length, memory length

    root = jax.random.PRNGKey(0)
    k_par, k_q, k_c, k_m = jax.random.split(root, 4)
    params = init_params(k_par)
    w_slab, meta = pack_decoder_params(params)   # pack once, outside jit

    query = jax.random.normal(k_q, (B, T, D_MODEL), jnp.float32)
    content = jax.random.normal(k_c, (B, T, D_MODEL), jnp.float32)
    memory = jax.random.normal(k_m, (B, S, D_MODEL), jnp.float32)

    # causal additive masks (0 on/below diag, -inf above) for both streams
    causal = jnp.where(jnp.tril(jnp.ones((T, T), jnp.bool_)), 0.0, -jnp.inf)
    query_mask = causal
    content_mask = causal
    # pad the last content position of batch item 1
    content_kpm = jnp.zeros((B, T), jnp.bool_).at[1, T - 1].set(True)

    fwd = jax.jit(lambda w, q, c, m, qm, cm, kp:
                  decoder_forward(w, q, c, m, qm, cm, kp, meta=meta))
    out = fwd(w_slab, query, content, memory, query_mask, content_mask, content_kpm)
    out = jax.block_until_ready(out)

    assert out.shape == (B, T, D_MODEL)
    assert bool(jnp.all(jnp.isfinite(out)))

    ref = _decoder_reference(params, query, content, memory,
                             query_mask, content_mask, content_kpm)
    err = float(jnp.max(jnp.abs(out - ref)))
    assert err < 2e-2, f"kernel/reference mismatch: max abs err = {err}"
    print("KERNEL_OK")
</pallas_src>

<mosaic_0001>
module attributes {stable_mosaic.version = 11 : i64} {
  func.func @kernel(%arg0: i32, %arg1: memref<1x8x32xf32, #tpu.memory_space<vmem>>, %arg2: memref<1x8x32xf32, #tpu.memory_space<vmem>>, %arg3: memref<1x16x32xf32, #tpu.memory_space<vmem>>, %arg4: memref<1x16x8xf32, #tpu.memory_space<vmem>>, %arg5: memref<2448x128xf32, #tpu.memory_space<vmem>>, %arg6: memref<1x8x32xf32, #tpu.memory_space<vmem>>) attributes {dimension_semantics = [#tpu.dimension_semantics<parallel>], iteration_bounds = array<i64: 2>, scalar_prefetch = 0 : i64, scratch_operands = 0 : i64, tpu.core_type = #tpu.core_type<tc>, window_params = [{transform_indices = @transform_0, window_bounds = array<i64: 1, 8, 32>}, {transform_indices = @transform_1, window_bounds = array<i64: 1, 8, 32>}, {transform_indices = @transform_2, window_bounds = array<i64: 1, 16, 32>}, {transform_indices = @transform_3, window_bounds = array<i64: 1, 16, 8>}, {pipeline_mode = #tpu.pipeline_mode<synchronous>, transform_indices = @transform_4, window_bounds = array<i64: 2448, 128>}, {transform_indices = @transform_5, window_bounds = array<i64: 1, 8, 32>}]} {
    %c0 = arith.constant 0 : index
    %c0_0 = arith.constant 0 : index
    %c0_1 = arith.constant 0 : index
    %0 = vector.load %arg1[%c0, %c0_0, %c0_1] : memref<1x8x32xf32, #tpu.memory_space<vmem>>, vector<1x8x32xf32>
    %1 = vector.shape_cast %0 : vector<1x8x32xf32> to vector<8x32xf32>
    %c0_2 = arith.constant 0 : index
    %c0_3 = arith.constant 0 : index
    %c0_4 = arith.constant 0 : index
    %2 = vector.load %arg2[%c0_2, %c0_3, %c0_4] : memref<1x8x32xf32, #tpu.memory_space<vmem>>, vector<1x8x32xf32>
    %3 = vector.shape_cast %2 : vector<1x8x32xf32> to vector<8x32xf32>
    %c0_5 = arith.constant 0 : index
    %c0_6 = arith.constant 0 : index
    %c0_7 = arith.constant 0 : index
    %4 = vector.load %arg3[%c0_5, %c0_6, %c0_7] : memref<1x16x32xf32, #tpu.memory_space<vmem>>, vector<1x16x32xf32>
    %5 = vector.shape_cast %4 : vector<1x16x32xf32> to vector<16x32xf32>
    %c0_8 = arith.constant 0 : index
    %c0_9 = arith.constant 0 : index
    %c0_10 = arith.constant 0 : index
    %6 = vector.load %arg4[%c0_8, %c0_9, %c0_10] : memref<1x16x8xf32, #tpu.memory_space<vmem>>, vector<1x16x8xf32>
    %c0_11 = arith.constant 0 : index
    %c0_12 = arith.constant 0 : index
    %7 = vector.load %arg5[%c0_11, %c0_12] : memref<2448x128xf32, #tpu.memory_space<vmem>>, vector<1x32xf32>
    %c8 = arith.constant 8 : index
    %c0_13 = arith.constant 0 : index
    %8 = vector.load %arg5[%c8, %c0_13] : memref<2448x128xf32, #tpu.memory_space<vmem>>, vector<1x32xf32>
    %cst = arith.constant dense<0.000000e+00> : vector<8xf32>
    %9 = vector.multi_reduction <add>, %1, %cst [1] : vector<8x32xf32> to vector<8xf32>
    %10 = vector.shape_cast %9 : vector<8xf32> to vector<8x1xf32>
    %cst_14 = arith.constant 3.200000e+01 : f32
    %11 = vector.broadcast %cst_14 : f32 to vector<8x1xf32>
    %12 = arith.divf %10, %11 : vector<8x1xf32>
    %13 = vector.broadcast %12 : vector<8x1xf32> to vector<8x32xf32>
    %14 = arith.subf %1, %13 : vector<8x32xf32>
    %15 = arith.mulf %14, %14 : vector<8x32xf32>
    %cst_15 = arith.constant dense<0.000000e+00> : vector<8xf32>
    %16 = vector.multi_reduction <add>, %15, %cst_15 [1] : vector<8x32xf32> to vector<8xf32>
    %17 = vector.shape_cast %16 : vector<8xf32> to vector<8x1xf32>
    %cst_16 = arith.constant 3.200000e+01 : f32
    %18 = vector.broadcast %cst_16 : f32 to vector<8x1xf32>
    %19 = arith.divf %17, %18 : vector<8x1xf32>
    %cst_17 = arith.constant 9.99999974E-6 : f32
    %20 = vector.broadcast %cst_17 : f32 to vector<8x1xf32>
    %21 = arith.addf %19, %20 : vector<8x1xf32>
    %22 = math.rsqrt %21 : vector<8x1xf32>
    %23 = vector.broadcast %22 : vector<8x1xf32> to vector<8x32xf32>
    %24 = arith.mulf %14, %23 : vector<8x32xf32>
    %25 = vector.broadcast %7 : vector<1x32xf32> to vector<8x32xf32>
    %26 = arith.mulf %24, %25 : vector<8x32xf32>
    %27 = vector.broadcast %8 : vector<1x32xf32> to vector<8x32xf32>
    %28 = arith.addf %26, %27 : vector<8x32xf32>
    %c16 = arith.constant 16 : index
    %c0_18 = arith.constant 0 : index
    %29 = vector.load %arg5[%c16, %c0_18] : memref<2448x128xf32, #tpu.memory_space<vmem>>, vector<1x32xf32>
    %c24 = arith.constant 24 : index
    %c0_19 = arith.constant 0 : index
    %30 = vector.load %arg5[%c24, %c0_19] : memref<2448x128xf32, #tpu.memory_space<vmem>>, vector<1x32xf32>
    %cst_20 = arith.constant dense<0.000000e+00> : vector<8xf32>
    %31 = vector.multi_reduction <add>, %3, %cst_20 [1] : vector<8x32xf32> to vector<8xf32>
    %32 = vector.shape_cast %31 : vector<8xf32> to vector<8x1xf32>
    %cst_21 = arith.constant 3.200000e+01 : f32
    %33 = vector.broadcast %cst_21 : f32 to vector<8x1xf32>
    %34 = arith.divf %32, %33 : vector<8x1xf32>
    %35 = vector.broadcast %34 : vector<8x1xf32> to vector<8x32xf32>
    %36 = arith.subf %3, %35 : vector<8x32xf32>
    %37 = arith.mulf %36, %36 : vector<8x32xf32>
    %cst_22 = arith.constant dense<0.000000e+00> : vector<8xf32>
    %38 = vector.multi_reduction <add>, %37, %cst_22 [1] : vector<8x32xf32> to vector<8xf32>
    %39 = vector.shape_cast %38 : vector<8xf32> to vector<8x1xf32>
    %cst_23 = arith.constant 3.200000e+01 : f32
    %40 = vector.broadcast %cst_23 : f32 to vector<8x1xf32>
    %41 = arith.divf %39, %40 : vector<8x1xf32>
    %cst_24 = arith.constant 9.99999974E-6 : f32
    %42 = vector.broadcast %cst_24 : f32 to vector<8x1xf32>
    %43 = arith.addf %41, %42 : vector<8x1xf32>
    %44 = math.rsqrt %43 : vector<8x1xf32>
    %45 = vector.broadcast %44 : vector<8x1xf32> to vector<8x32xf32>
    %46 = arith.mulf %36, %45 : vector<8x32xf32>
    %47 = vector.broadcast %29 : vector<1x32xf32> to vector<8x32xf32>
    %48 = arith.mulf %46, %47 : vector<8x32xf32>
    %49 = vector.broadcast %30 : vector<1x32xf32> to vector<8x32xf32>
    %50 = arith.addf %48, %49 : vector<8x32xf32>
    %51 = tpu.concatenate %1, %3 in 0 : vector<8x32xf32>, vector<8x32xf32> -> vector<16x32xf32>
    %52 = tpu.concatenate %28, %50 in 0 : vector<8x32xf32>, vector<8x32xf32> -> vector<16x32xf32>
    %c64 = arith.constant 64 : index
    %c0_25 = arith.constant 0 : index
    %53 = vector.load %arg5[%c64, %c0_25] : memref<2448x128xf32, #tpu.memory_space<vmem>>, vector<32x8xf32>
    %cst_26 = arith.constant dense<0.000000e+00> : vector<16x8xf32>
    %54 = tpu.matmul %52, %53, %cst_26 {dimension_numbers = #tpu.dot_dimension_numbers<[1], [0], [0], [1], [0, 0, 1, 1], [], []>} : vector<16x32xf32>, vector<32x8xf32>, vector<16x8xf32> -> vector<16x8xf32>
    %c168 = arith.constant 168 : index
    %c0_27 = arith.constant 0 : index
    %55 = vector.load %arg5[%c168, %c0_27] : memref<2448x128xf32, #tpu.memory_space<vmem>>, vector<1x8xf32>
    %56 = vector.broadcast %55 : vector<1x8xf32> to vector<16x8xf32>
    %57 = arith.addf %54, %56 : vector<16x8xf32>
    %c96 = arith.constant 96 : index
    %c0_28 = arith.constant 0 : index
    %58 = vector.load %arg5[%c96, %c0_28] : memref<2448x128xf32, #tpu.memory_space<vmem>>, vector<32x8xf32>
    %cst_29 = arith.constant dense<0.000000e+00> : vector<8x8xf32>
    %59 = tpu.matmul %50, %58, %cst_29 {dimension_numbers = #tpu.dot_dimension_numbers<[1], [0], [0], [1], [0, 0, 1, 1], [], []>} : vector<8x32xf32>, vector<32x8xf32>, vector<8x8xf32> -> vector<8x8xf32>
    %c176 = arith.constant 176 : index
    %c0_30 = arith.constant 0 : index
    %60 = vector.load %arg5[%c176, %c0_30] : memref<2448x128xf32, #tpu.memory_space<vmem>>, vector<1x8xf32>
    %61 = vector.broadcast %60 : vector<1x8xf32> to vector<8x8xf32>
    %62 = arith.addf %59, %61 : vector<8x8xf32>
    %c128 = arith.constant 128 : index
    %c0_31 = arith.constant 0 : index
    %63 = vector.load %arg5[%c128, %c0_31] : memref<2448x128xf32, #tpu.memory_space<vmem>>, vector<32x8xf32>
    %cst_32 = arith.constant dense<0.000000e+00> : vector<8x8xf32>
    %64 = tpu.matmul %50, %63, %cst_32 {dimension_numbers = #tpu.dot_dimension_numbers<[1], [0], [0], [1], [0, 0, 1, 1], [], []>} : vector<8x32xf32>, vector<32x8xf32>, vector<8x8xf32> -> vector<8x8xf32>
    %c184 = arith.constant 184 : index
    %c0_33 = arith.constant 0 : index
    %65 = vector.load %arg5[%c184, %c0_33] : memref<2448x128xf32, #tpu.memory_space<vmem>>, vector<1x8xf32>
    %66 = vector.broadcast %65 : vector<1x8xf32> to vector<8x8xf32>
    %67 = arith.addf %64, %66 : vector<8x8xf32>
    %c160 = arith.constant 160 : index
    %c0_34 = arith.constant 0 : index
    %68 = vector.load %arg5[%c160, %c0_34] : memref<2448x128xf32, #tpu.memory_space<vmem>>, vector<8x32xf32>
    %69 = vector.extract_strided_slice %57 {offsets = [0, 0], sizes = [8, 8], strides = [1, 1]} : vector<16x8xf32> to vector<8x8xf32>
    %cst_35 = arith.constant dense<0.000000e+00> : vector<8x8xf32>
    %70 = tpu.matmul %69, %62, %cst_35 {dimension_numbers = #tpu.dot_dimension_numbers<[1], [1], [0], [0], [0, 0, 1, 0], [], []>} : vector<8x8xf32>, vector<8x8xf32>, vector<8x8xf32> -> vector<8x8xf32>
    %cst_36 = arith.constant 0.353553385 : f32
    %71 = vector.broadcast %cst_36 : f32 to vector<8x8xf32>
    %72 = arith.mulf %70, %71 : vector<8x8xf32>
    %73 = vector.extract_strided_slice %6 {offsets = [0, 0, 0], sizes = [1, 8, 8], strides = [1, 1, 1]} : vector<1x16x8xf32> to vector<1x8x8xf32>
    %74 = vector.shape_cast %73 : vector<1x8x8xf32> to vector<8x8xf32>
    %75 = arith.addf %72, %74 : vector<8x8xf32>
    %cst_37 = arith.constant dense<0xFF800000> : vector<8xf32>
    %76 = vector.multi_reduction <maximumf>, %75, %cst_37 [1] : vector<8x8xf32> to vector<8xf32>
    %77 = vector.shape_cast %76 : vector<8xf32> to vector<8x1xf32>
    %78 = vector.broadcast %77 : vector<8x1xf32> to vector<8x8xf32>
    %79 = arith.subf %75, %78 : vector<8x8xf32>
    %80 = math.exp %79 : vector<8x8xf32>
    %cst_38 = arith.constant dense<0.000000e+00> : vector<8xf32>
    %81 = vector.multi_reduction <add>, %80, %cst_38 [1] : vector<8x8xf32> to vector<8xf32>
    %82 = vector.shape_cast %81 : vector<8xf32> to vector<8x1xf32>
    %83 = tpu.reciprocal %82 {approx = true} : vector<8x1xf32> -> vector<8x1xf32>
    %84 = vector.broadcast %83 : vector<8x1xf32> to vector<8x8xf32>
    %85 = arith.mulf %80, %84 : vector<8x8xf32>
    %cst_39 = arith.constant dense<0.000000e+00> : vector<8x8xf32>
    %86 = tpu.matmul %85, %67, %cst_39 {dimension_numbers = #tpu.dot_dimension_numbers<[1], [0], [0], [1], [0, 0, 1, 1], [], []>} : vector<8x8xf32>, vector<8x8xf32>, vector<8x8xf32> -> vector<8x8xf32>
    %cst_40 = arith.constant dense<0.000000e+00> : vector<8x32xf32>
    %87 = tpu.matmul %86, %68, %cst_40 {dimension_numbers = #tpu.dot_dimension_numbers<[1], [0], [0], [1], [0, 0, 1, 1], [], []>} : vector<8x8xf32>, vector<8x32xf32>, vector<8x32xf32> -> vector<8x32xf32>
    %88 = vector.extract_strided_slice %57 {offsets = [8, 0], sizes = [8, 8], strides = [1, 1]} : vector<16x8xf32> to vector<8x8xf32>
    %cst_41 = arith.constant dense<0.000000e+00> : vector<8x8xf32>
    %89 = tpu.matmul %88, %62, %cst_41 {dimension_numbers = #tpu.dot_dimension_numbers<[1], [1], [0], [0], [0, 0, 1, 0], [], []>} : vector<8x8xf32>, vector<8x8xf32>, vector<8x8xf32> -> vector<8x8xf32>
    %cst_42 = arith.constant 0.353553385 : f32
    %90 = vector.broadcast %cst_42 : f32 to vector<8x8xf32>
    %91 = arith.mulf %89, %90 : vector<8x8xf32>
    %92 = vector.extract_strided_slice %6 {offsets = [0, 8, 0], sizes = [1, 8, 8], strides = [1, 1, 1]} : vector<1x16x8xf32> to vector<1x8x8xf32>
    %93 = vector.shape_cast %92 : vector<1x8x8xf32> to vector<8x8xf32>
    %94 = arith.addf %91, %93 : vector<8x8xf32>
    %cst_43 = arith.constant dense<0xFF800000> : vector<8xf32>
    %95 = vector.multi_reduction <maximumf>, %94, %cst_43 [1] : vector<8x8xf32> to vector<8xf32>
    %96 = vector.shape_cast %95 : vector<8xf32> to vector<8x1xf32>
    %97 = vector.broadcast %96 : vector<8x1xf32> to vector<8x8xf32>
    %98 = arith.subf %94, %97 : vector<8x8xf32>
    %99 = math.exp %98 : vector<8x8xf32>
    %cst_44 = arith.constant dense<0.000000e+00> : vector<8xf32>
    %100 = vector.multi_reduction <add>, %99, %cst_44 [1] : vector<8x8xf32> to vector<8xf32>
    %101 = vector.shape_cast %100 : vector<8xf32> to vector<8x1xf32>
    %102 = tpu.reciprocal %101 {approx = true} : vector<8x1xf32> -> vector<8x1xf32>
    %103 = vector.broadcast %102 : vector<8x1xf32> to vector<8x8xf32>
    %104 = arith.mulf %99, %103 : vector<8x8xf32>
    %cst_45 = arith.constant dense<0.000000e+00> : vector<8x8xf32>
    %105 = tpu.matmul %104, %67, %cst_45 {dimension_numbers = #tpu.dot_dimension_numbers<[1], [0], [0], [1], [0, 0, 1, 1], [], []>} : vector<8x8xf32>, vector<8x8xf32>, vector<8x8xf32> -> vector<8x8xf32>
    %cst_46 = arith.constant dense<0.000000e+00> : vector<8x32xf32>
    %106 = tpu.matmul %105, %68, %cst_46 {dimension_numbers = #tpu.dot_dimension_numbers<[1], [0], [0], [1], [0, 0, 1, 1], [], []>} : vector<8x8xf32>, vector<8x32xf32>, vector<8x32xf32> -> vector<8x32xf32>
    %c192 = arith.constant 192 : index
    %c0_47 = arith.constant 0 : index
    %107 = vector.load %arg5[%c192, %c0_47] : memref<2448x128xf32, #tpu.memory_space<vmem>>, vector<32x8xf32>
    %cst_48 = arith.constant dense<0.000000e+00> : vector<16x8xf32>
    %108 = tpu.matmul %52, %107, %cst_48 {dimension_numbers = #tpu.dot_dimension_numbers<[1], [0], [0], [1], [0, 0, 1, 1], [], []>} : vector<16x32xf32>, vector<32x8xf32>, vector<16x8xf32> -> vector<16x8xf32>
    %c296 = arith.constant 296 : index
    %c0_49 = arith.constant 0 : index
    %109 = vector.load %arg5[%c296, %c0_49] : memref<2448x128xf32, #tpu.memory_space<vmem>>, vector<1x8xf32>
    %110 = vector.broadcast %109 : vector<1x8xf32> to vector<16x8xf32>
    %111 = arith.addf %108, %110 : vector<16x8xf32>
    %c224 = arith.constant 224 : index
    %c0_50 = arith.constant 0 : index
    %112 = vector.load %arg5[%c224, %c0_50] : memref<2448x128xf32, #tpu.memory_space<vmem>>, vector<32x8xf32>
    %cst_51 = arith.constant dense<0.000000e+00> : vector<8x8xf32>
    %113 = tpu.matmul %50, %112, %cst_51 {dimension_numbers = #tpu.dot_dimension_numbers<[1], [0], [0], [1], [0, 0, 1, 1], [], []>} : vector<8x32xf32>, vector<32x8xf32>, vector<8x8xf32> -> vector<8x8xf32>
    %c304 = arith.constant 304 : index
    %c0_52 = arith.constant 0 : index
    %114 = vector.load %arg5[%c304, %c0_52] : memref<2448x128xf32, #tpu.memory_space<vmem>>, vector<1x8xf32>
    %115 = vector.broadcast %114 : vector<1x8xf32> to vector<8x8xf32>
    %116 = arith.addf %113, %115 : vector<8x8xf32>
    %c256 = arith.constant 256 : index
    %c0_53 = arith.constant 0 : index
    %117 = vector.load %arg5[%c256, %c0_53] : memref<2448x128xf32, #tpu.memory_space<vmem>>, vector<32x8xf32>
    %cst_54 = arith.constant dense<0.000000e+00> : vector<8x8xf32>
    %118 = tpu.matmul %50, %117, %cst_54 {dimension_numbers = #tpu.dot_dimension_numbers<[1], [0], [0], [1], [0, 0, 1, 1], [], []>} : vector<8x32xf32>, vector<32x8xf32>, vector<8x8xf32> -> vector<8x8xf32>
    %c312 = arith.constant 312 : index
    %c0_55 = arith.constant 0 : index
    %119 = vector.load %arg5[%c312, %c0_55] : memref<2448x128xf32, #tpu.memory_space<vmem>>, vector<1x8xf32>
    %120 = vector.broadcast %119 : vector<1x8xf32> to vector<8x8xf32>
    %121 = arith.addf %118, %120 : vector<8x8xf32>
    %c288 = arith.constant 288 : index
    %c0_56 = arith.constant 0 : index
    %122 = vector.load %arg5[%c288, %c0_56] : memref<2448x128xf32, #tpu.memory_space<vmem>>, vector<8x32xf32>
    %123 = vector.extract_strided_slice %111 {offsets = [0, 0], sizes = [8, 8], strides = [1, 1]} : vector<16x8xf32> to vector<8x8xf32>
    %cst_57 = arith.constant dense<0.000000e+00> : vector<8x8xf32>
    %124 = tpu.matmul %123, %116, %cst_57 {dimension_numbers = #tpu.dot_dimension_numbers<[1], [1], [0], [0], [0, 0, 1, 0], [], []>} : vector<8x8xf32>, vector<8x8xf32>, vector<8x8xf32> -> vector<8x8xf32>
    %cst_58 = arith.constant 0.353553385 : f32
    %125 = vector.broadcast %cst_58 : f32 to vector<8x8xf32>
    %126 = arith.mulf %124, %125 : vector<8x8xf32>
    %127 = vector.extract_strided_slice %6 {offsets = [0, 0, 0], sizes = [1, 8, 8], strides = [1, 1, 1]} : vector<1x16x8xf32> to vector<1x8x8xf32>
    %128 = vector.shape_cast %127 : vector<1x8x8xf32> to vector<8x8xf32>
    %129 = arith.addf %126, %128 : vector<8x8xf32>
    %cst_59 = arith.constant dense<0xFF800000> : vector<8xf32>
    %130 = vector.multi_reduction <maximumf>, %129, %cst_59 [1] : vector<8x8xf32> to vector<8xf32>
    %131 = vector.shape_cast %130 : vector<8xf32> to vector<8x1xf32>
    %132 = vector.broadcast %131 : vector<8x1xf32> to vector<8x8xf32>
    %133 = arith.subf %129, %132 : vector<8x8xf32>
    %134 = math.exp %133 : vector<8x8xf32>
    %cst_60 = arith.constant dense<0.000000e+00> : vector<8xf32>
    %135 = vector.multi_reduction <add>, %134, %cst_60 [1] : vector<8x8xf32> to vector<8xf32>
    %136 = vector.shape_cast %135 : vector<8xf32> to vector<8x1xf32>
    %137 = tpu.reciprocal %136 {approx = true} : vector<8x1xf32> -> vector<8x1xf32>
    %138 = vector.broadcast %137 : vector<8x1xf32> to vector<8x8xf32>
    %139 = arith.mulf %134, %138 : vector<8x8xf32>
    %cst_61 = arith.constant dense<0.000000e+00> : vector<8x8xf32>
    %140 = tpu.matmul %139, %121, %cst_61 {dimension_numbers = #tpu.dot_dimension_numbers<[1], [0], [0], [1], [0, 0, 1, 1], [], []>} : vector<8x8xf32>, vector<8x8xf32>, vector<8x8xf32> -> vector<8x8xf32>
    %cst_62 = arith.constant dense<0.000000e+00> : vector<8x32xf32>
    %141 = tpu.matmul %140, %122, %cst_62 {dimension_numbers = #tpu.dot_dimension_numbers<[1], [0], [0], [1], [0, 0, 1, 1], [], []>} : vector<8x8xf32>, vector<8x32xf32>, vector<8x32xf32> -> vector<8x32xf32>
    %142 = arith.addf %87, %141 : vector<8x32xf32>
    %143 = vector.extract_strided_slice %111 {offsets = [8, 0], sizes = [8, 8], strides = [1, 1]} : vector<16x8xf32> to vector<8x8xf32>
    %cst_63 = arith.constant dense<0.000000e+00> : vector<8x8xf32>
    %144 = tpu.matmul %143, %116, %cst_63 {dimension_numbers = #tpu.dot_dimension_numbers<[1], [1], [0], [0], [0, 0, 1, 0], [], []>} : vector<8x8xf32>, vector<8x8xf32>, vector<8x8xf32> -> vector<8x8xf32>
    %cst_64 = arith.constant 0.353553385 : f32
    %145 = vector.broadcast %cst_64 : f32 to vector<8x8xf32>
    %146 = arith.mulf %144, %145 : vector<8x8xf32>
    %147 = vector.extract_strided_slice %6 {offsets = [0, 8, 0], sizes = [1, 8, 8], strides = [1, 1, 1]} : vector<1x16x8xf32> to vector<1x8x8xf32>
    %148 = vector.shape_cast %147 : vector<1x8x8xf32> to vector<8x8xf32>
    %149 = arith.addf %146, %148 : vector<8x8xf32>
    %cst_65 = arith.constant dense<0xFF800000> : vector<8xf32>
    %150 = vector.multi_reduction <maximumf>, %149, %cst_65 [1] : vector<8x8xf32> to vector<8xf32>
    %151 = vector.shape_cast %150 : vector<8xf32> to vector<8x1xf32>
    %152 = vector.broadcast %151 : vector<8x1xf32> to vector<8x8xf32>
    %153 = arith.subf %149, %152 : vector<8x8xf32>
    %154 = math.exp %153 : vector<8x8xf32>
    %cst_66 = arith.constant dense<0.000000e+00> : vector<8xf32>
    %155 = vector.multi_reduction <add>, %154, %cst_66 [1] : vector<8x8xf32> to vector<8xf32>
    %156 = vector.shape_cast %155 : vector<8xf32> to vector<8x1xf32>
    %157 = tpu.reciprocal %156 {approx = true} : vector<8x1xf32> -> vector<8x1xf32>
    %158 = vector.broadcast %157 : vector<8x1xf32> to vector<8x8xf32>
    %159 = arith.mulf %154, %158 : vector<8x8xf32>
    %cst_67 = arith.constant dense<0.000000e+00> : vector<8x8xf32>
    %160 = tpu.matmul %159, %121, %cst_67 {dimension_numbers = #tpu.dot_dimension_numbers<[1], [0], [0], [1], [0, 0, 1, 1], [], []>} : vector<8x8xf32>, vector<8x8xf32>, vector<8x8xf32> -> vector<8x8xf32>
    %cst_68 = arith.constant dense<0.000000e+00> : vector<8x32xf32>
    %161 = tpu.matmul %160, %122, %cst_68 {dimension_numbers = #tpu.dot_dimension_numbers<[1], [0], [0], [1], [0, 0, 1, 1], [], []>} : vector<8x8xf32>, vector<8x32xf32>, vector<8x32xf32> -> vector<8x32xf32>
    %162 = arith.addf %106, %161 : vector<8x32xf32>
    %c320 = arith.constant 320 : index
    %c0_69 = arith.constant 0 : index
    %163 = vector.load %arg5[%c320, %c0_69] : memref<2448x128xf32, #tpu.memory_space<vmem>>, vector<32x8xf32>
    %cst_70 = arith.constant dense<0.000000e+00> : vector<16x8xf32>
    %164 = tpu.matmul %52, %163, %cst_70 {dimension_numbers = #tpu.dot_dimension_numbers<[1], [0], [0], [1], [0, 0, 1, 1], [], []>} : vector<16x32xf32>, vector<32x8xf32>, vector<16x8xf32> -> vector<16x8xf32>
    %c424 = arith.constant 424 : index
    %c0_71 = arith.constant 0 : index
    %165 = vector.load %arg5[%c424, %c0_71] : memref<2448x128xf32, #tpu.memory_space<vmem>>, vector<1x8xf32>
    %166 = vector.broadcast %165 : vector<1x8xf32> to vector<16x8xf32>
    %167 = arith.addf %164, %166 : vector<16x8xf32>
    %c352 = arith.constant 352 : index
    %c0_72 = arith.constant 0 : index
    %168 = vector.load %arg5[%c352, %c0_72] : memref<2448x128xf32, #tpu.memory_space<vmem>>, vector<32x8xf32>
    %cst_73 = arith.constant dense<0.000000e+00> : vector<8x8xf32>
    %169 = tpu.matmul %50, %168, %cst_73 {dimension_numbers = #tpu.dot_dimension_numbers<[1], [0], [0], [1], [0, 0, 1, 1], [], []>} : vector<8x32xf32>, vector<32x8xf32>, vector<8x8xf32> -> vector<8x8xf32>
    %c432 = arith.constant 432 : index
    %c0_74 = arith.constant 0 : index
    %170 = vector.load %arg5[%c432, %c0_74] : memref<2448x128xf32, #tpu.memory_space<vmem>>, vector<1x8xf32>
    %171 = vector.broadcast %170 : vector<1x8xf32> to vector<8x8xf32>
    %172 = arith.addf %169, %171 : vector<8x8xf32>
    %c384 = arith.constant 384 : index
    %c0_75 = arith.constant 0 : index
    %173 = vector.load %arg5[%c384, %c0_75] : memref<2448x128xf32, #tpu.memory_space<vmem>>, vector<32x8xf32>
    %cst_76 = arith.constant dense<0.000000e+00> : vector<8x8xf32>
    %174 = tpu.matmul %50, %173, %cst_76 {dimension_numbers = #tpu.dot_dimension_numbers<[1], [0], [0], [1], [0, 0, 1, 1], [], []>} : vector<8x32xf32>, vector<32x8xf32>, vector<8x8xf32> -> vector<8x8xf32>
    %c440 = arith.constant 440 : index
    %c0_77 = arith.constant 0 : index
    %175 = vector.load %arg5[%c440, %c0_77] : memref<2448x128xf32, #tpu.memory_space<vmem>>, vector<1x8xf32>
    %176 = vector.broadcast %175 : vector<1x8xf32> to vector<8x8xf32>
    %177 = arith.addf %174, %176 : vector<8x8xf32>
    %c416 = arith.constant 416 : index
    %c0_78 = arith.constant 0 : index
    %178 = vector.load %arg5[%c416, %c0_78] : memref<2448x128xf32, #tpu.memory_space<vmem>>, vector<8x32xf32>
    %179 = vector.extract_strided_slice %167 {offsets = [0, 0], sizes = [8, 8], strides = [1, 1]} : vector<16x8xf32> to vector<8x8xf32>
    %cst_79 = arith.constant dense<0.000000e+00> : vector<8x8xf32>
    %180 = tpu.matmul %179, %172, %cst_79 {dimension_numbers = #tpu.dot_dimension_numbers<[1], [1], [0], [0], [0, 0, 1, 0], [], []>} : vector<8x8xf32>, vector<8x8xf32>, vector<8x8xf32> -> vector<8x8xf32>
    %cst_80 = arith.constant 0.353553385 : f32
    %181 = vector.broadcast %cst_80 : f32 to vector<8x8xf32>
    %182 = arith.mulf %180, %181 : vector<8x8xf32>
    %183 = vector.extract_strided_slice %6 {offsets = [0, 0, 0], sizes = [1, 8, 8], strides = [1, 1, 1]} : vector<1x16x8xf32> to vector<1x8x8xf32>
    %184 = vector.shape_cast %183 : vector<1x8x8xf32> to vector<8x8xf32>
    %185 = arith.addf %182, %184 : vector<8x8xf32>
    %cst_81 = arith.constant dense<0xFF800000> : vector<8xf32>
    %186 = vector.multi_reduction <maximumf>, %185, %cst_81 [1] : vector<8x8xf32> to vector<8xf32>
    %187 = vector.shape_cast %186 : vector<8xf32> to vector<8x1xf32>
    %188 = vector.broadcast %187 : vector<8x1xf32> to vector<8x8xf32>
    %189 = arith.subf %185, %188 : vector<8x8xf32>
    %190 = math.exp %189 : vector<8x8xf32>
    %cst_82 = arith.constant dense<0.000000e+00> : vector<8xf32>
    %191 = vector.multi_reduction <add>, %190, %cst_82 [1] : vector<8x8xf32> to vector<8xf32>
    %192 = vector.shape_cast %191 : vector<8xf32> to vector<8x1xf32>
    %193 = tpu.reciprocal %192 {approx = true} : vector<8x1xf32> -> vector<8x1xf32>
    %194 = vector.broadcast %193 : vector<8x1xf32> to vector<8x8xf32>
    %195 = arith.mulf %190, %194 : vector<8x8xf32>
    %cst_83 = arith.constant dense<0.000000e+00> : vector<8x8xf32>
    %196 = tpu.matmul %195, %177, %cst_83 {dimension_numbers = #tpu.dot_dimension_numbers<[1], [0], [0], [1], [0, 0, 1, 1], [], []>} : vector<8x8xf32>, vector<8x8xf32>, vector<8x8xf32> -> vector<8x8xf32>
    %cst_84 = arith.constant dense<0.000000e+00> : vector<8x32xf32>
    %197 = tpu.matmul %196, %178, %cst_84 {dimension_numbers = #tpu.dot_dimension_numbers<[1], [0], [0], [1], [0, 0, 1, 1], [], []>} : vector<8x8xf32>, vector<8x32xf32>, vector<8x32xf32> -> vector<8x32xf32>
    %198 = arith.addf %142, %197 : vector<8x32xf32>
    %199 = vector.extract_strided_slice %167 {offsets = [8, 0], sizes = [8, 8], strides = [1, 1]} : vector<16x8xf32> to vector<8x8xf32>
    %cst_85 = arith.constant dense<0.000000e+00> : vector<8x8xf32>
    %200 = tpu.matmul %199, %172, %cst_85 {dimension_numbers = #tpu.dot_dimension_numbers<[1], [1], [0], [0], [0, 0, 1, 0], [], []>} : vector<8x8xf32>, vector<8x8xf32>, vector<8x8xf32> -> vector<8x8xf32>
    %cst_86 = arith.constant 0.353553385 : f32
    %201 = vector.broadcast %cst_86 : f32 to vector<8x8xf32>
    %202 = arith.mulf %200, %201 : vector<8x8xf32>
    %203 = vector.extract_strided_slice %6 {offsets = [0, 8, 0], sizes = [1, 8, 8], strides = [1, 1, 1]} : vector<1x16x8xf32> to vector<1x8x8xf32>
    %204 = vector.shape_cast %203 : vector<1x8x8xf32> to vector<8x8xf32>
    %205 = arith.addf %202, %204 : vector<8x8xf32>
    %cst_87 = arith.constant dense<0xFF800000> : vector<8xf32>
    %206 = vector.multi_reduction <maximumf>, %205, %cst_87 [1] : vector<8x8xf32> to vector<8xf32>
    %207 = vector.shape_cast %206 : vector<8xf32> to vector<8x1xf32>
    %208 = vector.broadcast %207 : vector<8x1xf32> to vector<8x8xf32>
    %209 = arith.subf %205, %208 : vector<8x8xf32>
    %210 = math.exp %209 : vector<8x8xf32>
    %cst_88 = arith.constant dense<0.000000e+00> : vector<8xf32>
    %211 = vector.multi_reduction <add>, %210, %cst_88 [1] : vector<8x8xf32> to vector<8xf32>
    %212 = vector.shape_cast %211 : vector<8xf32> to vector<8x1xf32>
    %213 = tpu.reciprocal %212 {approx = true} : vector<8x1xf32> -> vector<8x1xf32>
    %214 = vector.broadcast %213 : vector<8x1xf32> to vector<8x8xf32>
    %215 = arith.mulf %210, %214 : vector<8x8xf32>
    %cst_89 = arith.constant dense<0.000000e+00> : vector<8x8xf32>
    %216 = tpu.matmul %215, %177, %cst_89 {dimension_numbers = #tpu.dot_dimension_numbers<[1], [0], [0], [1], [0, 0, 1, 1], [], []>} : vector<8x8xf32>, vector<8x8xf32>, vector<8x8xf32> -> vector<8x8xf32>
    %cst_90 = arith.constant dense<0.000000e+00> : vector<8x32xf32>
    %217 = tpu.matmul %216, %178, %cst_90 {dimension_numbers = #tpu.dot_dimension_numbers<[1], [0], [0], [1], [0, 0, 1, 1], [], []>} : vector<8x8xf32>, vector<8x32xf32>, vector<8x32xf32> -> vector<8x32xf32>
    %218 = arith.addf %162, %217 : vector<8x32xf32>
    %c448 = arith.constant 448 : index
    %c0_91 = arith.constant 0 : index
    %219 = vector.load %arg5[%c448, %c0_91] : memref<2448x128xf32, #tpu.memory_space<vmem>>, vector<32x8xf32>
    %cst_92 = arith.constant dense<0.000000e+00> : vector<16x8xf32>
    %220 = tpu.matmul %52, %219, %cst_92 {dimension_numbers = #tpu.dot_dimension_numbers<[1], [0], [0], [1], [0, 0, 1, 1], [], []>} : vector<16x32xf32>, vector<32x8xf32>, vector<16x8xf32> -> vector<16x8xf32>
    %c552 = arith.constant 552 : index
    %c0_93 = arith.constant 0 : index
    %221 = vector.load %arg5[%c552, %c0_93] : memref<2448x128xf32, #tpu.memory_space<vmem>>, vector<1x8xf32>
    %222 = vector.broadcast %221 : vector<1x8xf32> to vector<16x8xf32>
    %223 = arith.addf %220, %222 : vector<16x8xf32>
    %c480 = arith.constant 480 : index
    %c0_94 = arith.constant 0 : index
    %224 = vector.load %arg5[%c480, %c0_94] : memref<2448x128xf32, #tpu.memory_space<vmem>>, vector<32x8xf32>
    %cst_95 = arith.constant dense<0.000000e+00> : vector<8x8xf32>
    %225 = tpu.matmul %50, %224, %cst_95 {dimension_numbers = #tpu.dot_dimension_numbers<[1], [0], [0], [1], [0, 0, 1, 1], [], []>} : vector<8x32xf32>, vector<32x8xf32>, vector<8x8xf32> -> vector<8x8xf32>
    %c560 = arith.constant 560 : index
    %c0_96 = arith.constant 0 : index
    %226 = vector.load %arg5[%c560, %c0_96] : memref<2448x128xf32, #tpu.memory_space<vmem>>, vector<1x8xf32>
    %227 = vector.broadcast %226 : vector<1x8xf32> to vector<8x8xf32>
    %228 = arith.addf %225, %227 : vector<8x8xf32>
    %c512 = arith.constant 512 : index
    %c0_97 = arith.constant 0 : index
    %229 = vector.load %arg5[%c512, %c0_97] : memref<2448x128xf32, #tpu.memory_space<vmem>>, vector<32x8xf32>
    %cst_98 = arith.constant dense<0.000000e+00> : vector<8x8xf32>
    %230 = tpu.matmul %50, %229, %cst_98 {dimension_numbers = #tpu.dot_dimension_numbers<[1], [0], [0], [1], [0, 0, 1, 1], [], []>} : vector<8x32xf32>, vector<32x8xf32>, vector<8x8xf32> -> vector<8x8xf32>
    %c568 = arith.constant 568 : index
    %c0_99 = arith.constant 0 : index
    %231 = vector.load %arg5[%c568, %c0_99] : memref<2448x128xf32, #tpu.memory_space<vmem>>, vector<1x8xf32>
    %232 = vector.broadcast %231 : vector<1x8xf32> to vector<8x8xf32>
    %233 = arith.addf %230, %232 : vector<8x8xf32>
    %c544 = arith.constant 544 : index
    %c0_100 = arith.constant 0 : index
    %234 = vector.load %arg5[%c544, %c0_100] : memref<2448x128xf32, #tpu.memory_space<vmem>>, vector<8x32xf32>
    %235 = vector.extract_strided_slice %223 {offsets = [0, 0], sizes = [8, 8], strides = [1, 1]} : vector<16x8xf32> to vector<8x8xf32>
    %cst_101 = arith.constant dense<0.000000e+00> : vector<8x8xf32>
    %236 = tpu.matmul %235, %228, %cst_101 {dimension_numbers = #tpu.dot_dimension_numbers<[1], [1], [0], [0], [0, 0, 1, 0], [], []>} : vector<8x8xf32>, vector<8x8xf32>, vector<8x8xf32> -> vector<8x8xf32>
    %cst_102 = arith.constant 0.353553385 : f32
    %237 = vector.broadcast %cst_102 : f32 to vector<8x8xf32>
    %238 = arith.mulf %236, %237 : vector<8x8xf32>
    %239 = vector.extract_strided_slice %6 {offsets = [0, 0, 0], sizes = [1, 8, 8], strides = [1, 1, 1]} : vector<1x16x8xf32> to vector<1x8x8xf32>
    %240 = vector.shape_cast %239 : vector<1x8x8xf32> to vector<8x8xf32>
    %241 = arith.addf %238, %240 : vector<8x8xf32>
    %cst_103 = arith.constant dense<0xFF800000> : vector<8xf32>
    %242 = vector.multi_reduction <maximumf>, %241, %cst_103 [1] : vector<8x8xf32> to vector<8xf32>
    %243 = vector.shape_cast %242 : vector<8xf32> to vector<8x1xf32>
    %244 = vector.broadcast %243 : vector<8x1xf32> to vector<8x8xf32>
    %245 = arith.subf %241, %244 : vector<8x8xf32>
    %246 = math.exp %245 : vector<8x8xf32>
    %cst_104 = arith.constant dense<0.000000e+00> : vector<8xf32>
    %247 = vector.multi_reduction <add>, %246, %cst_104 [1] : vector<8x8xf32> to vector<8xf32>
    %248 = vector.shape_cast %247 : vector<8xf32> to vector<8x1xf32>
    %249 = tpu.reciprocal %248 {approx = true} : vector<8x1xf32> -> vector<8x1xf32>
    %250 = vector.broadcast %249 : vector<8x1xf32> to vector<8x8xf32>
    %251 = arith.mulf %246, %250 : vector<8x8xf32>
    %cst_105 = arith.constant dense<0.000000e+00> : vector<8x8xf32>
    %252 = tpu.matmul %251, %233, %cst_105 {dimension_numbers = #tpu.dot_dimension_numbers<[1], [0], [0], [1], [0, 0, 1, 1], [], []>} : vector<8x8xf32>, vector<8x8xf32>, vector<8x8xf32> -> vector<8x8xf32>
    %cst_106 = arith.constant dense<0.000000e+00> : vector<8x32xf32>
    %253 = tpu.matmul %252, %234, %cst_106 {dimension_numbers = #tpu.dot_dimension_numbers<[1], [0], [0], [1], [0, 0, 1, 1], [], []>} : vector<8x8xf32>, vector<8x32xf32>, vector<8x32xf32> -> vector<8x32xf32>
    %254 = arith.addf %198, %253 : vector<8x32xf32>
    %255 = vector.extract_strided_slice %223 {offsets = [8, 0], sizes = [8, 8], strides = [1, 1]} : vector<16x8xf32> to vector<8x8xf32>
    %cst_107 = arith.constant dense<0.000000e+00> : vector<8x8xf32>
    %256 = tpu.matmul %255, %228, %cst_107 {dimension_numbers = #tpu.dot_dimension_numbers<[1], [1], [0], [0], [0, 0, 1, 0], [], []>} : vector<8x8xf32>, vector<8x8xf32>, vector<8x8xf32> -> vector<8x8xf32>
    %cst_108 = arith.constant 0.353553385 : f32
    %257 = vector.broadcast %cst_108 : f32 to vector<8x8xf32>
    %258 = arith.mulf %256, %257 : vector<8x8xf32>
    %259 = vector.extract_strided_slice %6 {offsets = [0, 8, 0], sizes = [1, 8, 8], strides = [1, 1, 1]} : vector<1x16x8xf32> to vector<1x8x8xf32>
    %260 = vector.shape_cast %259 : vector<1x8x8xf32> to vector<8x8xf32>
    %261 = arith.addf %258, %260 : vector<8x8xf32>
    %cst_109 = arith.constant dense<0xFF800000> : vector<8xf32>
    %262 = vector.multi_reduction <maximumf>, %261, %cst_109 [1] : vector<8x8xf32> to vector<8xf32>
    %263 = vector.shape_cast %262 : vector<8xf32> to vector<8x1xf32>
    %264 = vector.broadcast %263 : vector<8x1xf32> to vector<8x8xf32>
    %265 = arith.subf %261, %264 : vector<8x8xf32>
    %266 = math.exp %265 : vector<8x8xf32>
    %cst_110 = arith.constant dense<0.000000e+00> : vector<8xf32>
    %267 = vector.multi_reduction <add>, %266, %cst_110 [1] : vector<8x8xf32> to vector<8xf32>
    %268 = vector.shape_cast %267 : vector<8xf32> to vector<8x1xf32>
    %269 = tpu.reciprocal %268 {approx = true} : vector<8x1xf32> -> vector<8x1xf32>
    %270 = vector.broadcast %269 : vector<8x1xf32> to vector<8x8xf32>
    %271 = arith.mulf %266, %270 : vector<8x8xf32>
    %cst_111 = arith.constant dense<0.000000e+00> : vector<8x8xf32>
    %272 = tpu.matmul %271, %233, %cst_111 {dimension_numbers = #tpu.dot_dimension_numbers<[1], [0], [0], [1], [0, 0, 1, 1], [], []>} : vector<8x8xf32>, vector<8x8xf32>, vector<8x8xf32> -> vector<8x8xf32>
    %cst_112 = arith.constant dense<0.000000e+00> : vector<8x32xf32>
    %273 = tpu.matmul %272, %234, %cst_112 {dimension_numbers = #tpu.dot_dimension_numbers<[1], [0], [0], [1], [0, 0, 1, 1], [], []>} : vector<8x8xf32>, vector<8x32xf32>, vector<8x32xf32> -> vector<8x32xf32>
    %274 = arith.addf %218, %273 : vector<8x32xf32>
    %275 = tpu.concatenate %254, %274 in 0 : vector<8x32xf32>, vector<8x32xf32> -> vector<16x32xf32>
    %c576 = arith.constant 576 : index
    %c0_113 = arith.constant 0 : index
    %276 = vector.load %arg5[%c576, %c0_113] : memref<2448x128xf32, #tpu.memory_space<vmem>>, vector<1x32xf32>
    %277 = vector.broadcast %276 : vector<1x32xf32> to vector<16x32xf32>
    %278 = arith.addf %275, %277 : vector<16x32xf32>
    %279 = arith.addf %51, %278 : vector<16x32xf32>
    %c32 = arith.constant 32 : index
    %c0_114 = arith.constant 0 : index
    %280 = vector.load %arg5[%c32, %c0_114] : memref<2448x128xf32, #tpu.memory_space<vmem>>, vector<1x32xf32>
    %c40 = arith.constant 40 : index
    %c0_115 = arith.constant 0 : index
    %281 = vector.load %arg5[%c40, %c0_115] : memref<2448x128xf32, #tpu.memory_space<vmem>>, vector<1x32xf32>
    %cst_116 = arith.constant dense<0.000000e+00> : vector<16xf32>
    %282 = vector.multi_reduction <add>, %279, %cst_116 [1] : vector<16x32xf32> to vector<16xf32>
    %283 = vector.shape_cast %282 : vector<16xf32> to vector<16x1xf32>
    %cst_117 = arith.constant 3.200000e+01 : f32
    %284 = vector.broadcast %cst_117 : f32 to vector<16x1xf32>
    %285 = arith.divf %283, %284 : vector<16x1xf32>
    %286 = vector.broadcast %285 : vector<16x1xf32> to vector<16x32xf32>
    %287 = arith.subf %279, %286 : vector<16x32xf32>
    %288 = arith.mulf %287, %287 : vector<16x32xf32>
    %cst_118 = arith.constant dense<0.000000e+00> : vector<16xf32>
    %289 = vector.multi_reduction <add>, %288, %cst_118 [1] : vector<16x32xf32> to vector<16xf32>
    %290 = vector.shape_cast %289 : vector<16xf32> to vector<16x1xf32>
    %cst_119 = arith.constant 3.200000e+01 : f32
    %291 = vector.broadcast %cst_119 : f32 to vector<16x1xf32>
    %292 = arith.divf %290, %291 : vector<16x1xf32>
    %cst_120 = arith.constant 9.99999974E-6 : f32
    %293 = vector.broadcast %cst_120 : f32 to vector<16x1xf32>
    %294 = arith.addf %292, %293 : vector<16x1xf32>
    %295 = math.rsqrt %294 : vector<16x1xf32>
    %296 = vector.broadcast %295 : vector<16x1xf32> to vector<16x32xf32>
    %297 = arith.mulf %287, %296 : vector<16x32xf32>
    %298 = vector.broadcast %280 : vector<1x32xf32> to vector<16x32xf32>
    %299 = arith.mulf %297, %298 : vector<16x32xf32>
    %300 = vector.broadcast %281 : vector<1x32xf32> to vector<16x32xf32>
    %301 = arith.addf %299, %300 : vector<16x32xf32>
    %c584 = arith.constant 584 : index
    %c0_121 = arith.constant 0 : index
    %302 = vector.load %arg5[%c584, %c0_121] : memref<2448x128xf32, #tpu.memory_space<vmem>>, vector<32x8xf32>
    %cst_122 = arith.constant dense<0.000000e+00> : vector<16x8xf32>
    %303 = tpu.matmul %301, %302, %cst_122 {dimension_numbers = #tpu.dot_dimension_numbers<[1], [0], [0], [1], [0, 0, 1, 1], [], []>} : vector<16x32xf32>, vector<32x8xf32>, vector<16x8xf32> -> vector<16x8xf32>
    %c688 = arith.constant 688 : index
    %c0_123 = arith.constant 0 : index
    %304 = vector.load %arg5[%c688, %c0_123] : memref<2448x128xf32, #tpu.memory_space<vmem>>, vector<1x8xf32>
    %305 = vector.broadcast %304 : vector<1x8xf32> to vector<16x8xf32>
    %306 = arith.addf %303, %305 : vector<16x8xf32>
    %c616 = arith.constant 616 : index
    %c0_124 = arith.constant 0 : index
    %307 = vector.load %arg5[%c616, %c0_124] : memref<2448x128xf32, #tpu.memory_space<vmem>>, vector<32x8xf32>
    %cst_125 = arith.constant dense<0.000000e+00> : vector<16x8xf32>
    %308 = tpu.matmul %5, %307, %cst_125 {dimension_numbers = #tpu.dot_dimension_numbers<[1], [0], [0], [1], [0, 0, 1, 1], [], []>} : vector<16x32xf32>, vector<32x8xf32>, vector<16x8xf32> -> vector<16x8xf32>
    %c696 = arith.constant 696 : index
    %c0_126 = arith.constant 0 : index
    %309 = vector.load %arg5[%c696, %c0_126] : memref<2448x128xf32, #tpu.memory_space<vmem>>, vector<1x8xf32>
    %310 = vector.broadcast %309 : vector<1x8xf32> to vector<16x8xf32>
    %311 = arith.addf %308, %310 : vector<16x8xf32>
    %c648 = arith.constant 648 : index
    %c0_127 = arith.constant 0 : index
    %312 = vector.load %arg5[%c648, %c0_127] : memref<2448x128xf32, #tpu.memory_space<vmem>>, vector<32x8xf32>
    %cst_128 = arith.constant dense<0.000000e+00> : vector<16x8xf32>
    %313 = tpu.matmul %5, %312, %cst_128 {dimension_numbers = #tpu.dot_dimension_numbers<[1], [0], [0], [1], [0, 0, 1, 1], [], []>} : vector<16x32xf32>, vector<32x8xf32>, vector<16x8xf32> -> vector<16x8xf32>
    %c704 = arith.constant 704 : index
    %c0_129 = arith.constant 0 : index
    %314 = vector.load %arg5[%c704, %c0_129] : memref<2448x128xf32, #tpu.memory_space<vmem>>, vector<1x8xf32>
    %315 = vector.broadcast %314 : vector<1x8xf32> to vector<16x8xf32>
    %316 = arith.addf %313, %315 : vector<16x8xf32>
    %c680 = arith.constant 680 : index
    %c0_130 = arith.constant 0 : index
    %317 = vector.load %arg5[%c680, %c0_130] : memref<2448x128xf32, #tpu.memory_space<vmem>>, vector<8x32xf32>
    %318 = vector.extract_strided_slice %306 {offsets = [0, 0], sizes = [8, 8], strides = [1, 1]} : vector<16x8xf32> to vector<8x8xf32>
    %cst_131 = arith.constant dense<0.000000e+00> : vector<8x16xf32>
    %319 = tpu.matmul %318, %311, %cst_131 {dimension_numbers = #tpu.dot_dimension_numbers<[1], [1], [0], [0], [0, 0, 1, 0], [], []>} : vector<8x8xf32>, vector<16x8xf32>, vector<8x16xf32> -> vector<8x16xf32>
    %cst_132 = arith.constant 0.353553385 : f32
    %320 = vector.broadcast %cst_132 : f32 to vector<8x16xf32>
    %321 = arith.mulf %319, %320 : vector<8x16xf32>
    %cst_133 = arith.constant dense<0xFF800000> : vector<8xf32>
    %322 = vector.multi_reduction <maximumf>, %321, %cst_133 [1] : vector<8x16xf32> to vector<8xf32>
    %323 = vector.shape_cast %322 : vector<8xf32> to vector<8x1xf32>
    %324 = vector.broadcast %323 : vector<8x1xf32> to vector<8x16xf32>
    %325 = arith.subf %321, %324 : vector<8x16xf32>
    %326 = math.exp %325 : vector<8x16xf32>
    %cst_134 = arith.constant dense<0.000000e+00> : vector<8xf32>
    %327 = vector.multi_reduction <add>, %326, %cst_134 [1] : vector<8x16xf32> to vector<8xf32>
    %328 = vector.shape_cast %327 : vector<8xf32> to vector<8x1xf32>
    %329 = tpu.reciprocal %328 {approx = true} : vector<8x1xf32> -> vector<8x1xf32>
    %330 = vector.broadcast %329 : vector<8x1xf32> to vector<8x16xf32>
    %331 = arith.mulf %326, %330 : vector<8x16xf32>
    %cst_135 = arith.constant dense<0.000000e+00> : vector<8x8xf32>
    %332 = tpu.matmul %331, %316, %cst_135 {dimension_numbers = #tpu.dot_dimension_numbers<[1], [0], [0], [1], [0, 0, 1, 1], [], []>} : vector<8x16xf32>, vector<16x8xf32>, vector<8x8xf32> -> vector<8x8xf32>
    %cst_136 = arith.constant dense<0.000000e+00> : vector<8x32xf32>
    %333 = tpu.matmul %332, %317, %cst_136 {dimension_numbers = #tpu.dot_dimension_numbers<[1], [0], [0], [1], [0, 0, 1, 1], [], []>} : vector<8x8xf32>, vector<8x32xf32>, vector<8x32xf32> -> vector<8x32xf32>
    %334 = vector.extract_strided_slice %306 {offsets = [8, 0], sizes = [8, 8], strides = [1, 1]} : vector<16x8xf32> to vector<8x8xf32>
    %cst_137 = arith.constant dense<0.000000e+00> : vector<8x16xf32>
    %335 = tpu.matmul %334, %311, %cst_137 {dimension_numbers = #tpu.dot_dimension_numbers<[1], [1], [0], [0], [0, 0, 1, 0], [], []>} : vector<8x8xf32>, vector<16x8xf32>, vector<8x16xf32> -> vector<8x16xf32>
    %cst_138 = arith.constant 0.353553385 : f32
    %336 = vector.broadcast %cst_138 : f32 to vector<8x16xf32>
    %337 = arith.mulf %335, %336 : vector<8x16xf32>
    %cst_139 = arith.constant dense<0xFF800000> : vector<8xf32>
    %338 = vector.multi_reduction <maximumf>, %337, %cst_139 [1] : vector<8x16xf32> to vector<8xf32>
    %339 = vector.shape_cast %338 : vector<8xf32> to vector<8x1xf32>
    %340 = vector.broadcast %339 : vector<8x1xf32> to vector<8x16xf32>
    %341 = arith.subf %337, %340 : vector<8x16xf32>
    %342 = math.exp %341 : vector<8x16xf32>
    %cst_140 = arith.constant dense<0.000000e+00> : vector<8xf32>
    %343 = vector.multi_reduction <add>, %342, %cst_140 [1] : vector<8x16xf32> to vector<8xf32>
    %344 = vector.shape_cast %343 : vector<8xf32> to vector<8x1xf32>
    %345 = tpu.reciprocal %344 {approx = true} : vector<8x1xf32> -> vector<8x1xf32>
    %346 = vector.broadcast %345 : vector<8x1xf32> to vector<8x16xf32>
    %347 = arith.mulf %342, %346 : vector<8x16xf32>
    %cst_141 = arith.constant dense<0.000000e+00> : vector<8x8xf32>
    %348 = tpu.matmul %347, %316, %cst_141 {dimension_numbers = #tpu.dot_dimension_numbers<[1], [0], [0], [1], [0, 0, 1, 1], [], []>} : vector<8x16xf32>, vector<16x8xf32>, vector<8x8xf32> -> vector<8x8xf32>
    %cst_142 = arith.constant dense<0.000000e+00> : vector<8x32xf32>
    %349 = tpu.matmul %348, %317, %cst_142 {dimension_numbers = #tpu.dot_dimension_numbers<[1], [0], [0], [1], [0, 0, 1, 1], [], []>} : vector<8x8xf32>, vector<8x32xf32>, vector<8x32xf32> -> vector<8x32xf32>
    %c712 = arith.constant 712 : index
    %c0_143 = arith.constant 0 : index
    %350 = vector.load %arg5[%c712, %c0_143] : memref<2448x128xf32, #tpu.memory_space<vmem>>, vector<32x8xf32>
    %cst_144 = arith.constant dense<0.000000e+00> : vector<16x8xf32>
    %351 = tpu.matmul %301, %350, %cst_144 {dimension_numbers = #tpu.dot_dimension_numbers<[1], [0], [0], [1], [0, 0, 1, 1], [], []>} : vector<16x32xf32>, vector<32x8xf32>, vector<16x8xf32> -> vector<16x8xf32>
    %c816 = arith.constant 816 : index
    %c0_145 = arith.constant 0 : index
    %352 = vector.load %arg5[%c816, %c0_145] : memref<2448x128xf32, #tpu.memory_space<vmem>>, vector<1x8xf32>
    %353 = vector.broadcast %352 : vector<1x8xf32> to vector<16x8xf32>
    %354 = arith.addf %351, %353 : vector<16x8xf32>
    %c744 = arith.constant 744 : index
    %c0_146 = arith.constant 0 : index
    %355 = vector.load %arg5[%c744, %c0_146] : memref<2448x128xf32, #tpu.memory_space<vmem>>, vector<32x8xf32>
    %cst_147 = arith.constant dense<0.000000e+00> : vector<16x8xf32>
    %356 = tpu.matmul %5, %355, %cst_147 {dimension_numbers = #tpu.dot_dimension_numbers<[1], [0], [0], [1], [0, 0, 1, 1], [], []>} : vector<16x32xf32>, vector<32x8xf32>, vector<16x8xf32> -> vector<16x8xf32>
    %c824 = arith.constant 824 : index
    %c0_148 = arith.constant 0 : index
    %357 = vector.load %arg5[%c824, %c0_148] : memref<2448x128xf32, #tpu.memory_space<vmem>>, vector<1x8xf32>
    %358 = vector.broadcast %357 : vector<1x8xf32> to vector<16x8xf32>
    %359 = arith.addf %356, %358 : vector<16x8xf32>
    %c776 = arith.constant 776 : index
    %c0_149 = arith.constant 0 : index
    %360 = vector.load %arg5[%c776, %c0_149] : memref<2448x128xf32, #tpu.memory_space<vmem>>, vector<32x8xf32>
    %cst_150 = arith.constant dense<0.000000e+00> : vector<16x8xf32>
    %361 = tpu.matmul %5, %360, %cst_150 {dimension_numbers = #tpu.dot_dimension_numbers<[1], [0], [0], [1], [0, 0, 1, 1], [], []>} : vector<16x32xf32>, vector<32x8xf32>, vector<16x8xf32> -> vector<16x8xf32>
    %c832 = arith.constant 832 : index
    %c0_151 = arith.constant 0 : index
    %362 = vector.load %arg5[%c832, %c0_151] : memref<2448x128xf32, #tpu.memory_space<vmem>>, vector<1x8xf32>
    %363 = vector.broadcast %362 : vector<1x8xf32> to vector<16x8xf32>
    %364 = arith.addf %361, %363 : vector<16x8xf32>
    %c808 = arith.constant 808 : index
    %c0_152 = arith.constant 0 : index
    %365 = vector.load %arg5[%c808, %c0_152] : memref<2448x128xf32, #tpu.memory_space<vmem>>, vector<8x32xf32>
    %366 = vector.extract_strided_slice %354 {offsets = [0, 0], sizes = [8, 8], strides = [1, 1]} : vector<16x8xf32> to vector<8x8xf32>
    %cst_153 = arith.constant dense<0.000000e+00> : vector<8x16xf32>
    %367 = tpu.matmul %366, %359, %cst_153 {dimension_numbers = #tpu.dot_dimension_numbers<[1], [1], [0], [0], [0, 0, 1, 0], [], []>} : vector<8x8xf32>, vector<16x8xf32>, vector<8x16xf32> -> vector<8x16xf32>
    %cst_154 = arith.constant 0.353553385 : f32
    %368 = vector.broadcast %cst_154 : f32 to vector<8x16xf32>
    %369 = arith.mulf %367, %368 : vector<8x16xf32>
    %cst_155 = arith.constant dense<0xFF800000> : vector<8xf32>
    %370 = vector.multi_reduction <maximumf>, %369, %cst_155 [1] : vector<8x16xf32> to vector<8xf32>
    %371 = vector.shape_cast %370 : vector<8xf32> to vector<8x1xf32>
    %372 = vector.broadcast %371 : vector<8x1xf32> to vector<8x16xf32>
    %373 = arith.subf %369, %372 : vector<8x16xf32>
    %374 = math.exp %373 : vector<8x16xf32>
    %cst_156 = arith.constant dense<0.000000e+00> : vector<8xf32>
    %375 = vector.multi_reduction <add>, %374, %cst_156 [1] : vector<8x16xf32> to vector<8xf32>
    %376 = vector.shape_cast %375 : vector<8xf32> to vector<8x1xf32>
    %377 = tpu.reciprocal %376 {approx = true} : vector<8x1xf32> -> vector<8x1xf32>
    %378 = vector.broadcast %377 : vector<8x1xf32> to vector<8x16xf32>
    %379 = arith.mulf %374, %378 : vector<8x16xf32>
    %cst_157 = arith.constant dense<0.000000e+00> : vector<8x8xf32>
    %380 = tpu.matmul %379, %364, %cst_157 {dimension_numbers = #tpu.dot_dimension_numbers<[1], [0], [0], [1], [0, 0, 1, 1], [], []>} : vector<8x16xf32>, vector<16x8xf32>, vector<8x8xf32> -> vector<8x8xf32>
    %cst_158 = arith.constant dense<0.000000e+00> : vector<8x32xf32>
    %381 = tpu.matmul %380, %365, %cst_158 {dimension_numbers = #tpu.dot_dimension_numbers<[1], [0], [0], [1], [0, 0, 1, 1], [], []>} : vector<8x8xf32>, vector<8x32xf32>, vector<8x32xf32> -> vector<8x32xf32>
    %382 = arith.addf %333, %381 : vector<8x32xf32>
    %383 = vector.extract_strided_slice %354 {offsets = [8, 0], sizes = [8, 8], strides = [1, 1]} : vector<16x8xf32> to vector<8x8xf32>
    %cst_159 = arith.constant dense<0.000000e+00> : vector<8x16xf32>
    %384 = tpu.matmul %383, %359, %cst_159 {dimension_numbers = #tpu.dot_dimension_numbers<[1], [1], [0], [0], [0, 0, 1, 0], [], []>} : vector<8x8xf32>, vector<16x8xf32>, vector<8x16xf32> -> vector<8x16xf32>
    %cst_160 = arith.constant 0.353553385 : f32
    %385 = vector.broadcast %cst_160 : f32 to vector<8x16xf32>
    %386 = arith.mulf %384, %385 : vector<8x16xf32>
    %cst_161 = arith.constant dense<0xFF800000> : vector<8xf32>
    %387 = vector.multi_reduction <maximumf>, %386, %cst_161 [1] : vector<8x16xf32> to vector<8xf32>
    %388 = vector.shape_cast %387 : vector<8xf32> to vector<8x1xf32>
    %389 = vector.broadcast %388 : vector<8x1xf32> to vector<8x16xf32>
    %390 = arith.subf %386, %389 : vector<8x16xf32>
    %391 = math.exp %390 : vector<8x16xf32>
    %cst_162 = arith.constant dense<0.000000e+00> : vector<8xf32>
    %392 = vector.multi_reduction <add>, %391, %cst_162 [1] : vector<8x16xf32> to vector<8xf32>
    %393 = vector.shape_cast %392 : vector<8xf32> to vector<8x1xf32>
    %394 = tpu.reciprocal %393 {approx = true} : vector<8x1xf32> -> vector<8x1xf32>
    %395 = vector.broadcast %394 : vector<8x1xf32> to vector<8x16xf32>
    %396 = arith.mulf %391, %395 : vector<8x16xf32>
    %cst_163 = arith.constant dense<0.000000e+00> : vector<8x8xf32>
    %397 = tpu.matmul %396, %364, %cst_163 {dimension_numbers = #tpu.dot_dimension_numbers<[1], [0], [0], [1], [0, 0, 1, 1], [], []>} : vector<8x16xf32>, vector<16x8xf32>, vector<8x8xf32> -> vector<8x8xf32>
    %cst_164 = arith.constant dense<0.000000e+00> : vector<8x32xf32>
    %398 = tpu.matmul %397, %365, %cst_164 {dimension_numbers = #tpu.dot_dimension_numbers<[1], [0], [0], [1], [0, 0, 1, 1], [], []>} : vector<8x8xf32>, vector<8x32xf32>, vector<8x32xf32> -> vector<8x32xf32>
    %399 = arith.addf %349, %398 : vector<8x32xf32>
    %c840 = arith.constant 840 : index
    %c0_165 = arith.constant 0 : index
    %400 = vector.load %arg5[%c840, %c0_165] : memref<2448x128xf32, #tpu.memory_space<vmem>>, vector<32x8xf32>
    %cst_166 = arith.constant dense<0.000000e+00> : vector<16x8xf32>
    %401 = tpu.matmul %301, %400, %cst_166 {dimension_numbers = #tpu.dot_dimension_numbers<[1], [0], [0], [1], [0, 0, 1, 1], [], []>} : vector<16x32xf32>, vector<32x8xf32>, vector<16x8xf32> -> vector<16x8xf32>
    %c944 = arith.constant 944 : index
    %c0_167 = arith.constant 0 : index
    %402 = vector.load %arg5[%c944, %c0_167] : memref<2448x128xf32, #tpu.memory_space<vmem>>, vector<1x8xf32>
    %403 = vector.broadcast %402 : vector<1x8xf32> to vector<16x8xf32>
    %404 = arith.addf %401, %403 : vector<16x8xf32>
    %c872 = arith.constant 872 : index
    %c0_168 = arith.constant 0 : index
    %405 = vector.load %arg5[%c872, %c0_168] : memref<2448x128xf32, #tpu.memory_space<vmem>>, vector<32x8xf32>
    %cst_169 = arith.constant dense<0.000000e+00> : vector<16x8xf32>
    %406 = tpu.matmul %5, %405, %cst_169 {dimension_numbers = #tpu.dot_dimension_numbers<[1], [0], [0], [1], [0, 0, 1, 1], [], []>} : vector<16x32xf32>, vector<32x8xf32>, vector<16x8xf32> -> vector<16x8xf32>
    %c952 = arith.constant 952 : index
    %c0_170 = arith.constant 0 : index
    %407 = vector.load %arg5[%c952, %c0_170] : memref<2448x128xf32, #tpu.memory_space<vmem>>, vector<1x8xf32>
    %408 = vector.broadcast %407 : vector<1x8xf32> to vector<16x8xf32>
    %409 = arith.addf %406, %408 : vector<16x8xf32>
    %c904 = arith.constant 904 : index
    %c0_171 = arith.constant 0 : index
    %410 = vector.load %arg5[%c904, %c0_171] : memref<2448x128xf32, #tpu.memory_space<vmem>>, vector<32x8xf32>
    %cst_172 = arith.constant dense<0.000000e+00> : vector<16x8xf32>
    %411 = tpu.matmul %5, %410, %cst_172 {dimension_numbers = #tpu.dot_dimension_numbers<[1], [0], [0], [1], [0, 0, 1, 1], [], []>} : vector<16x32xf32>, vector<32x8xf32>, vector<16x8xf32> -> vector<16x8xf32>
    %c960 = arith.constant 960 : index
    %c0_173 = arith.constant 0 : index
    %412 = vector.load %arg5[%c960, %c0_173] : memref<2448x128xf32, #tpu.memory_space<vmem>>, vector<1x8xf32>
    %413 = vector.broadcast %412 : vector<1x8xf32> to vector<16x8xf32>
    %414 = arith.addf %411, %413 : vector<16x8xf32>
    %c936 = arith.constant 936 : index
    %c0_174 = arith.constant 0 : index
    %415 = vector.load %arg5[%c936, %c0_174] : memref<2448x128xf32, #tpu.memory_space<vmem>>, vector<8x32xf32>
    %416 = vector.extract_strided_slice %404 {offsets = [0, 0], sizes = [8, 8], strides = [1, 1]} : vector<16x8xf32> to vector<8x8xf32>
    %cst_175 = arith.constant dense<0.000000e+00> : vector<8x16xf32>
    %417 = tpu.matmul %416, %409, %cst_175 {dimension_numbers = #tpu.dot_dimension_numbers<[1], [1], [0], [0], [0, 0, 1, 0], [], []>} : vector<8x8xf32>, vector<16x8xf32>, vector<8x16xf32> -> vector<8x16xf32>
    %cst_176 = arith.constant 0.353553385 : f32
    %418 = vector.broadcast %cst_176 : f32 to vector<8x16xf32>
    %419 = arith.mulf %417, %418 : vector<8x16xf32>
    %cst_177 = arith.constant dense<0xFF800000> : vector<8xf32>
    %420 = vector.multi_reduction <maximumf>, %419, %cst_177 [1] : vector<8x16xf32> to vector<8xf32>
    %421 = vector.shape_cast %420 : vector<8xf32> to vector<8x1xf32>
    %422 = vector.broadcast %421 : vector<8x1xf32> to vector<8x16xf32>
    %423 = arith.subf %419, %422 : vector<8x16xf32>
    %424 = math.exp %423 : vector<8x16xf32>
    %cst_178 = arith.constant dense<0.000000e+00> : vector<8xf32>
    %425 = vector.multi_reduction <add>, %424, %cst_178 [1] : vector<8x16xf32> to vector<8xf32>
    %426 = vector.shape_cast %425 : vector<8xf32> to vector<8x1xf32>
    %427 = tpu.reciprocal %426 {approx = true} : vector<8x1xf32> -> vector<8x1xf32>
    %428 = vector.broadcast %427 : vector<8x1xf32> to vector<8x16xf32>
    %429 = arith.mulf %424, %428 : vector<8x16xf32>
    %cst_179 = arith.constant dense<0.000000e+00> : vector<8x8xf32>
    %430 = tpu.matmul %429, %414, %cst_179 {dimension_numbers = #tpu.dot_dimension_numbers<[1], [0], [0], [1], [0, 0, 1, 1], [], []>} : vector<8x16xf32>, vector<16x8xf32>, vector<8x8xf32> -> vector<8x8xf32>
    %cst_180 = arith.constant dense<0.000000e+00> : vector<8x32xf32>
    %431 = tpu.matmul %430, %415, %cst_180 {dimension_numbers = #tpu.dot_dimension_numbers<[1], [0], [0], [1], [0, 0, 1, 1], [], []>} : vector<8x8xf32>, vector<8x32xf32>, vector<8x32xf32> -> vector<8x32xf32>
    %432 = arith.addf %382, %431 : vector<8x32xf32>
    %433 = vector.extract_strided_slice %404 {offsets = [8, 0], sizes = [8, 8], strides = [1, 1]} : vector<16x8xf32> to vector<8x8xf32>
    %cst_181 = arith.constant dense<0.000000e+00> : vector<8x16xf32>
    %434 = tpu.matmul %433, %409, %cst_181 {dimension_numbers = #tpu.dot_dimension_numbers<[1], [1], [0], [0], [0, 0, 1, 0], [], []>} : vector<8x8xf32>, vector<16x8xf32>, vector<8x16xf32> -> vector<8x16xf32>
    %cst_182 = arith.constant 0.353553385 : f32
    %435 = vector.broadcast %cst_182 : f32 to vector<8x16xf32>
    %436 = arith.mulf %434, %435 : vector<8x16xf32>
    %cst_183 = arith.constant dense<0xFF800000> : vector<8xf32>
    %437 = vector.multi_reduction <maximumf>, %436, %cst_183 [1] : vector<8x16xf32> to vector<8xf32>
    %438 = vector.shape_cast %437 : vector<8xf32> to vector<8x1xf32>
    %439 = vector.broadcast %438 : vector<8x1xf32> to vector<8x16xf32>
    %440 = arith.subf %436, %439 : vector<8x16xf32>
    %441 = math.exp %440 : vector<8x16xf32>
    %cst_184 = arith.constant dense<0.000000e+00> : vector<8xf32>
    %442 = vector.multi_reduction <add>, %441, %cst_184 [1] : vector<8x16xf32> to vector<8xf32>
    %443 = vector.shape_cast %442 : vector<8xf32> to vector<8x1xf32>
    %444 = tpu.reciprocal %443 {approx = true} : vector<8x1xf32> -> vector<8x1xf32>
    %445 = vector.broadcast %444 : vector<8x1xf32> to vector<8x16xf32>
    %446 = arith.mulf %441, %445 : vector<8x16xf32>
    %cst_185 = arith.constant dense<0.000000e+00> : vector<8x8xf32>
    %447 = tpu.matmul %446, %414, %cst_185 {dimension_numbers = #tpu.dot_dimension_numbers<[1], [0], [0], [1], [0, 0, 1, 1], [], []>} : vector<8x16xf32>, vector<16x8xf32>, vector<8x8xf32> -> vector<8x8xf32>
    %cst_186 = arith.constant dense<0.000000e+00> : vector<8x32xf32>
    %448 = tpu.matmul %447, %415, %cst_186 {dimension_numbers = #tpu.dot_dimension_numbers<[1], [0], [0], [1], [0, 0, 1, 1], [], []>} : vector<8x8xf32>, vector<8x32xf32>, vector<8x32xf32> -> vector<8x32xf32>
    %449 = arith.addf %399, %448 : vector<8x32xf32>
    %c968 = arith.constant 968 : index
    %c0_187 = arith.constant 0 : index
    %450 = vector.load %arg5[%c968, %c0_187] : memref<2448x128xf32, #tpu.memory_space<vmem>>, vector<32x8xf32>
    %cst_188 = arith.constant dense<0.000000e+00> : vector<16x8xf32>
    %451 = tpu.matmul %301, %450, %cst_188 {dimension_numbers = #tpu.dot_dimension_numbers<[1], [0], [0], [1], [0, 0, 1, 1], [], []>} : vector<16x32xf32>, vector<32x8xf32>, vector<16x8xf32> -> vector<16x8xf32>
    %c1072 = arith.constant 1072 : index
    %c0_189 = arith.constant 0 : index
    %452 = vector.load %arg5[%c1072, %c0_189] : memref<2448x128xf32, #tpu.memory_space<vmem>>, vector<1x8xf32>
    %453 = vector.broadcast %452 : vector<1x8xf32> to vector<16x8xf32>
    %454 = arith.addf %451, %453 : vector<16x8xf32>
    %c1000 = arith.constant 1000 : index
    %c0_190 = arith.constant 0 : index
    %455 = vector.load %arg5[%c1000, %c0_190] : memref<2448x128xf32, #tpu.memory_space<vmem>>, vector<32x8xf32>
    %cst_191 = arith.constant dense<0.000000e+00> : vector<16x8xf32>
    %456 = tpu.matmul %5, %455, %cst_191 {dimension_numbers = #tpu.dot_dimension_numbers<[1], [0], [0], [1], [0, 0, 1, 1], [], []>} : vector<16x32xf32>, vector<32x8xf32>, vector<16x8xf32> -> vector<16x8xf32>
    %c1080 = arith.constant 1080 : index
    %c0_192 = arith.constant 0 : index
    %457 = vector.load %arg5[%c1080, %c0_192] : memref<2448x128xf32, #tpu.memory_space<vmem>>, vector<1x8xf32>
    %458 = vector.broadcast %457 : vector<1x8xf32> to vector<16x8xf32>
    %459 = arith.addf %456, %458 : vector<16x8xf32>
    %c1032 = arith.constant 1032 : index
    %c0_193 = arith.constant 0 : index
    %460 = vector.load %arg5[%c1032, %c0_193] : memref<2448x128xf32, #tpu.memory_space<vmem>>, vector<32x8xf32>
    %cst_194 = arith.constant dense<0.000000e+00> : vector<16x8xf32>
    %461 = tpu.matmul %5, %460, %cst_194 {dimension_numbers = #tpu.dot_dimension_numbers<[1], [0], [0], [1], [0, 0, 1, 1], [], []>} : vector<16x32xf32>, vector<32x8xf32>, vector<16x8xf32> -> vector<16x8xf32>
    %c1088 = arith.constant 1088 : index
    %c0_195 = arith.constant 0 : index
    %462 = vector.load %arg5[%c1088, %c0_195] : memref<2448x128xf32, #tpu.memory_space<vmem>>, vector<1x8xf32>
    %463 = vector.broadcast %462 : vector<1x8xf32> to vector<16x8xf32>
    %464 = arith.addf %461, %463 : vector<16x8xf32>
    %c1064 = arith.constant 1064 : index
    %c0_196 = arith.constant 0 : index
    %465 = vector.load %arg5[%c1064, %c0_196] : memref<2448x128xf32, #tpu.memory_space<vmem>>, vector<8x32xf32>
    %466 = vector.extract_strided_slice %454 {offsets = [0, 0], sizes = [8, 8], strides = [1, 1]} : vector<16x8xf32> to vector<8x8xf32>
    %cst_197 = arith.constant dense<0.000000e+00> : vector<8x16xf32>
    %467 = tpu.matmul %466, %459, %cst_197 {dimension_numbers = #tpu.dot_dimension_numbers<[1], [1], [0], [0], [0, 0, 1, 0], [], []>} : vector<8x8xf32>, vector<16x8xf32>, vector<8x16xf32> -> vector<8x16xf32>
    %cst_198 = arith.constant 0.353553385 : f32
    %468 = vector.broadcast %cst_198 : f32 to vector<8x16xf32>
    %469 = arith.mulf %467, %468 : vector<8x16xf32>
    %cst_199 = arith.constant dense<0xFF800000> : vector<8xf32>
    %470 = vector.multi_reduction <maximumf>, %469, %cst_199 [1] : vector<8x16xf32> to vector<8xf32>
    %471 = vector.shape_cast %470 : vector<8xf32> to vector<8x1xf32>
    %472 = vector.broadcast %471 : vector<8x1xf32> to vector<8x16xf32>
    %473 = arith.subf %469, %472 : vector<8x16xf32>
    %474 = math.exp %473 : vector<8x16xf32>
    %cst_200 = arith.constant dense<0.000000e+00> : vector<8xf32>
    %475 = vector.multi_reduction <add>, %474, %cst_200 [1] : vector<8x16xf32> to vector<8xf32>
    %476 = vector.shape_cast %475 : vector<8xf32> to vector<8x1xf32>
    %477 = tpu.reciprocal %476 {approx = true} : vector<8x1xf32> -> vector<8x1xf32>
    %478 = vector.broadcast %477 : vector<8x1xf32> to vector<8x16xf32>
    %479 = arith.mulf %474, %478 : vector<8x16xf32>
    %cst_201 = arith.constant dense<0.000000e+00> : vector<8x8xf32>
    %480 = tpu.matmul %479, %464, %cst_201 {dimension_numbers = #tpu.dot_dimension_numbers<[1], [0], [0], [1], [0, 0, 1, 1], [], []>} : vector<8x16xf32>, vector<16x8xf32>, vector<8x8xf32> -> vector<8x8xf32>
    %cst_202 = arith.constant dense<0.000000e+00> : vector<8x32xf32>
    %481 = tpu.matmul %480, %465, %cst_202 {dimension_numbers = #tpu.dot_dimension_numbers<[1], [0], [0], [1], [0, 0, 1, 1], [], []>} : vector<8x8xf32>, vector<8x32xf32>, vector<8x32xf32> -> vector<8x32xf32>
    %482 = arith.addf %432, %481 : vector<8x32xf32>
    %483 = vector.extract_strided_slice %454 {offsets = [8, 0], sizes = [8, 8], strides = [1, 1]} : vector<16x8xf32> to vector<8x8xf32>
    %cst_203 = arith.constant dense<0.000000e+00> : vector<8x16xf32>
    %484 = tpu.matmul %483, %459, %cst_203 {dimension_numbers = #tpu.dot_dimension_numbers<[1], [1], [0], [0], [0, 0, 1, 0], [], []>} : vector<8x8xf32>, vector<16x8xf32>, vector<8x16xf32> -> vector<8x16xf32>
    %cst_204 = arith.constant 0.353553385 : f32
    %485 = vector.broadcast %cst_204 : f32 to vector<8x16xf32>
    %486 = arith.mulf %484, %485 : vector<8x16xf32>
    %cst_205 = arith.constant dense<0xFF800000> : vector<8xf32>
    %487 = vector.multi_reduction <maximumf>, %486, %cst_205 [1] : vector<8x16xf32> to vector<8xf32>
    %488 = vector.shape_cast %487 : vector<8xf32> to vector<8x1xf32>
    %489 = vector.broadcast %488 : vector<8x1xf32> to vector<8x16xf32>
    %490 = arith.subf %486, %489 : vector<8x16xf32>
    %491 = math.exp %490 : vector<8x16xf32>
    %cst_206 = arith.constant dense<0.000000e+00> : vector<8xf32>
    %492 = vector.multi_reduction <add>, %491, %cst_206 [1] : vector<8x16xf32> to vector<8xf32>
    %493 = vector.shape_cast %492 : vector<8xf32> to vector<8x1xf32>
    %494 = tpu.reciprocal %493 {approx = true} : vector<8x1xf32> -> vector<8x1xf32>
    %495 = vector.broadcast %494 : vector<8x1xf32> to vector<8x16xf32>
    %496 = arith.mulf %491, %495 : vector<8x16xf32>
    %cst_207 = arith.constant dense<0.000000e+00> : vector<8x8xf32>
    %497 = tpu.matmul %496, %464, %cst_207 {dimension_numbers = #tpu.dot_dimension_numbers<[1], [0], [0], [1], [0, 0, 1, 1], [], []>} : vector<8x16xf32>, vector<16x8xf32>, vector<8x8xf32> -> vector<8x8xf32>
    %cst_208 = arith.constant dense<0.000000e+00> : vector<8x32xf32>
    %498 = tpu.matmul %497, %465, %cst_208 {dimension_numbers = #tpu.dot_dimension_numbers<[1], [0], [0], [1], [0, 0, 1, 1], [], []>} : vector<8x8xf32>, vector<8x32xf32>, vector<8x32xf32> -> vector<8x32xf32>
    %499 = arith.addf %449, %498 : vector<8x32xf32>
    %500 = tpu.concatenate %482, %499 in 0 : vector<8x32xf32>, vector<8x32xf32> -> vector<16x32xf32>
    %c1096 = arith.constant 1096 : index
    %c0_209 = arith.constant 0 : index
    %501 = vector.load %arg5[%c1096, %c0_209] : memref<2448x128xf32, #tpu.memory_space<vmem>>, vector<1x32xf32>
    %502 = vector.broadcast %501 : vector<1x32xf32> to vector<16x32xf32>
    %503 = arith.addf %500, %502 : vector<16x32xf32>
    %504 = arith.addf %279, %503 : vector<16x32xf32>
    %c48 = arith.constant 48 : index
    %c0_210 = arith.constant 0 : index
    %505 = vector.load %arg5[%c48, %c0_210] : memref<2448x128xf32, #tpu.memory_space<vmem>>, vector<1x32xf32>
    %c56 = arith.constant 56 : index
    %c0_211 = arith.constant 0 : index
    %506 = vector.load %arg5[%c56, %c0_211] : memref<2448x128xf32, #tpu.memory_space<vmem>>, vector<1x32xf32>
    %cst_212 = arith.constant dense<0.000000e+00> : vector<16xf32>
    %507 = vector.multi_reduction <add>, %504, %cst_212 [1] : vector<16x32xf32> to vector<16xf32>
    %508 = vector.shape_cast %507 : vector<16xf32> to vector<16x1xf32>
    %cst_213 = arith.constant 3.200000e+01 : f32
    %509 = vector.broadcast %cst_213 : f32 to vector<16x1xf32>
    %510 = arith.divf %508, %509 : vector<16x1xf32>
    %511 = vector.broadcast %510 : vector<16x1xf32> to vector<16x32xf32>
    %512 = arith.subf %504, %511 : vector<16x32xf32>
    %513 = arith.mulf %512, %512 : vector<16x32xf32>
    %cst_214 = arith.constant dense<0.000000e+00> : vector<16xf32>
    %514 = vector.multi_reduction <add>, %513, %cst_214 [1] : vector<16x32xf32> to vector<16xf32>
    %515 = vector.shape_cast %514 : vector<16xf32> to vector<16x1xf32>
    %cst_215 = arith.constant 3.200000e+01 : f32
    %516 = vector.broadcast %cst_215 : f32 to vector<16x1xf32>
    %517 = arith.divf %515, %516 : vector<16x1xf32>
    %cst_216 = arith.constant 9.99999974E-6 : f32
    %518 = vector.broadcast %cst_216 : f32 to vector<16x1xf32>
    %519 = arith.addf %517, %518 : vector<16x1xf32>
    %520 = math.rsqrt %519 : vector<16x1xf32>
    %521 = vector.broadcast %520 : vector<16x1xf32> to vector<16x32xf32>
    %522 = arith.mulf %512, %521 : vector<16x32xf32>
    %523 = vector.broadcast %505 : vector<1x32xf32> to vector<16x32xf32>
    %524 = arith.mulf %522, %523 : vector<16x32xf32>
    %525 = vector.broadcast %506 : vector<1x32xf32> to vector<16x32xf32>
    %526 = arith.addf %524, %525 : vector<16x32xf32>
    %c1104 = arith.constant 1104 : index
    %c0_217 = arith.constant 0 : index
    %527 = vector.load %arg5[%c1104, %c0_217] : memref<2448x128xf32, #tpu.memory_space<vmem>>, vector<32x64xf32>
    %cst_218 = arith.constant dense<0.000000e+00> : vector<16x64xf32>
    %528 = tpu.matmul %526, %527, %cst_218 {dimension_numbers = #tpu.dot_dimension_numbers<[1], [0], [0], [1], [0, 0, 1, 1], [], []>} : vector<16x32xf32>, vector<32x64xf32>, vector<16x64xf32> -> vector<16x64xf32>
    %c1136 = arith.constant 1136 : index
    %c0_219 = arith.constant 0 : index
    %529 = vector.load %arg5[%c1136, %c0_219] : memref<2448x128xf32, #tpu.memory_space<vmem>>, vector<1x64xf32>
    %530 = vector.broadcast %529 : vector<1x64xf32> to vector<16x64xf32>
    %531 = arith.addf %528, %530 : vector<16x64xf32>
    %cst_220 = arith.constant 5.000000e-01 : f32
    %532 = vector.broadcast %cst_220 : f32 to vector<16x64xf32>
    %533 = arith.mulf %532, %531 : vector<16x64xf32>
    %cst_221 = arith.constant 0.707106769 : f32
    %534 = vector.broadcast %cst_221 : f32 to vector<16x64xf32>
    %535 = arith.mulf %531, %534 : vector<16x64xf32>
    %536 = math.erf %535 : vector<16x64xf32>
    %cst_222 = arith.constant 1.000000e+00 : f32
    %537 = vector.broadcast %cst_222 : f32 to vector<16x64xf32>
    %538 = arith.addf %537, %536 : vector<16x64xf32>
    %539 = arith.mulf %533, %538 : vector<16x64xf32>
    %c1144 = arith.constant 1144 : index
    %c0_223 = arith.constant 0 : index
    %540 = vector.load %arg5[%c1144, %c0_223] : memref<2448x128xf32, #tpu.memory_space<vmem>>, vector<64x32xf32>
    %cst_224 = arith.constant dense<0.000000e+00> : vector<16x32xf32>
    %541 = tpu.matmul %539, %540, %cst_224 {dimension_numbers = #tpu.dot_dimension_numbers<[1], [0], [0], [1], [0, 0, 1, 1], [], []>} : vector<16x64xf32>, vector<64x32xf32>, vector<16x32xf32> -> vector<16x32xf32>
    %c1208 = arith.constant 1208 : index
    %c0_225 = arith.constant 0 : index
    %542 = vector.load %arg5[%c1208, %c0_225] : memref<2448x128xf32, #tpu.memory_space<vmem>>, vector<1x32xf32>
    %543 = vector.broadcast %542 : vector<1x32xf32> to vector<16x32xf32>
    %544 = arith.addf %541, %543 : vector<16x32xf32>
    %545 = arith.addf %504, %544 : vector<16x32xf32>
    %546 = vector.extract_strided_slice %545 {offsets = [0, 0], sizes = [8, 32], strides = [1, 1]} : vector<16x32xf32> to vector<8x32xf32>
    %547 = vector.extract_strided_slice %545 {offsets = [8, 0], sizes = [8, 32], strides = [1, 1]} : vector<16x32xf32> to vector<8x32xf32>
    %c1216 = arith.constant 1216 : index
    %c0_226 = arith.constant 0 : index
    %548 = vector.load %arg5[%c1216, %c0_226] : memref<2448x128xf32, #tpu.memory_space<vmem>>, vector<1x32xf32>
    %c1224 = arith.constant 1224 : index
    %c0_227 = arith.constant 0 : index
    %549 = vector.load %arg5[%c1224, %c0_227] : memref<2448x128xf32, #tpu.memory_space<vmem>>, vector<1x32xf32>
    %cst_228 = arith.constant dense<0.000000e+00> : vector<8xf32>
    %550 = vector.multi_reduction <add>, %546, %cst_228 [1] : vector<8x32xf32> to vector<8xf32>
    %551 = vector.shape_cast %550 : vector<8xf32> to vector<8x1xf32>
    %cst_229 = arith.constant 3.200000e+01 : f32
    %552 = vector.broadcast %cst_229 : f32 to vector<8x1xf32>
    %553 = arith.divf %551, %552 : vector<8x1xf32>
    %554 = vector.broadcast %553 : vector<8x1xf32> to vector<8x32xf32>
    %555 = arith.subf %546, %554 : vector<8x32xf32>
    %556 = arith.mulf %555, %555 : vector<8x32xf32>
    %cst_230 = arith.constant dense<0.000000e+00> : vector<8xf32>
    %557 = vector.multi_reduction <add>, %556, %cst_230 [1] : vector<8x32xf32> to vector<8xf32>
    %558 = vector.shape_cast %557 : vector<8xf32> to vector<8x1xf32>
    %cst_231 = arith.constant 3.200000e+01 : f32
    %559 = vector.broadcast %cst_231 : f32 to vector<8x1xf32>
    %560 = arith.divf %558, %559 : vector<8x1xf32>
    %cst_232 = arith.constant 9.99999974E-6 : f32
    %561 = vector.broadcast %cst_232 : f32 to vector<8x1xf32>
    %562 = arith.addf %560, %561 : vector<8x1xf32>
    %563 = math.rsqrt %562 : vector<8x1xf32>
    %564 = vector.broadcast %563 : vector<8x1xf32> to vector<8x32xf32>
    %565 = arith.mulf %555, %564 : vector<8x32xf32>
    %566 = vector.broadcast %548 : vector<1x32xf32> to vector<8x32xf32>
    %567 = arith.mulf %565, %566 : vector<8x32xf32>
    %568 = vector.broadcast %549 : vector<1x32xf32> to vector<8x32xf32>
    %569 = arith.addf %567, %568 : vector<8x32xf32>
    %c1232 = arith.constant 1232 : index
    %c0_233 = arith.constant 0 : index
    %570 = vector.load %arg5[%c1232, %c0_233] : memref<2448x128xf32, #tpu.memory_space<vmem>>, vector<1x32xf32>
    %c1240 = arith.constant 1240 : index
    %c0_234 = arith.constant 0 : index
    %571 = vector.load %arg5[%c1240, %c0_234] : memref<2448x128xf32, #tpu.memory_space<vmem>>, vector<1x32xf32>
    %cst_235 = arith.constant dense<0.000000e+00> : vector<8xf32>
    %572 = vector.multi_reduction <add>, %547, %cst_235 [1] : vector<8x32xf32> to vector<8xf32>
    %573 = vector.shape_cast %572 : vector<8xf32> to vector<8x1xf32>
    %cst_236 = arith.constant 3.200000e+01 : f32
    %574 = vector.broadcast %cst_236 : f32 to vector<8x1xf32>
    %575 = arith.divf %573, %574 : vector<8x1xf32>
    %576 = vector.broadcast %575 : vector<8x1xf32> to vector<8x32xf32>
    %577 = arith.subf %547, %576 : vector<8x32xf32>
    %578 = arith.mulf %577, %577 : vector<8x32xf32>
    %cst_237 = arith.constant dense<0.000000e+00> : vector<8xf32>
    %579 = vector.multi_reduction <add>, %578, %cst_237 [1] : vector<8x32xf32> to vector<8xf32>
    %580 = vector.shape_cast %579 : vector<8xf32> to vector<8x1xf32>
    %cst_238 = arith.constant 3.200000e+01 : f32
    %581 = vector.broadcast %cst_238 : f32 to vector<8x1xf32>
    %582 = arith.divf %580, %581 : vector<8x1xf32>
    %cst_239 = arith.constant 9.99999974E-6 : f32
    %583 = vector.broadcast %cst_239 : f32 to vector<8x1xf32>
    %584 = arith.addf %582, %583 : vector<8x1xf32>
    %585 = math.rsqrt %584 : vector<8x1xf32>
    %586 = vector.broadcast %585 : vector<8x1xf32> to vector<8x32xf32>
    %587 = arith.mulf %577, %586 : vector<8x32xf32>
    %588 = vector.broadcast %570 : vector<1x32xf32> to vector<8x32xf32>
    %589 = arith.mulf %587, %588 : vector<8x32xf32>
    %590 = vector.broadcast %571 : vector<1x32xf32> to vector<8x32xf32>
    %591 = arith.addf %589, %590 : vector<8x32xf32>
    %c1280 = arith.constant 1280 : index
    %c0_240 = arith.constant 0 : index
    %592 = vector.load %arg5[%c1280, %c0_240] : memref<2448x128xf32, #tpu.memory_space<vmem>>, vector<32x8xf32>
    %cst_241 = arith.constant dense<0.000000e+00> : vector<8x8xf32>
    %593 = tpu.matmul %569, %592, %cst_241 {dimension_numbers = #tpu.dot_dimension_numbers<[1], [0], [0], [1], [0, 0, 1, 1], [], []>} : vector<8x32xf32>, vector<32x8xf32>, vector<8x8xf32> -> vector<8x8xf32>
    %c1384 = arith.constant 1384 : index
    %c0_242 = arith.constant 0 : index
    %594 = vector.load %arg5[%c1384, %c0_242] : memref<2448x128xf32, #tpu.memory_space<vmem>>, vector<1x8xf32>
    %595 = vector.broadcast %594 : vector<1x8xf32> to vector<8x8xf32>
    %596 = arith.addf %593, %595 : vector<8x8xf32>
    %c1312 = arith.constant 1312 : index
    %c0_243 = arith.constant 0 : index
    %597 = vector.load %arg5[%c1312, %c0_243] : memref<2448x128xf32, #tpu.memory_space<vmem>>, vector<32x8xf32>
    %cst_244 = arith.constant dense<0.000000e+00> : vector<8x8xf32>
    %598 = tpu.matmul %591, %597, %cst_244 {dimension_numbers = #tpu.dot_dimension_numbers<[1], [0], [0], [1], [0, 0, 1, 1], [], []>} : vector<8x32xf32>, vector<32x8xf32>, vector<8x8xf32> -> vector<8x8xf32>
    %c1392 = arith.constant 1392 : index
    %c0_245 = arith.constant 0 : index
    %599 = vector.load %arg5[%c1392, %c0_245] : memref<2448x128xf32, #tpu.memory_space<vmem>>, vector<1x8xf32>
    %600 = vector.broadcast %599 : vector<1x8xf32> to vector<8x8xf32>
    %601 = arith.addf %598, %600 : vector<8x8xf32>
    %c1344 = arith.constant 1344 : index
    %c0_246 = arith.constant 0 : index
    %602 = vector.load %arg5[%c1344, %c0_246] : memref<2448x128xf32, #tpu.memory_space<vmem>>, vector<32x8xf32>
    %cst_247 = arith.constant dense<0.000000e+00> : vector<8x8xf32>
    %603 = tpu.matmul %591, %602, %cst_247 {dimension_numbers = #tpu.dot_dimension_numbers<[1], [0], [0], [1], [0, 0, 1, 1], [], []>} : vector<8x32xf32>, vector<32x8xf32>, vector<8x8xf32> -> vector<8x8xf32>
    %c1400 = arith.constant 1400 : index
    %c0_248 = arith.constant 0 : index
    %604 = vector.load %arg5[%c1400, %c0_248] : memref<2448x128xf32, #tpu.memory_space<vmem>>, vector<1x8xf32>
    %605 = vector.broadcast %604 : vector<1x8xf32> to vector<8x8xf32>
    %606 = arith.addf %603, %605 : vector<8x8xf32>
    %c1376 = arith.constant 1376 : index
    %c0_249 = arith.constant 0 : index
    %607 = vector.load %arg5[%c1376, %c0_249] : memref<2448x128xf32, #tpu.memory_space<vmem>>, vector<8x32xf32>
    %cst_250 = arith.constant dense<0.000000e+00> : vector<8x8xf32>
    %608 = tpu.matmul %596, %601, %cst_250 {dimension_numbers = #tpu.dot_dimension_numbers<[1], [1], [0], [0], [0, 0, 1, 0], [], []>} : vector<8x8xf32>, vector<8x8xf32>, vector<8x8xf32> -> vector<8x8xf32>
    %cst_251 = arith.constant 0.353553385 : f32
    %609 = vector.broadcast %cst_251 : f32 to vector<8x8xf32>
    %610 = arith.mulf %608, %609 : vector<8x8xf32>
    %611 = vector.extract_strided_slice %6 {offsets = [0, 0, 0], sizes = [1, 8, 8], strides = [1, 1, 1]} : vector<1x16x8xf32> to vector<1x8x8xf32>
    %612 = vector.shape_cast %611 : vector<1x8x8xf32> to vector<8x8xf32>
    %613 = arith.addf %610, %612 : vector<8x8xf32>
    %cst_252 = arith.constant dense<0xFF800000> : vector<8xf32>
    %614 = vector.multi_reduction <maximumf>, %613, %cst_252 [1] : vector<8x8xf32> to vector<8xf32>
    %615 = vector.shape_cast %614 : vector<8xf32> to vector<8x1xf32>
    %616 = vector.broadcast %615 : vector<8x1xf32> to vector<8x8xf32>
    %617 = arith.subf %613, %616 : vector<8x8xf32>
    %618 = math.exp %617 : vector<8x8xf32>
    %cst_253 = arith.constant dense<0.000000e+00> : vector<8xf32>
    %619 = vector.multi_reduction <add>, %618, %cst_253 [1] : vector<8x8xf32> to vector<8xf32>
    %620 = vector.shape_cast %619 : vector<8xf32> to vector<8x1xf32>
    %621 = tpu.reciprocal %620 {approx = true} : vector<8x1xf32> -> vector<8x1xf32>
    %622 = vector.broadcast %621 : vector<8x1xf32> to vector<8x8xf32>
    %623 = arith.mulf %618, %622 : vector<8x8xf32>
    %cst_254 = arith.constant dense<0.000000e+00> : vector<8x8xf32>
    %624 = tpu.matmul %623, %606, %cst_254 {dimension_numbers = #tpu.dot_dimension_numbers<[1], [0], [0], [1], [0, 0, 1, 1], [], []>} : vector<8x8xf32>, vector<8x8xf32>, vector<8x8xf32> -> vector<8x8xf32>
    %cst_255 = arith.constant dense<0.000000e+00> : vector<8x32xf32>
    %625 = tpu.matmul %624, %607, %cst_255 {dimension_numbers = #tpu.dot_dimension_numbers<[1], [0], [0], [1], [0, 0, 1, 1], [], []>} : vector<8x8xf32>, vector<8x32xf32>, vector<8x32xf32> -> vector<8x32xf32>
    %c1408 = arith.constant 1408 : index
    %c0_256 = arith.constant 0 : index
    %626 = vector.load %arg5[%c1408, %c0_256] : memref<2448x128xf32, #tpu.memory_space<vmem>>, vector<32x8xf32>
    %cst_257 = arith.constant dense<0.000000e+00> : vector<8x8xf32>
    %627 = tpu.matmul %569, %626, %cst_257 {dimension_numbers = #tpu.dot_dimension_numbers<[1], [0], [0], [1], [0, 0, 1, 1], [], []>} : vector<8x32xf32>, vector<32x8xf32>, vector<8x8xf32> -> vector<8x8xf32>
    %c1512 = arith.constant 1512 : index
    %c0_258 = arith.constant 0 : index
    %628 = vector.load %arg5[%c1512, %c0_258] : memref<2448x128xf32, #tpu.memory_space<vmem>>, vector<1x8xf32>
    %629 = vector.broadcast %628 : vector<1x8xf32> to vector<8x8xf32>
    %630 = arith.addf %627, %629 : vector<8x8xf32>
    %c1440 = arith.constant 1440 : index
    %c0_259 = arith.constant 0 : index
    %631 = vector.load %arg5[%c1440, %c0_259] : memref<2448x128xf32, #tpu.memory_space<vmem>>, vector<32x8xf32>
    %cst_260 = arith.constant dense<0.000000e+00> : vector<8x8xf32>
    %632 = tpu.matmul %591, %631, %cst_260 {dimension_numbers = #tpu.dot_dimension_numbers<[1], [0], [0], [1], [0, 0, 1, 1], [], []>} : vector<8x32xf32>, vector<32x8xf32>, vector<8x8xf32> -> vector<8x8xf32>
    %c1520 = arith.constant 1520 : index
    %c0_261 = arith.constant 0 : index
    %633 = vector.load %arg5[%c1520, %c0_261] : memref<2448x128xf32, #tpu.memory_space<vmem>>, vector<1x8xf32>
    %634 = vector.broadcast %633 : vector<1x8xf32> to vector<8x8xf32>
    %635 = arith.addf %632, %634 : vector<8x8xf32>
    %c1472 = arith.constant 1472 : index
    %c0_262 = arith.constant 0 : index
    %636 = vector.load %arg5[%c1472, %c0_262] : memref<2448x128xf32, #tpu.memory_space<vmem>>, vector<32x8xf32>
    %cst_263 = arith.constant dense<0.000000e+00> : vector<8x8xf32>
    %637 = tpu.matmul %591, %636, %cst_263 {dimension_numbers = #tpu.dot_dimension_numbers<[1], [0], [0], [1], [0, 0, 1, 1], [], []>} : vector<8x32xf32>, vector<32x8xf32>, vector<8x8xf32> -> vector<8x8xf32>
    %c1528 = arith.constant 1528 : index
    %c0_264 = arith.constant 0 : index
    %638 = vector.load %arg5[%c1528, %c0_264] : memref<2448x128xf32, #tpu.memory_space<vmem>>, vector<1x8xf32>
    %639 = vector.broadcast %638 : vector<1x8xf32> to vector<8x8xf32>
    %640 = arith.addf %637, %639 : vector<8x8xf32>
    %c1504 = arith.constant 1504 : index
    %c0_265 = arith.constant 0 : index
    %641 = vector.load %arg5[%c1504, %c0_265] : memref<2448x128xf32, #tpu.memory_space<vmem>>, vector<8x32xf32>
    %cst_266 = arith.constant dense<0.000000e+00> : vector<8x8xf32>
    %642 = tpu.matmul %630, %635, %cst_266 {dimension_numbers = #tpu.dot_dimension_numbers<[1], [1], [0], [0], [0, 0, 1, 0], [], []>} : vector<8x8xf32>, vector<8x8xf32>, vector<8x8xf32> -> vector<8x8xf32>
    %cst_267 = arith.constant 0.353553385 : f32
    %643 = vector.broadcast %cst_267 : f32 to vector<8x8xf32>
    %644 = arith.mulf %642, %643 : vector<8x8xf32>
    %645 = vector.extract_strided_slice %6 {offsets = [0, 0, 0], sizes = [1, 8, 8], strides = [1, 1, 1]} : vector<1x16x8xf32> to vector<1x8x8xf32>
    %646 = vector.shape_cast %645 : vector<1x8x8xf32> to vector<8x8xf32>
    %647 = arith.addf %644, %646 : vector<8x8xf32>
    %cst_268 = arith.constant dense<0xFF800000> : vector<8xf32>
    %648 = vector.multi_reduction <maximumf>, %647, %cst_268 [1] : vector<8x8xf32> to vector<8xf32>
    %649 = vector.shape_cast %648 : vector<8xf32> to vector<8x1xf32>
    %650 = vector.broadcast %649 : vector<8x1xf32> to vector<8x8xf32>
    %651 = arith.subf %647, %650 : vector<8x8xf32>
    %652 = math.exp %651 : vector<8x8xf32>
    %cst_269 = arith.constant dense<0.000000e+00> : vector<8xf32>
    %653 = vector.multi_reduction <add>, %652, %cst_269 [1] : vector<8x8xf32> to vector<8xf32>
    %654 = vector.shape_cast %653 : vector<8xf32> to vector<8x1xf32>
    %655 = tpu.reciprocal %654 {approx = true} : vector<8x1xf32> -> vector<8x1xf32>
    %656 = vector.broadcast %655 : vector<8x1xf32> to vector<8x8xf32>
    %657 = arith.mulf %652, %656 : vector<8x8xf32>
    %cst_270 = arith.constant dense<0.000000e+00> : vector<8x8xf32>
    %658 = tpu.matmul %657, %640, %cst_270 {dimension_numbers = #tpu.dot_dimension_numbers<[1], [0], [0], [1], [0, 0, 1, 1], [], []>} : vector<8x8xf32>, vector<8x8xf32>, vector<8x8xf32> -> vector<8x8xf32>
    %cst_271 = arith.constant dense<0.000000e+00> : vector<8x32xf32>
    %659 = tpu.matmul %658, %641, %cst_271 {dimension_numbers = #tpu.dot_dimension_numbers<[1], [0], [0], [1], [0, 0, 1, 1], [], []>} : vector<8x8xf32>, vector<8x32xf32>, vector<8x32xf32> -> vector<8x32xf32>
    %660 = arith.addf %625, %659 : vector<8x32xf32>
    %c1536 = arith.constant 1536 : index
    %c0_272 = arith.constant 0 : index
    %661 = vector.load %arg5[%c1536, %c0_272] : memref<2448x128xf32, #tpu.memory_space<vmem>>, vector<32x8xf32>
    %cst_273 = arith.constant dense<0.000000e+00> : vector<8x8xf32>
    %662 = tpu.matmul %569, %661, %cst_273 {dimension_numbers = #tpu.dot_dimension_numbers<[1], [0], [0], [1], [0, 0, 1, 1], [], []>} : vector<8x32xf32>, vector<32x8xf32>, vector<8x8xf32> -> vector<8x8xf32>
    %c1640 = arith.constant 1640 : index
    %c0_274 = arith.constant 0 : index
    %663 = vector.load %arg5[%c1640, %c0_274] : memref<2448x128xf32, #tpu.memory_space<vmem>>, vector<1x8xf32>
    %664 = vector.broadcast %663 : vector<1x8xf32> to vector<8x8xf32>
    %665 = arith.addf %662, %664 : vector<8x8xf32>
    %c1568 = arith.constant 1568 : index
    %c0_275 = arith.constant 0 : index
    %666 = vector.load %arg5[%c1568, %c0_275] : memref<2448x128xf32, #tpu.memory_space<vmem>>, vector<32x8xf32>
    %cst_276 = arith.constant dense<0.000000e+00> : vector<8x8xf32>
    %667 = tpu.matmul %591, %666, %cst_276 {dimension_numbers = #tpu.dot_dimension_numbers<[1], [0], [0], [1], [0, 0, 1, 1], [], []>} : vector<8x32xf32>, vector<32x8xf32>, vector<8x8xf32> -> vector<8x8xf32>
    %c1648 = arith.constant 1648 : index
    %c0_277 = arith.constant 0 : index
    %668 = vector.load %arg5[%c1648, %c0_277] : memref<2448x128xf32, #tpu.memory_space<vmem>>, vector<1x8xf32>
    %669 = vector.broadcast %668 : vector<1x8xf32> to vector<8x8xf32>
    %670 = arith.addf %667, %669 : vector<8x8xf32>
    %c1600 = arith.constant 1600 : index
    %c0_278 = arith.constant 0 : index
    %671 = vector.load %arg5[%c1600, %c0_278] : memref<2448x128xf32, #tpu.memory_space<vmem>>, vector<32x8xf32>
    %cst_279 = arith.constant dense<0.000000e+00> : vector<8x8xf32>
    %672 = tpu.matmul %591, %671, %cst_279 {dimension_numbers = #tpu.dot_dimension_numbers<[1], [0], [0], [1], [0, 0, 1, 1], [], []>} : vector<8x32xf32>, vector<32x8xf32>, vector<8x8xf32> -> vector<8x8xf32>
    %c1656 = arith.constant 1656 : index
    %c0_280 = arith.constant 0 : index
    %673 = vector.load %arg5[%c1656, %c0_280] : memref<2448x128xf32, #tpu.memory_space<vmem>>, vector<1x8xf32>
    %674 = vector.broadcast %673 : vector<1x8xf32> to vector<8x8xf32>
    %675 = arith.addf %672, %674 : vector<8x8xf32>
    %c1632 = arith.constant 1632 : index
    %c0_281 = arith.constant 0 : index
    %676 = vector.load %arg5[%c1632, %c0_281] : memref<2448x128xf32, #tpu.memory_space<vmem>>, vector<8x32xf32>
    %cst_282 = arith.constant dense<0.000000e+00> : vector<8x8xf32>
    %677 = tpu.matmul %665, %670, %cst_282 {dimension_numbers = #tpu.dot_dimension_numbers<[1], [1], [0], [0], [0, 0, 1, 0], [], []>} : vector<8x8xf32>, vector<8x8xf32>, vector<8x8xf32> -> vector<8x8xf32>
    %cst_283 = arith.constant 0.353553385 : f32
    %678 = vector.broadcast %cst_283 : f32 to vector<8x8xf32>
    %679 = arith.mulf %677, %678 : vector<8x8xf32>
    %680 = vector.extract_strided_slice %6 {offsets = [0, 0, 0], sizes = [1, 8, 8], strides = [1, 1, 1]} : vector<1x16x8xf32> to vector<1x8x8xf32>
    %681 = vector.shape_cast %680 : vector<1x8x8xf32> to vector<8x8xf32>
    %682 = arith.addf %679, %681 : vector<8x8xf32>
    %cst_284 = arith.constant dense<0xFF800000> : vector<8xf32>
    %683 = vector.multi_reduction <maximumf>, %682, %cst_284 [1] : vector<8x8xf32> to vector<8xf32>
    %684 = vector.shape_cast %683 : vector<8xf32> to vector<8x1xf32>
    %685 = vector.broadcast %684 : vector<8x1xf32> to vector<8x8xf32>
    %686 = arith.subf %682, %685 : vector<8x8xf32>
    %687 = math.exp %686 : vector<8x8xf32>
    %cst_285 = arith.constant dense<0.000000e+00> : vector<8xf32>
    %688 = vector.multi_reduction <add>, %687, %cst_285 [1] : vector<8x8xf32> to vector<8xf32>
    %689 = vector.shape_cast %688 : vector<8xf32> to vector<8x1xf32>
    %690 = tpu.reciprocal %689 {approx = true} : vector<8x1xf32> -> vector<8x1xf32>
    %691 = vector.broadcast %690 : vector<8x1xf32> to vector<8x8xf32>
    %692 = arith.mulf %687, %691 : vector<8x8xf32>
    %cst_286 = arith.constant dense<0.000000e+00> : vector<8x8xf32>
    %693 = tpu.matmul %692, %675, %cst_286 {dimension_numbers = #tpu.dot_dimension_numbers<[1], [0], [0], [1], [0, 0, 1, 1], [], []>} : vector<8x8xf32>, vector<8x8xf32>, vector<8x8xf32> -> vector<8x8xf32>
    %cst_287 = arith.constant dense<0.000000e+00> : vector<8x32xf32>
    %694 = tpu.matmul %693, %676, %cst_287 {dimension_numbers = #tpu.dot_dimension_numbers<[1], [0], [0], [1], [0, 0, 1, 1], [], []>} : vector<8x8xf32>, vector<8x32xf32>, vector<8x32xf32> -> vector<8x32xf32>
    %695 = arith.addf %660, %694 : vector<8x32xf32>
    %c1664 = arith.constant 1664 : index
    %c0_288 = arith.constant 0 : index
    %696 = vector.load %arg5[%c1664, %c0_288] : memref<2448x128xf32, #tpu.memory_space<vmem>>, vector<32x8xf32>
    %cst_289 = arith.constant dense<0.000000e+00> : vector<8x8xf32>
    %697 = tpu.matmul %569, %696, %cst_289 {dimension_numbers = #tpu.dot_dimension_numbers<[1], [0], [0], [1], [0, 0, 1, 1], [], []>} : vector<8x32xf32>, vector<32x8xf32>, vector<8x8xf32> -> vector<8x8xf32>
    %c1768 = arith.constant 1768 : index
    %c0_290 = arith.constant 0 : index
    %698 = vector.load %arg5[%c1768, %c0_290] : memref<2448x128xf32, #tpu.memory_space<vmem>>, vector<1x8xf32>
    %699 = vector.broadcast %698 : vector<1x8xf32> to vector<8x8xf32>
    %700 = arith.addf %697, %699 : vector<8x8xf32>
    %c1696 = arith.constant 1696 : index
    %c0_291 = arith.constant 0 : index
    %701 = vector.load %arg5[%c1696, %c0_291] : memref<2448x128xf32, #tpu.memory_space<vmem>>, vector<32x8xf32>
    %cst_292 = arith.constant dense<0.000000e+00> : vector<8x8xf32>
    %702 = tpu.matmul %591, %701, %cst_292 {dimension_numbers = #tpu.dot_dimension_numbers<[1], [0], [0], [1], [0, 0, 1, 1], [], []>} : vector<8x32xf32>, vector<32x8xf32>, vector<8x8xf32> -> vector<8x8xf32>
    %c1776 = arith.constant 1776 : index
    %c0_293 = arith.constant 0 : index
    %703 = vector.load %arg5[%c1776, %c0_293] : memref<2448x128xf32, #tpu.memory_space<vmem>>, vector<1x8xf32>
    %704 = vector.broadcast %703 : vector<1x8xf32> to vector<8x8xf32>
    %705 = arith.addf %702, %704 : vector<8x8xf32>
    %c1728 = arith.constant 1728 : index
    %c0_294 = arith.constant 0 : index
    %706 = vector.load %arg5[%c1728, %c0_294] : memref<2448x128xf32, #tpu.memory_space<vmem>>, vector<32x8xf32>
    %cst_295 = arith.constant dense<0.000000e+00> : vector<8x8xf32>
    %707 = tpu.matmul %591, %706, %cst_295 {dimension_numbers = #tpu.dot_dimension_numbers<[1], [0], [0], [1], [0, 0, 1, 1], [], []>} : vector<8x32xf32>, vector<32x8xf32>, vector<8x8xf32> -> vector<8x8xf32>
    %c1784 = arith.constant 1784 : index
    %c0_296 = arith.constant 0 : index
    %708 = vector.load %arg5[%c1784, %c0_296] : memref<2448x128xf32, #tpu.memory_space<vmem>>, vector<1x8xf32>
    %709 = vector.broadcast %708 : vector<1x8xf32> to vector<8x8xf32>
    %710 = arith.addf %707, %709 : vector<8x8xf32>
    %c1760 = arith.constant 1760 : index
    %c0_297 = arith.constant 0 : index
    %711 = vector.load %arg5[%c1760, %c0_297] : memref<2448x128xf32, #tpu.memory_space<vmem>>, vector<8x32xf32>
    %cst_298 = arith.constant dense<0.000000e+00> : vector<8x8xf32>
    %712 = tpu.matmul %700, %705, %cst_298 {dimension_numbers = #tpu.dot_dimension_numbers<[1], [1], [0], [0], [0, 0, 1, 0], [], []>} : vector<8x8xf32>, vector<8x8xf32>, vector<8x8xf32> -> vector<8x8xf32>
    %cst_299 = arith.constant 0.353553385 : f32
    %713 = vector.broadcast %cst_299 : f32 to vector<8x8xf32>
    %714 = arith.mulf %712, %713 : vector<8x8xf32>
    %715 = vector.extract_strided_slice %6 {offsets = [0, 0, 0], sizes = [1, 8, 8], strides = [1, 1, 1]} : vector<1x16x8xf32> to vector<1x8x8xf32>
    %716 = vector.shape_cast %715 : vector<1x8x8xf32> to vector<8x8xf32>
    %717 = arith.addf %714, %716 : vector<8x8xf32>
    %cst_300 = arith.constant dense<0xFF800000> : vector<8xf32>
    %718 = vector.multi_reduction <maximumf>, %717, %cst_300 [1] : vector<8x8xf32> to vector<8xf32>
    %719 = vector.shape_cast %718 : vector<8xf32> to vector<8x1xf32>
    %720 = vector.broadcast %719 : vector<8x1xf32> to vector<8x8xf32>
    %721 = arith.subf %717, %720 : vector<8x8xf32>
    %722 = math.exp %721 : vector<8x8xf32>
    %cst_301 = arith.constant dense<0.000000e+00> : vector<8xf32>
    %723 = vector.multi_reduction <add>, %722, %cst_301 [1] : vector<8x8xf32> to vector<8xf32>
    %724 = vector.shape_cast %723 : vector<8xf32> to vector<8x1xf32>
    %725 = tpu.reciprocal %724 {approx = true} : vector<8x1xf32> -> vector<8x1xf32>
    %726 = vector.broadcast %725 : vector<8x1xf32> to vector<8x8xf32>
    %727 = arith.mulf %722, %726 : vector<8x8xf32>
    %cst_302 = arith.constant dense<0.000000e+00> : vector<8x8xf32>
    %728 = tpu.matmul %727, %710, %cst_302 {dimension_numbers = #tpu.dot_dimension_numbers<[1], [0], [0], [1], [0, 0, 1, 1], [], []>} : vector<8x8xf32>, vector<8x8xf32>, vector<8x8xf32> -> vector<8x8xf32>
    %cst_303 = arith.constant dense<0.000000e+00> : vector<8x32xf32>
    %729 = tpu.matmul %728, %711, %cst_303 {dimension_numbers = #tpu.dot_dimension_numbers<[1], [0], [0], [1], [0, 0, 1, 1], [], []>} : vector<8x8xf32>, vector<8x32xf32>, vector<8x32xf32> -> vector<8x32xf32>
    %730 = arith.addf %695, %729 : vector<8x32xf32>
    %c1792 = arith.constant 1792 : index
    %c0_304 = arith.constant 0 : index
    %731 = vector.load %arg5[%c1792, %c0_304] : memref<2448x128xf32, #tpu.memory_space<vmem>>, vector<1x32xf32>
    %732 = vector.broadcast %731 : vector<1x32xf32> to vector<8x32xf32>
    %733 = arith.addf %730, %732 : vector<8x32xf32>
    %734 = arith.addf %546, %733 : vector<8x32xf32>
    %c1248 = arith.constant 1248 : index
    %c0_305 = arith.constant 0 : index
    %735 = vector.load %arg5[%c1248, %c0_305] : memref<2448x128xf32, #tpu.memory_space<vmem>>, vector<1x32xf32>
    %c1256 = arith.constant 1256 : index
    %c0_306 = arith.constant 0 : index
    %736 = vector.load %arg5[%c1256, %c0_306] : memref<2448x128xf32, #tpu.memory_space<vmem>>, vector<1x32xf32>
    %cst_307 = arith.constant dense<0.000000e+00> : vector<8xf32>
    %737 = vector.multi_reduction <add>, %734, %cst_307 [1] : vector<8x32xf32> to vector<8xf32>
    %738 = vector.shape_cast %737 : vector<8xf32> to vector<8x1xf32>
    %cst_308 = arith.constant 3.200000e+01 : f32
    %739 = vector.broadcast %cst_308 : f32 to vector<8x1xf32>
    %740 = arith.divf %738, %739 : vector<8x1xf32>
    %741 = vector.broadcast %740 : vector<8x1xf32> to vector<8x32xf32>
    %742 = arith.subf %734, %741 : vector<8x32xf32>
    %743 = arith.mulf %742, %742 : vector<8x32xf32>
    %cst_309 = arith.constant dense<0.000000e+00> : vector<8xf32>
    %744 = vector.multi_reduction <add>, %743, %cst_309 [1] : vector<8x32xf32> to vector<8xf32>
    %745 = vector.shape_cast %744 : vector<8xf32> to vector<8x1xf32>
    %cst_310 = arith.constant 3.200000e+01 : f32
    %746 = vector.broadcast %cst_310 : f32 to vector<8x1xf32>
    %747 = arith.divf %745, %746 : vector<8x1xf32>
    %cst_311 = arith.constant 9.99999974E-6 : f32
    %748 = vector.broadcast %cst_311 : f32 to vector<8x1xf32>
    %749 = arith.addf %747, %748 : vector<8x1xf32>
    %750 = math.rsqrt %749 : vector<8x1xf32>
    %751 = vector.broadcast %750 : vector<8x1xf32> to vector<8x32xf32>
    %752 = arith.mulf %742, %751 : vector<8x32xf32>
    %753 = vector.broadcast %735 : vector<1x32xf32> to vector<8x32xf32>
    %754 = arith.mulf %752, %753 : vector<8x32xf32>
    %755 = vector.broadcast %736 : vector<1x32xf32> to vector<8x32xf32>
    %756 = arith.addf %754, %755 : vector<8x32xf32>
    %c1800 = arith.constant 1800 : index
    %c0_312 = arith.constant 0 : index
    %757 = vector.load %arg5[%c1800, %c0_312] : memref<2448x128xf32, #tpu.memory_space<vmem>>, vector<32x8xf32>
    %cst_313 = arith.constant dense<0.000000e+00> : vector<8x8xf32>
    %758 = tpu.matmul %756, %757, %cst_313 {dimension_numbers = #tpu.dot_dimension_numbers<[1], [0], [0], [1], [0, 0, 1, 1], [], []>} : vector<8x32xf32>, vector<32x8xf32>, vector<8x8xf32> -> vector<8x8xf32>
    %c1904 = arith.constant 1904 : index
    %c0_314 = arith.constant 0 : index
    %759 = vector.load %arg5[%c1904, %c0_314] : memref<2448x128xf32, #tpu.memory_space<vmem>>, vector<1x8xf32>
    %760 = vector.broadcast %759 : vector<1x8xf32> to vector<8x8xf32>
    %761 = arith.addf %758, %760 : vector<8x8xf32>
    %c1832 = arith.constant 1832 : index
    %c0_315 = arith.constant 0 : index
    %762 = vector.load %arg5[%c1832, %c0_315] : memref<2448x128xf32, #tpu.memory_space<vmem>>, vector<32x8xf32>
    %cst_316 = arith.constant dense<0.000000e+00> : vector<16x8xf32>
    %763 = tpu.matmul %5, %762, %cst_316 {dimension_numbers = #tpu.dot_dimension_numbers<[1], [0], [0], [1], [0, 0, 1, 1], [], []>} : vector<16x32xf32>, vector<32x8xf32>, vector<16x8xf32> -> vector<16x8xf32>
    %c1912 = arith.constant 1912 : index
    %c0_317 = arith.constant 0 : index
    %764 = vector.load %arg5[%c1912, %c0_317] : memref<2448x128xf32, #tpu.memory_space<vmem>>, vector<1x8xf32>
    %765 = vector.broadcast %764 : vector<1x8xf32> to vector<16x8xf32>
    %766 = arith.addf %763, %765 : vector<16x8xf32>
    %c1864 = arith.constant 1864 : index
    %c0_318 = arith.constant 0 : index
    %767 = vector.load %arg5[%c1864, %c0_318] : memref<2448x128xf32, #tpu.memory_space<vmem>>, vector<32x8xf32>
    %cst_319 = arith.constant dense<0.000000e+00> : vector<16x8xf32>
    %768 = tpu.matmul %5, %767, %cst_319 {dimension_numbers = #tpu.dot_dimension_numbers<[1], [0], [0], [1], [0, 0, 1, 1], [], []>} : vector<16x32xf32>, vector<32x8xf32>, vector<16x8xf32> -> vector<16x8xf32>
    %c1920 = arith.constant 1920 : index
    %c0_320 = arith.constant 0 : index
    %769 = vector.load %arg5[%c1920, %c0_320] : memref<2448x128xf32, #tpu.memory_space<vmem>>, vector<1x8xf32>
    %770 = vector.broadcast %769 : vector<1x8xf32> to vector<16x8xf32>
    %771 = arith.addf %768, %770 : vector<16x8xf32>
    %c1896 = arith.constant 1896 : index
    %c0_321 = arith.constant 0 : index
    %772 = vector.load %arg5[%c1896, %c0_321] : memref<2448x128xf32, #tpu.memory_space<vmem>>, vector<8x32xf32>
    %cst_322 = arith.constant dense<0.000000e+00> : vector<8x16xf32>
    %773 = tpu.matmul %761, %766, %cst_322 {dimension_numbers = #tpu.dot_dimension_numbers<[1], [1], [0], [0], [0, 0, 1, 0], [], []>} : vector<8x8xf32>, vector<16x8xf32>, vector<8x16xf32> -> vector<8x16xf32>
    %cst_323 = arith.constant 0.353553385 : f32
    %774 = vector.broadcast %cst_323 : f32 to vector<8x16xf32>
    %775 = arith.mulf %773, %774 : vector<8x16xf32>
    %cst_324 = arith.constant dense<0xFF800000> : vector<8xf32>
    %776 = vector.multi_reduction <maximumf>, %775, %cst_324 [1] : vector<8x16xf32> to vector<8xf32>
    %777 = vector.shape_cast %776 : vector<8xf32> to vector<8x1xf32>
    %778 = vector.broadcast %777 : vector<8x1xf32> to vector<8x16xf32>
    %779 = arith.subf %775, %778 : vector<8x16xf32>
    %780 = math.exp %779 : vector<8x16xf32>
    %cst_325 = arith.constant dense<0.000000e+00> : vector<8xf32>
    %781 = vector.multi_reduction <add>, %780, %cst_325 [1] : vector<8x16xf32> to vector<8xf32>
    %782 = vector.shape_cast %781 : vector<8xf32> to vector<8x1xf32>
    %783 = tpu.reciprocal %782 {approx = true} : vector<8x1xf32> -> vector<8x1xf32>
    %784 = vector.broadcast %783 : vector<8x1xf32> to vector<8x16xf32>
    %785 = arith.mulf %780, %784 : vector<8x16xf32>
    %cst_326 = arith.constant dense<0.000000e+00> : vector<8x8xf32>
    %786 = tpu.matmul %785, %771, %cst_326 {dimension_numbers = #tpu.dot_dimension_numbers<[1], [0], [0], [1], [0, 0, 1, 1], [], []>} : vector<8x16xf32>, vector<16x8xf32>, vector<8x8xf32> -> vector<8x8xf32>
    %cst_327 = arith.constant dense<0.000000e+00> : vector<8x32xf32>
    %787 = tpu.matmul %786, %772, %cst_327 {dimension_numbers = #tpu.dot_dimension_numbers<[1], [0], [0], [1], [0, 0, 1, 1], [], []>} : vector<8x8xf32>, vector<8x32xf32>, vector<8x32xf32> -> vector<8x32xf32>
    %c1928 = arith.constant 1928 : index
    %c0_328 = arith.constant 0 : index
    %788 = vector.load %arg5[%c1928, %c0_328] : memref<2448x128xf32, #tpu.memory_space<vmem>>, vector<32x8xf32>
    %cst_329 = arith.constant dense<0.000000e+00> : vector<8x8xf32>
    %789 = tpu.matmul %756, %788, %cst_329 {dimension_numbers = #tpu.dot_dimension_numbers<[1], [0], [0], [1], [0, 0, 1, 1], [], []>} : vector<8x32xf32>, vector<32x8xf32>, vector<8x8xf32> -> vector<8x8xf32>
    %c2032 = arith.constant 2032 : index
    %c0_330 = arith.constant 0 : index
    %790 = vector.load %arg5[%c2032, %c0_330] : memref<2448x128xf32, #tpu.memory_space<vmem>>, vector<1x8xf32>
    %791 = vector.broadcast %790 : vector<1x8xf32> to vector<8x8xf32>
    %792 = arith.addf %789, %791 : vector<8x8xf32>
    %c1960 = arith.constant 1960 : index
    %c0_331 = arith.constant 0 : index
    %793 = vector.load %arg5[%c1960, %c0_331] : memref<2448x128xf32, #tpu.memory_space<vmem>>, vector<32x8xf32>
    %cst_332 = arith.constant dense<0.000000e+00> : vector<16x8xf32>
    %794 = tpu.matmul %5, %793, %cst_332 {dimension_numbers = #tpu.dot_dimension_numbers<[1], [0], [0], [1], [0, 0, 1, 1], [], []>} : vector<16x32xf32>, vector<32x8xf32>, vector<16x8xf32> -> vector<16x8xf32>
    %c2040 = arith.constant 2040 : index
    %c0_333 = arith.constant 0 : index
    %795 = vector.load %arg5[%c2040, %c0_333] : memref<2448x128xf32, #tpu.memory_space<vmem>>, vector<1x8xf32>
    %796 = vector.broadcast %795 : vector<1x8xf32> to vector<16x8xf32>
    %797 = arith.addf %794, %796 : vector<16x8xf32>
    %c1992 = arith.constant 1992 : index
    %c0_334 = arith.constant 0 : index
    %798 = vector.load %arg5[%c1992, %c0_334] : memref<2448x128xf32, #tpu.memory_space<vmem>>, vector<32x8xf32>
    %cst_335 = arith.constant dense<0.000000e+00> : vector<16x8xf32>
    %799 = tpu.matmul %5, %798, %cst_335 {dimension_numbers = #tpu.dot_dimension_numbers<[1], [0], [0], [1], [0, 0, 1, 1], [], []>} : vector<16x32xf32>, vector<32x8xf32>, vector<16x8xf32> -> vector<16x8xf32>
    %c2048 = arith.constant 2048 : index
    %c0_336 = arith.constant 0 : index
    %800 = vector.load %arg5[%c2048, %c0_336] : memref<2448x128xf32, #tpu.memory_space<vmem>>, vector<1x8xf32>
    %801 = vector.broadcast %800 : vector<1x8xf32> to vector<16x8xf32>
    %802 = arith.addf %799, %801 : vector<16x8xf32>
    %c2024 = arith.constant 2024 : index
    %c0_337 = arith.constant 0 : index
    %803 = vector.load %arg5[%c2024, %c0_337] : memref<2448x128xf32, #tpu.memory_space<vmem>>, vector<8x32xf32>
    %cst_338 = arith.constant dense<0.000000e+00> : vector<8x16xf32>
    %804 = tpu.matmul %792, %797, %cst_338 {dimension_numbers = #tpu.dot_dimension_numbers<[1], [1], [0], [0], [0, 0, 1, 0], [], []>} : vector<8x8xf32>, vector<16x8xf32>, vector<8x16xf32> -> vector<8x16xf32>
    %cst_339 = arith.constant 0.353553385 : f32
    %805 = vector.broadcast %cst_339 : f32 to vector<8x16xf32>
    %806 = arith.mulf %804, %805 : vector<8x16xf32>
    %cst_340 = arith.constant dense<0xFF800000> : vector<8xf32>
    %807 = vector.multi_reduction <maximumf>, %806, %cst_340 [1] : vector<8x16xf32> to vector<8xf32>
    %808 = vector.shape_cast %807 : vector<8xf32> to vector<8x1xf32>
    %809 = vector.broadcast %808 : vector<8x1xf32> to vector<8x16xf32>
    %810 = arith.subf %806, %809 : vector<8x16xf32>
    %811 = math.exp %810 : vector<8x16xf32>
    %cst_341 = arith.constant dense<0.000000e+00> : vector<8xf32>
    %812 = vector.multi_reduction <add>, %811, %cst_341 [1] : vector<8x16xf32> to vector<8xf32>
    %813 = vector.shape_cast %812 : vector<8xf32> to vector<8x1xf32>
    %814 = tpu.reciprocal %813 {approx = true} : vector<8x1xf32> -> vector<8x1xf32>
    %815 = vector.broadcast %814 : vector<8x1xf32> to vector<8x16xf32>
    %816 = arith.mulf %811, %815 : vector<8x16xf32>
    %cst_342 = arith.constant dense<0.000000e+00> : vector<8x8xf32>
    %817 = tpu.matmul %816, %802, %cst_342 {dimension_numbers = #tpu.dot_dimension_numbers<[1], [0], [0], [1], [0, 0, 1, 1], [], []>} : vector<8x16xf32>, vector<16x8xf32>, vector<8x8xf32> -> vector<8x8xf32>
    %cst_343 = arith.constant dense<0.000000e+00> : vector<8x32xf32>
    %818 = tpu.matmul %817, %803, %cst_343 {dimension_numbers = #tpu.dot_dimension_numbers<[1], [0], [0], [1], [0, 0, 1, 1], [], []>} : vector<8x8xf32>, vector<8x32xf32>, vector<8x32xf32> -> vector<8x32xf32>
    %819 = arith.addf %787, %818 : vector<8x32xf32>
    %c2056 = arith.constant 2056 : index
    %c0_344 = arith.constant 0 : index
    %820 = vector.load %arg5[%c2056, %c0_344] : memref<2448x128xf32, #tpu.memory_space<vmem>>, vector<32x8xf32>
    %cst_345 = arith.constant dense<0.000000e+00> : vector<8x8xf32>
    %821 = tpu.matmul %756, %820, %cst_345 {dimension_numbers = #tpu.dot_dimension_numbers<[1], [0], [0], [1], [0, 0, 1, 1], [], []>} : vector<8x32xf32>, vector<32x8xf32>, vector<8x8xf32> -> vector<8x8xf32>
    %c2160 = arith.constant 2160 : index
    %c0_346 = arith.constant 0 : index
    %822 = vector.load %arg5[%c2160, %c0_346] : memref<2448x128xf32, #tpu.memory_space<vmem>>, vector<1x8xf32>
    %823 = vector.broadcast %822 : vector<1x8xf32> to vector<8x8xf32>
    %824 = arith.addf %821, %823 : vector<8x8xf32>
    %c2088 = arith.constant 2088 : index
    %c0_347 = arith.constant 0 : index
    %825 = vector.load %arg5[%c2088, %c0_347] : memref<2448x128xf32, #tpu.memory_space<vmem>>, vector<32x8xf32>
    %cst_348 = arith.constant dense<0.000000e+00> : vector<16x8xf32>
    %826 = tpu.matmul %5, %825, %cst_348 {dimension_numbers = #tpu.dot_dimension_numbers<[1], [0], [0], [1], [0, 0, 1, 1], [], []>} : vector<16x32xf32>, vector<32x8xf32>, vector<16x8xf32> -> vector<16x8xf32>
    %c2168 = arith.constant 2168 : index
    %c0_349 = arith.constant 0 : index
    %827 = vector.load %arg5[%c2168, %c0_349] : memref<2448x128xf32, #tpu.memory_space<vmem>>, vector<1x8xf32>
    %828 = vector.broadcast %827 : vector<1x8xf32> to vector<16x8xf32>
    %829 = arith.addf %826, %828 : vector<16x8xf32>
    %c2120 = arith.constant 2120 : index
    %c0_350 = arith.constant 0 : index
    %830 = vector.load %arg5[%c2120, %c0_350] : memref<2448x128xf32, #tpu.memory_space<vmem>>, vector<32x8xf32>
    %cst_351 = arith.constant dense<0.000000e+00> : vector<16x8xf32>
    %831 = tpu.matmul %5, %830, %cst_351 {dimension_numbers = #tpu.dot_dimension_numbers<[1], [0], [0], [1], [0, 0, 1, 1], [], []>} : vector<16x32xf32>, vector<32x8xf32>, vector<16x8xf32> -> vector<16x8xf32>
    %c2176 = arith.constant 2176 : index
    %c0_352 = arith.constant 0 : index
    %832 = vector.load %arg5[%c2176, %c0_352] : memref<2448x128xf32, #tpu.memory_space<vmem>>, vector<1x8xf32>
    %833 = vector.broadcast %832 : vector<1x8xf32> to vector<16x8xf32>
    %834 = arith.addf %831, %833 : vector<16x8xf32>
    %c2152 = arith.constant 2152 : index
    %c0_353 = arith.constant 0 : index
    %835 = vector.load %arg5[%c2152, %c0_353] : memref<2448x128xf32, #tpu.memory_space<vmem>>, vector<8x32xf32>
    %cst_354 = arith.constant dense<0.000000e+00> : vector<8x16xf32>
    %836 = tpu.matmul %824, %829, %cst_354 {dimension_numbers = #tpu.dot_dimension_numbers<[1], [1], [0], [0], [0, 0, 1, 0], [], []>} : vector<8x8xf32>, vector<16x8xf32>, vector<8x16xf32> -> vector<8x16xf32>
    %cst_355 = arith.constant 0.353553385 : f32
    %837 = vector.broadcast %cst_355 : f32 to vector<8x16xf32>
    %838 = arith.mulf %836, %837 : vector<8x16xf32>
    %cst_356 = arith.constant dense<0xFF800000> : vector<8xf32>
    %839 = vector.multi_reduction <maximumf>, %838, %cst_356 [1] : vector<8x16xf32> to vector<8xf32>
    %840 = vector.shape_cast %839 : vector<8xf32> to vector<8x1xf32>
    %841 = vector.broadcast %840 : vector<8x1xf32> to vector<8x16xf32>
    %842 = arith.subf %838, %841 : vector<8x16xf32>
    %843 = math.exp %842 : vector<8x16xf32>
    %cst_357 = arith.constant dense<0.000000e+00> : vector<8xf32>
    %844 = vector.multi_reduction <add>, %843, %cst_357 [1] : vector<8x16xf32> to vector<8xf32>
    %845 = vector.shape_cast %844 : vector<8xf32> to vector<8x1xf32>
    %846 = tpu.reciprocal %845 {approx = true} : vector<8x1xf32> -> vector<8x1xf32>
    %847 = vector.broadcast %846 : vector<8x1xf32> to vector<8x16xf32>
    %848 = arith.mulf %843, %847 : vector<8x16xf32>
    %cst_358 = arith.constant dense<0.000000e+00> : vector<8x8xf32>
    %849 = tpu.matmul %848, %834, %cst_358 {dimension_numbers = #tpu.dot_dimension_numbers<[1], [0], [0], [1], [0, 0, 1, 1], [], []>} : vector<8x16xf32>, vector<16x8xf32>, vector<8x8xf32> -> vector<8x8xf32>
    %cst_359 = arith.constant dense<0.000000e+00> : vector<8x32xf32>
    %850 = tpu.matmul %849, %835, %cst_359 {dimension_numbers = #tpu.dot_dimension_numbers<[1], [0], [0], [1], [0, 0, 1, 1], [], []>} : vector<8x8xf32>, vector<8x32xf32>, vector<8x32xf32> -> vector<8x32xf32>
    %851 = arith.addf %819, %850 : vector<8x32xf32>
    %c2184 = arith.constant 2184 : index
    %c0_360 = arith.constant 0 : index
    %852 = vector.load %arg5[%c2184, %c0_360] : memref<2448x128xf32, #tpu.memory_space<vmem>>, vector<32x8xf32>
    %cst_361 = arith.constant dense<0.000000e+00> : vector<8x8xf32>
    %853 = tpu.matmul %756, %852, %cst_361 {dimension_numbers = #tpu.dot_dimension_numbers<[1], [0], [0], [1], [0, 0, 1, 1], [], []>} : vector<8x32xf32>, vector<32x8xf32>, vector<8x8xf32> -> vector<8x8xf32>
    %c2288 = arith.constant 2288 : index
    %c0_362 = arith.constant 0 : index
    %854 = vector.load %arg5[%c2288, %c0_362] : memref<2448x128xf32, #tpu.memory_space<vmem>>, vector<1x8xf32>
    %855 = vector.broadcast %854 : vector<1x8xf32> to vector<8x8xf32>
    %856 = arith.addf %853, %855 : vector<8x8xf32>
    %c2216 = arith.constant 2216 : index
    %c0_363 = arith.constant 0 : index
    %857 = vector.load %arg5[%c2216, %c0_363] : memref<2448x128xf32, #tpu.memory_space<vmem>>, vector<32x8xf32>
    %cst_364 = arith.constant dense<0.000000e+00> : vector<16x8xf32>
    %858 = tpu.matmul %5, %857, %cst_364 {dimension_numbers = #tpu.dot_dimension_numbers<[1], [0], [0], [1], [0, 0, 1, 1], [], []>} : vector<16x32xf32>, vector<32x8xf32>, vector<16x8xf32> -> vector<16x8xf32>
    %c2296 = arith.constant 2296 : index
    %c0_365 = arith.constant 0 : index
    %859 = vector.load %arg5[%c2296, %c0_365] : memref<2448x128xf32, #tpu.memory_space<vmem>>, vector<1x8xf32>
    %860 = vector.broadcast %859 : vector<1x8xf32> to vector<16x8xf32>
    %861 = arith.addf %858, %860 : vector<16x8xf32>
    %c2248 = arith.constant 2248 : index
    %c0_366 = arith.constant 0 : index
    %862 = vector.load %arg5[%c2248, %c0_366] : memref<2448x128xf32, #tpu.memory_space<vmem>>, vector<32x8xf32>
    %cst_367 = arith.constant dense<0.000000e+00> : vector<16x8xf32>
    %863 = tpu.matmul %5, %862, %cst_367 {dimension_numbers = #tpu.dot_dimension_numbers<[1], [0], [0], [1], [0, 0, 1, 1], [], []>} : vector<16x32xf32>, vector<32x8xf32>, vector<16x8xf32> -> vector<16x8xf32>
    %c2304 = arith.constant 2304 : index
    %c0_368 = arith.constant 0 : index
    %864 = vector.load %arg5[%c2304, %c0_368] : memref<2448x128xf32, #tpu.memory_space<vmem>>, vector<1x8xf32>
    %865 = vector.broadcast %864 : vector<1x8xf32> to vector<16x8xf32>
    %866 = arith.addf %863, %865 : vector<16x8xf32>
    %c2280 = arith.constant 2280 : index
    %c0_369 = arith.constant 0 : index
    %867 = vector.load %arg5[%c2280, %c0_369] : memref<2448x128xf32, #tpu.memory_space<vmem>>, vector<8x32xf32>
    %cst_370 = arith.constant dense<0.000000e+00> : vector<8x16xf32>
    %868 = tpu.matmul %856, %861, %cst_370 {dimension_numbers = #tpu.dot_dimension_numbers<[1], [1], [0], [0], [0, 0, 1, 0], [], []>} : vector<8x8xf32>, vector<16x8xf32>, vector<8x16xf32> -> vector<8x16xf32>
    %cst_371 = arith.constant 0.353553385 : f32
    %869 = vector.broadcast %cst_371 : f32 to vector<8x16xf32>
    %870 = arith.mulf %868, %869 : vector<8x16xf32>
    %cst_372 = arith.constant dense<0xFF800000> : vector<8xf32>
    %871 = vector.multi_reduction <maximumf>, %870, %cst_372 [1] : vector<8x16xf32> to vector<8xf32>
    %872 = vector.shape_cast %871 : vector<8xf32> to vector<8x1xf32>
    %873 = vector.broadcast %872 : vector<8x1xf32> to vector<8x16xf32>
    %874 = arith.subf %870, %873 : vector<8x16xf32>
    %875 = math.exp %874 : vector<8x16xf32>
    %cst_373 = arith.constant dense<0.000000e+00> : vector<8xf32>
    %876 = vector.multi_reduction <add>, %875, %cst_373 [1] : vector<8x16xf32> to vector<8xf32>
    %877 = vector.shape_cast %876 : vector<8xf32> to vector<8x1xf32>
    %878 = tpu.reciprocal %877 {approx = true} : vector<8x1xf32> -> vector<8x1xf32>
    %879 = vector.broadcast %878 : vector<8x1xf32> to vector<8x16xf32>
    %880 = arith.mulf %875, %879 : vector<8x16xf32>
    %cst_374 = arith.constant dense<0.000000e+00> : vector<8x8xf32>
    %881 = tpu.matmul %880, %866, %cst_374 {dimension_numbers = #tpu.dot_dimension_numbers<[1], [0], [0], [1], [0, 0, 1, 1], [], []>} : vector<8x16xf32>, vector<16x8xf32>, vector<8x8xf32> -> vector<8x8xf32>
    %cst_375 = arith.constant dense<0.000000e+00> : vector<8x32xf32>
    %882 = tpu.matmul %881, %867, %cst_375 {dimension_numbers = #tpu.dot_dimension_numbers<[1], [0], [0], [1], [0, 0, 1, 1], [], []>} : vector<8x8xf32>, vector<8x32xf32>, vector<8x32xf32> -> vector<8x32xf32>
    %883 = arith.addf %851, %882 : vector<8x32xf32>
    %c2312 = arith.constant 2312 : index
    %c0_376 = arith.constant 0 : index
    %884 = vector.load %arg5[%c2312, %c0_376] : memref<2448x128xf32, #tpu.memory_space<vmem>>, vector<1x32xf32>
    %885 = vector.broadcast %884 : vector<1x32xf32> to vector<8x32xf32>
    %886 = arith.addf %883, %885 : vector<8x32xf32>
    %887 = arith.addf %734, %886 : vector<8x32xf32>
    %c1264 = arith.constant 1264 : index
    %c0_377 = arith.constant 0 : index
    %888 = vector.load %arg5[%c1264, %c0_377] : memref<2448x128xf32, #tpu.memory_space<vmem>>, vector<1x32xf32>
    %c1272 = arith.constant 1272 : index
    %c0_378 = arith.constant 0 : index
    %889 = vector.load %arg5[%c1272, %c0_378] : memref<2448x128xf32, #tpu.memory_space<vmem>>, vector<1x32xf32>
    %cst_379 = arith.constant dense<0.000000e+00> : vector<8xf32>
    %890 = vector.multi_reduction <add>, %887, %cst_379 [1] : vector<8x32xf32> to vector<8xf32>
    %891 = vector.shape_cast %890 : vector<8xf32> to vector<8x1xf32>
    %cst_380 = arith.constant 3.200000e+01 : f32
    %892 = vector.broadcast %cst_380 : f32 to vector<8x1xf32>
    %893 = arith.divf %891, %892 : vector<8x1xf32>
    %894 = vector.broadcast %893 : vector<8x1xf32> to vector<8x32xf32>
    %895 = arith.subf %887, %894 : vector<8x32xf32>
    %896 = arith.mulf %895, %895 : vector<8x32xf32>
    %cst_381 = arith.constant dense<0.000000e+00> : vector<8xf32>
    %897 = vector.multi_reduction <add>, %896, %cst_381 [1] : vector<8x32xf32> to vector<8xf32>
    %898 = vector.shape_cast %897 : vector<8xf32> to vector<8x1xf32>
    %cst_382 = arith.constant 3.200000e+01 : f32
    %899 = vector.broadcast %cst_382 : f32 to vector<8x1xf32>
    %900 = arith.divf %898, %899 : vector<8x1xf32>
    %cst_383 = arith.constant 9.99999974E-6 : f32
    %901 = vector.broadcast %cst_383 : f32 to vector<8x1xf32>
    %902 = arith.addf %900, %901 : vector<8x1xf32>
    %903 = math.rsqrt %902 : vector<8x1xf32>
    %904 = vector.broadcast %903 : vector<8x1xf32> to vector<8x32xf32>
    %905 = arith.mulf %895, %904 : vector<8x32xf32>
    %906 = vector.broadcast %888 : vector<1x32xf32> to vector<8x32xf32>
    %907 = arith.mulf %905, %906 : vector<8x32xf32>
    %908 = vector.broadcast %889 : vector<1x32xf32> to vector<8x32xf32>
    %909 = arith.addf %907, %908 : vector<8x32xf32>
    %c2320 = arith.constant 2320 : index
    %c0_384 = arith.constant 0 : index
    %910 = vector.load %arg5[%c2320, %c0_384] : memref<2448x128xf32, #tpu.memory_space<vmem>>, vector<32x64xf32>
    %cst_385 = arith.constant dense<0.000000e+00> : vector<8x64xf32>
    %911 = tpu.matmul %909, %910, %cst_385 {dimension_numbers = #tpu.dot_dimension_numbers<[1], [0], [0], [1], [0, 0, 1, 1], [], []>} : vector<8x32xf32>, vector<32x64xf32>, vector<8x64xf32> -> vector<8x64xf32>
    %c2352 = arith.constant 2352 : index
    %c0_386 = arith.constant 0 : index
    %912 = vector.load %arg5[%c2352, %c0_386] : memref<2448x128xf32, #tpu.memory_space<vmem>>, vector<1x64xf32>
    %913 = vector.broadcast %912 : vector<1x64xf32> to vector<8x64xf32>
    %914 = arith.addf %911, %913 : vector<8x64xf32>
    %cst_387 = arith.constant 5.000000e-01 : f32
    %915 = vector.broadcast %cst_387 : f32 to vector<8x64xf32>
    %916 = arith.mulf %915, %914 : vector<8x64xf32>
    %cst_388 = arith.constant 0.707106769 : f32
    %917 = vector.broadcast %cst_388 : f32 to vector<8x64xf32>
    %918 = arith.mulf %914, %917 : vector<8x64xf32>
    %919 = math.erf %918 : vector<8x64xf32>
    %cst_389 = arith.constant 1.000000e+00 : f32
    %920 = vector.broadcast %cst_389 : f32 to vector<8x64xf32>
    %921 = arith.addf %920, %919 : vector<8x64xf32>
    %922 = arith.mulf %916, %921 : vector<8x64xf32>
    %c2360 = arith.constant 2360 : index
    %c0_390 = arith.constant 0 : index
    %923 = vector.load %arg5[%c2360, %c0_390] : memref<2448x128xf32, #tpu.memory_space<vmem>>, vector<64x32xf32>
    %cst_391 = arith.constant dense<0.000000e+00> : vector<8x32xf32>
    %924 = tpu.matmul %922, %923, %cst_391 {dimension_numbers = #tpu.dot_dimension_numbers<[1], [0], [0], [1], [0, 0, 1, 1], [], []>} : vector<8x64xf32>, vector<64x32xf32>, vector<8x32xf32> -> vector<8x32xf32>
    %c2424 = arith.constant 2424 : index
    %c0_392 = arith.constant 0 : index
    %925 = vector.load %arg5[%c2424, %c0_392] : memref<2448x128xf32, #tpu.memory_space<vmem>>, vector<1x32xf32>
    %926 = vector.broadcast %925 : vector<1x32xf32> to vector<8x32xf32>
    %927 = arith.addf %924, %926 : vector<8x32xf32>
    %928 = arith.addf %887, %927 : vector<8x32xf32>
    %c2432 = arith.constant 2432 : index
    %c0_393 = arith.constant 0 : index
    %929 = vector.load %arg5[%c2432, %c0_393] : memref<2448x128xf32, #tpu.memory_space<vmem>>, vector<1x32xf32>
    %c2440 = arith.constant 2440 : index
    %c0_394 = arith.constant 0 : index
    %930 = vector.load %arg5[%c2440, %c0_394] : memref<2448x128xf32, #tpu.memory_space<vmem>>, vector<1x32xf32>
    %cst_395 = arith.constant dense<0.000000e+00> : vector<8xf32>
    %931 = vector.multi_reduction <add>, %928, %cst_395 [1] : vector<8x32xf32> to vector<8xf32>
    %932 = vector.shape_cast %931 : vector<8xf32> to vector<8x1xf32>
    %cst_396 = arith.constant 3.200000e+01 : f32
    %933 = vector.broadcast %cst_396 : f32 to vector<8x1xf32>
    %934 = arith.divf %932, %933 : vector<8x1xf32>
    %935 = vector.broadcast %934 : vector<8x1xf32> to vector<8x32xf32>
    %936 = arith.subf %928, %935 : vector<8x32xf32>
    %937 = arith.mulf %936, %936 : vector<8x32xf32>
    %cst_397 = arith.constant dense<0.000000e+00> : vector<8xf32>
    %938 = vector.multi_reduction <add>, %937, %cst_397 [1] : vector<8x32xf32> to vector<8xf32>
    %939 = vector.shape_cast %938 : vector<8xf32> to vector<8x1xf32>
    %cst_398 = arith.constant 3.200000e+01 : f32
    %940 = vector.broadcast %cst_398 : f32 to vector<8x1xf32>
    %941 = arith.divf %939, %940 : vector<8x1xf32>
    %cst_399 = arith.constant 9.99999974E-6 : f32
    %942 = vector.broadcast %cst_399 : f32 to vector<8x1xf32>
    %943 = arith.addf %941, %942 : vector<8x1xf32>
    %944 = math.rsqrt %943 : vector<8x1xf32>
    %945 = vector.broadcast %944 : vector<8x1xf32> to vector<8x32xf32>
    %946 = arith.mulf %936, %945 : vector<8x32xf32>
    %947 = vector.broadcast %929 : vector<1x32xf32> to vector<8x32xf32>
    %948 = arith.mulf %946, %947 : vector<8x32xf32>
    %949 = vector.broadcast %930 : vector<1x32xf32> to vector<8x32xf32>
    %950 = arith.addf %948, %949 : vector<8x32xf32>
    %951 = vector.shape_cast %950 : vector<8x32xf32> to vector<1x8x32xf32>
    %c0_400 = arith.constant 0 : index
    %c0_401 = arith.constant 0 : index
    %c0_402 = arith.constant 0 : index
    %952 = vector.load %arg6[%c0_400, %c0_401, %c0_402] : memref<1x8x32xf32, #tpu.memory_space<vmem>>, vector<1x8x32xf32>
    tpu.vector_store %arg6[%c0_400, %c0_401, %c0_402], %951 {strides = array<i32>} : memref<1x8x32xf32, #tpu.memory_space<vmem>>, vector<1x8x32xf32>,
    return
  }
  func.func @transform_0(%arg0: i32) -> (i32, i32, i32) {
    %c0_i32 = arith.constant 0 : i32
    %c0_i32_0 = arith.constant 0 : i32
    %c0_i32_1 = arith.constant 0 : i32
    return %arg0, %c0_i32, %c0_i32_0 : i32, i32, i32
  }
  func.func @transform_1(%arg0: i32) -> (i32, i32, i32) {
    %c0_i32 = arith.constant 0 : i32
    %c0_i32_0 = arith.constant 0 : i32
    %c0_i32_1 = arith.constant 0 : i32
    return %arg0, %c0_i32, %c0_i32_0 : i32, i32, i32
  }
  func.func @transform_2(%arg0: i32) -> (i32, i32, i32) {
    %c0_i32 = arith.constant 0 : i32
    %c0_i32_0 = arith.constant 0 : i32
    %c0_i32_1 = arith.constant 0 : i32
    return %arg0, %c0_i32, %c0_i32_0 : i32, i32, i32
  }
  func.func @transform_3(%arg0: i32) -> (i32, i32, i32) {
    %c0_i32 = arith.constant 0 : i32
    %c0_i32_0 = arith.constant 0 : i32
    %c0_i32_1 = arith.constant 0 : i32
    return %arg0, %c0_i32, %c0_i32_0 : i32, i32, i32
  }
  func.func @transform_4(%arg0: i32) -> (i32, i32) {
    %c0_i32 = arith.constant 0 : i32
    %c0_i32_0 = arith.constant 0 : i32
    %c0_i32_1 = arith.constant 0 : i32
    return %c0_i32, %c0_i32_0 : i32, i32
  }
  func.func @transform_5(%arg0: i32) -> (i32, i32, i32) {
    %c0_i32 = arith.constant 0 : i32
    %c0_i32_0 = arith.constant 0 : i32
    %c0_i32_1 = arith.constant 0 : i32
    return %arg0, %c0_i32, %c0_i32_0 : i32, i32, i32
  }
}

</mosaic_0001>

<bundles_post_ra>
// kernel: _lambda_.1
= control target key start
LH: loop header
LB: loop body
LE: loop exit
PB: predicated region body
PF: predicated region fallthrough
CT: control target
= control target key end

     0   :  { %s14515_s0 = inlined_call_operand.hbm [shape: f32[2,8,32], index: 0, kind: input, shape index: {}]   ;;  %s14516_s1 = inlined_call_operand.hbm [shape: f32[2,8,32], index: 1, kind: input, shape index: {}]   ;;  %s14517_s2 = inlined_call_operand.hbm [shape: f32[2,16,32], index: 2, kind: input, shape index: {}]   ;;  %s14518_s3 = inlined_call_operand.vmem [shape: f32[2,16,8], index: 3, kind: input, shape index: {}]   ;;  %s14519_s4 = inlined_call_operand.hbm [shape: f32[2448,128], index: 4, kind: input, shape index: {}]   ;;  %s14520_s5 = inlined_call_operand.hbm [shape: f32[2,8,32], index: 5, kind: output, shape index: {}]  }
   0x1   :  { %14536 = sst [smem:[#allocation21_spill]] %s14516_s1 }
   0x2   :  { %10 = vsyncpa [#allocation3], 0 }
   0x3   :  { %12 = vsyncpa [#allocation3 + $0x1], 0 }
   0x4   :  { %13 = vsyncpa [#allocation6], 0 }
   0x5   :  { %15 = vsyncpa [#allocation6 + $0x1], 0 }
   0x6   :  { %16 = vsyncpa [#allocation9], 0 }
   0x7   :  { %17 = vsyncpa [#allocation4], 0 }
   0x8   :  { %19 = vsyncpa [#allocation4 + $0x1], 0  ;;  %s13401_s18 = smov 0   ;;  %s13403_s19 = smov 0  }
   0x9   :  { %s13405_s20 = smov 0   ;;  %s13407_s21 = smov 0  }
   0xa LB: > { %14537 = sst [smem:[#allocation15_spill]] %s13347_s18  ;;  %s13422_s22 = sadd.s32 1, %s13359_s21   ;;  %s13359_s21 = sphi %s13407_s21, %s14566_s21   ;;  %s13355_s20 = sphi %s13405_s20, %s14568_s20   ;;  %s13351_s19 = sphi %s13403_s19, %s14570_s19   ;;  %s13347_s18 = sphi %s13401_s18, %s14569_s18  }
   0xb   : > { %14538 = sst [smem:[#allocation16_spill]] %s13355_s20  ;;  %s32_s23 = sadd.s32 1, %s13355_s20 }
   0xc   : > { %14539 = sst [smem:[#allocation17_spill]] %s13359_s21  ;;  %s29_s24 = ssub.s32 %s13359_s21, %s13422_s22 }
   0xd   : > { %14540 = sst [smem:[#allocation18_spill]] %s13422_s22  ;;  %p14521_p0 = scmp.ne.s32.totalorder %s13355_s20, %s13351_s19 }
   0xe   : > { %p30_p1 = scmp.eq.s32.totalorder %s29_s24, 0  ;;  %p40_p2 = scmp.eq.s32.totalorder %s13359_s21, 0 }
   0xf   : > { %p12998_p4 = scmp.lt.s32.totalorder %s13359_s21, 2  ;;  %s13439_s26 = sand.u32 1, %s13355_s20  }
  0x10   : > { %s13433_s25 = scalar_select %p30_p1, %s13355_s20, %s32_s23  }
  0x11   : > { %p41_p5 = por %p40_p2, %p14521_p0  ;;  %s10766_s27 = sshll.u32 %s13439_s26, 3 }
  0x12   : > { %14541 = sst [smem:[#allocation19_spill]] %s13433_s25  ;;  %s10767_s28 = sshll.u32 %s13359_s21, 7 }
  0x13   : > { %p13443_p6 = pnand %p12998_p4, %p41_p5  ;;  %s225_s30 = sand.u32 1, %s13359_s21  }
  0x14   : > { %s14543_s1 = sld [smem:[#allocation21_spill]]  ;;  %s229_s9 = scalar_lea.vmem [#allocation5], %s10766_s27 }
  0x15   : > { %s14542_s29 = scalar_select %p13443_p6, 1, 0 }
  0x16   : > { %s236_s10 = sshll.u32 %s229_s9, 4  ;;  %s10770_s11 = sshll.u32 %s13439_s26, 4  ;;  %s13458_s10 = int_to_ptr.vmem [resolvable:$true] %s236_s10 }
  0x17   : > { %s13460_s12 = scalar_lea.sflag [#allocation6], %s225_s30  ;;  %p13466_p8 = pneg %p13443_p6 }
  0x19   : > { %s14544_s14 = scalar_select %p13466_p8, 1, 0 }
  0x1a   : > { %s13453_s8 = scalar_lea.hbm %s14543_s1, %s10767_s28  ;;  %s13172_s17 = scalar_lea.hbm %s14543_s1, 256 }
  0x1b   : > { %s13167_s13 = scalar_lea.hbm %s13453_s8, 128  ;;  %p13173_p11 = scmp.lt.u32.totalorder %s13453_s8, %s14543_s1 }
  0x1c   : > { %p13168_p7 = scmp.ne.s32.totalorder %s13453_s8, %s13167_s13  ;;  %p13174_p12 = scmp.lt.u32.totalorder %s13172_s17, %s13167_s13 }
  0x1d   : > { %p13176_p1 = scmp.lt.u32.totalorder %s13167_s13, %s13453_s8 }
  0x1e   : > { %p13170_p9 = pnand %p13466_p8, %p13168_p7  ;;  %p13175_p13 = por %p13174_p12, %p13173_p11 }
  0x20   : > { %p13171_p10 = pneg %p13170_p9  ;;  %p13177_p2 = por %p13176_p1, %p13175_p13 }
  0x22   : > { %p13178_p4 = pnand %p13177_p2, %p13171_p10 }
  0x24   : > { %13181 = shalt.err (!%p13178_p4)
}
  0x25   : > { %s13182_s30 = scalar_lea.vmem %s13458_s10, 128  ;;  %s13361_s6 = smov [#allocation5]  }
  0x26   : > { %p13183_p5 = scmp.ne.s32.totalorder %s13458_s10, %s13182_s30  ;;  %s13187_s7 = sshll.u32 %s13361_s6, 4  ;;  %s13188_s7 = int_to_ptr.vmem [resolvable:$false] %s13187_s7 }
  0x27   : > { %s13189_s9 = scalar_lea.vmem %s13188_s7, 256  ;;  %p13190_p3 = scmp.lt.s32.totalorder %s13458_s10, %s13188_s7 }
  0x28   : > { %p13185_p7 = pnand %p13183_p5, %p13466_p8  ;;  %p13191_p0 = scmp.lt.s32.totalorder %s13189_s9, %s13182_s30 }
  0x2a   : > { %p13186_p9 = pneg %p13185_p7  ;;  %p13192_p11 = por %p13191_p0, %p13190_p3 }
  0x2c   : > { %p13193_p12 = pnand %p13192_p11, %p13186_p9 }
  0x2e   : > { %13196 = shalt.err (!%p13193_p12)
}
  0x2f   : > { %12989 = dma.hbm_to_vmem [thread:$0]  (!%p13443_p6), %s13453_s8, 128, %s13458_s10, %s13460_s12  }
  0x30   : > { %s247_s13 = scalar_lea.vmem [#allocation7], %s10770_s11  ;;  %s13495_s16 = sadd.s32 4294967295, %s13359_s21  }
  0x31   : > { %s254_s15 = sshll.u32 %s247_s13, 4  ;;  %s10762_s17 = sadd.s32 4294967294, %s13359_s21   ;;  %s13492_s15 = int_to_ptr.vmem [resolvable:$true] %s254_s15 }
  0x32   : > { %p45_p0 = scmp.ne.s32.totalorder %s13351_s19, %s13347_s18  ;;  %p14527_p3 = scmp.eq.s32.totalorder %s13495_s16, 0 }
  0x33   : > { %p168_p10 = scmp.eq.s32.totalorder %s13495_s16, 1  ;;  %p174_p13 = scmp.eq.s32.totalorder %s10762_s17, 1 }
  0x34   : > { %p13504_p1 = por %p14527_p3, %p45_p0  ;;  %p10763_p2 = scmp.ge.s32.totalorder %s13359_s21, 1 }
  0x35   : > { %p14546_p4 = scmp.ne.s32.totalorder %s13355_s20, %s13351_s19  ;;  %p13516_p7 = por %p174_p13, %p45_p0 }
  0x36   : > { %s14545_s8 = scalar_select %p13504_p1, 1, 0 }
  0x37   : > { %p13512_p5 = por %p168_p10, %p14546_p4  ;;  %p181_p9 = scmp.lt.s32.totalorder %s13359_s21, 3 }
  0x38   : > { %s14548_s11 = scalar_select %p13516_p7, 1, 0 }
  0x39   : > { %s14547_s10 = scalar_select %p13512_p5, 1, 0 }
  0x3a   : > { %14549 = sst [smem:[#allocation20_spill]] %s14548_s11  ;;  %p13521_p11 = pnand %p10763_p2, %p181_p9 }
  0x3b   : > { %s13362_s24 = smov [#allocation8]   ;;  %s13534_s9 = scalar_lea.hbm %s14515_s0, %s10767_s28 }
  0x3c   : > { %s14550_s23 = scalar_select %p13521_p11, 1, 0 }
  0x3d   : > { %s193_s30 = sshll.u32 %s13362_s24, 4  ;;  %p12979_p12 = pneg %p13521_p11  ;;  %s13525_s30 = int_to_ptr.vmem [resolvable:$true] %s193_s30 }
  0x3e   : > { %s211_s17 = scalar_lea.vmem [#allocation2], %s10766_s27  ;;  %s11045_s24 = sshll.u32 %s13359_s21, 8 }
  0x3f   : > { %p13538_p0 = pnand %p12979_p12, %p14527_p3  ;;  %s218_s1 = sshll.u32 %s211_s17, 4  ;;  %s13544_s1 = int_to_ptr.vmem [resolvable:$true] %s218_s1 }
  0x40   : > { %s13550_s22 = scalar_lea.hbm %s14517_s2, %s11045_s24  ;;  %s13197_s7 = scalar_lea.hbm %s14519_s4, 39168 }
  0x41   : > { %p13198_p10 = scmp.ne.s32.totalorder %s14519_s4, %s13197_s7  ;;  %p13199_p13 = pneg %p13538_p0 }
  0x42   : > { %p13204_p9 = scmp.lt.u32.totalorder %s13197_s7, %s14519_s4 }
  0x43   : > { %p13200_p2 = pnand %p13199_p13, %p13198_p10 }
  0x45   : > { %p13201_p4 = pneg %p13200_p2 }
  0x47   : > { %p13206_p12 = pnand %p13204_p9, %p13201_p4 }
  0x49   : > { %13209 = shalt.err (!%p13206_p12)
}
  0x4a   : > { %s13210_s20 = scalar_lea.vmem %s13525_s30, 39168  ;;  %p13218_p1 = scmp.lt.s32.totalorder %s13525_s30, %s13525_s30 }
  0x4b   : > { %p13211_p3 = scmp.ne.s32.totalorder %s13525_s30, %s13210_s20  ;;  %p13219_p11 = scmp.lt.s32.totalorder %s13210_s20, %s13210_s20 }
  0x4d   : > { %p13213_p7 = pnand %p13211_p3, %p13199_p13  ;;  %p13220_p6 = por %p13219_p11, %p13218_p1 }
  0x4f   : > { %p13214_p5 = pneg %p13213_p7 }
  0x51   : > { %p13221_p8 = pnand %p13220_p6, %p13214_p5 }
  0x53   : > { %13224 = shalt.err (!%p13221_p8)
}
  0x54   : > { %s13363_s18 = smov 128   ;;  %s13364_s25 = smov 8  }
  0x55   : > { %12982 = dma.hbm_to_vmem [thread:$0]  (!%p13538_p0), %s14519_s4, 39168, %s13525_s30, [#allocation9], %s13363_s18, %s13363_s18, %s13364_s25  }
  0x56   : > { %s208_s6 = scalar_lea.sflag [#allocation3], %s13439_s26  ;;  %s13225_s28 = scalar_lea.hbm %s13534_s9, 128 }
  0x57   : > { %p13226_p6 = scmp.ne.s32.totalorder %s13534_s9, %s13225_s28  ;;  %p14552_p8 = scmp.ne.s32.totalorder %s14544_s14, 0 }
  0x58   : > { %s13230_s17 = scalar_lea.hbm %s14515_s0, 256  ;;  %p13231_p5 = scmp.lt.u32.totalorder %s13534_s9, %s14515_s0 }
  0x59   : > { %p13228_p3 = pnand %p13226_p6, %p14552_p8  ;;  %p13232_p7 = scmp.lt.u32.totalorder %s13230_s17, %s13225_s28 }
  0x5a   : > { %p13234_p10 = scmp.lt.u32.totalorder %s13225_s28, %s13534_s9 }
  0x5b   : > { %p13229_p1 = pneg %p13228_p3  ;;  %p13233_p11 = por %p13232_p7, %p13231_p5 }
  0x5d   : > { %p13235_p13 = por %p13234_p10, %p13233_p11 }
  0x5f   : > { %p13236_p2 = pnand %p13235_p13, %p13229_p1 }
  0x61   : > { %13239 = shalt.err (!%p13236_p2)
}
  0x62   : > { %s13240_s26 = scalar_lea.vmem %s13544_s1, 128  ;;  %s13365_s30 = smov [#allocation2]  }
  0x63   : > { %p13241_p0 = scmp.ne.s32.totalorder %s13544_s1, %s13240_s26  ;;  %s13245_s13 = sshll.u32 %s13365_s30, 4  ;;  %s13246_s13 = int_to_ptr.vmem [resolvable:$false] %s13245_s13 }
  0x64   : > { %s13247_s21 = scalar_lea.vmem %s13246_s13, 256  ;;  %p13248_p12 = scmp.lt.s32.totalorder %s13544_s1, %s13246_s13 }
  0x65   : > { %p13243_p4 = pnand %p13241_p0, %p14552_p8  ;;  %p13249_p6 = scmp.lt.s32.totalorder %s13247_s21, %s13240_s26 }
  0x67   : > { %p13244_p9 = pneg %p13243_p4  ;;  %p13250_p3 = por %p13249_p6, %p13248_p12 }
  0x69   : > { %p13251_p5 = pnand %p13250_p3, %p13244_p9 }
  0x6b   : > { %13254 = shalt.err (!%p13251_p5)
}
  0x6c   : > { %p14553_p1 = scmp.ne.s32.totalorder %s14542_s29, 0  ;;  %s13255_s11 = scalar_lea.hbm %s13550_s22, 256 }
  0x6d   : > { %p13256_p7 = scmp.ne.s32.totalorder %s13550_s22, %s13255_s11  ;;  %s13260_s7 = scalar_lea.hbm %s14517_s2, 512 }
  0x6e   : > { %12986 = dma.hbm_to_vmem [thread:$0]  (!%p14553_p1), %s13534_s9, 128, %s13544_s1, %s208_s6  }
  0x6f   : > { %p13258_p11 = pnand %p13256_p7, %p14552_p8  ;;  %p13261_p13 = scmp.lt.u32.totalorder %s13550_s22, %s14517_s2 }
  0x70   : > { %p13262_p2 = scmp.lt.u32.totalorder %s13260_s7, %s13255_s11  ;;  %p13264_p4 = scmp.lt.u32.totalorder %s13255_s11, %s13550_s22 }
  0x71   : > { %p13259_p10 = pneg %p13258_p11 }
  0x72   : > { %p13263_p0 = por %p13262_p2, %p13261_p13 }
  0x74   : > { %p13265_p9 = por %p13264_p4, %p13263_p0 }
  0x76   : > { %p13266_p12 = pnand %p13265_p9, %p13259_p10 }
  0x78   : > { %13269 = shalt.err (!%p13266_p12)
}
  0x79   : > { %s13270_s1 = scalar_lea.vmem %s13492_s15, 256  ;;  %s13366_s9 = smov [#allocation7]  }
  0x7a   : > { %p13271_p6 = scmp.ne.s32.totalorder %s13492_s15, %s13270_s1  ;;  %s13275_s6 = sshll.u32 %s13366_s9, 4  ;;  %s13276_s6 = int_to_ptr.vmem [resolvable:$false] %s13275_s6 }
  0x7b   : > { %s13277_s20 = scalar_lea.vmem %s13276_s6, 512  ;;  %p13278_p7 = scmp.lt.s32.totalorder %s13492_s15, %s13276_s6 }
  0x7c   : > { %p13273_p3 = pnand %p13271_p6, %p14552_p8  ;;  %p13279_p11 = scmp.lt.s32.totalorder %s13277_s20, %s13270_s1 }
  0x7e   : > { %p13274_p5 = pneg %p13273_p3  ;;  %p13280_p13 = por %p13279_p11, %p13278_p7 }
  0x80   : > { %p13281_p2 = pnand %p13280_p13, %p13274_p5 }
  0x82   : > { %13284 = shalt.err (!%p13281_p2)
}
  0x83   : > { %12992 = dma.hbm_to_vmem [thread:$0]  (!%p14553_p1), %s13550_s22, 256, %s13492_s15, %s13460_s12, %s13363_s18, %s13363_s18, %s13364_s25  }
  0x84   : > { %p14554_p8 = scmp.ne.s32.totalorder %s14550_s23, 0 }
  0x85   : > { %s13626_s14 = sand.u32 (!%p14554_p8), 1, %s13351_s19   ;;  %p14555_p10 = scmp.ne.s32.totalorder (!%p14554_p8), %s14545_s8, 0 }
  0x86   : > { %274 = sbr.rel (%p14554_p8) target bundleno = 22360 (0x5758), region = 40  ;;  %s13629_s26 = sshll.u32 (!%p14554_p8), %s13626_s14, 3 }
  0x87   : > { %s277_s29 = scalar_lea.sflag (!%p14554_p8), [#allocation3], %s13626_s14  ;;  %s280_s30 = scalar_lea.vmem (!%p14554_p8), [#allocation2], %s13629_s26 }
  0x8d   : > { %13330 = dma.done.wait (%p14555_p10), %s277_s29, 128  }
  0x8e   : > { %13332 = vsyncadd (%p14555_p10), %s277_s29, 4294967168  ;;  %s285_s22 = sand.u32 1, %s13495_s16   ;;  %s289_s15 = scalar_lea.vmem [#allocation5], %s13629_s26 }
  0x8f   : > { %s286_s12 = scalar_lea.sflag [#allocation6], %s285_s22 }
  0x90   : > { %13334 = dma.done.wait (%p14555_p10), %s286_s12, 384  }
  0x91   : > { %13336 = vsyncadd (%p14555_p10), %s286_s12, 4294966912  ;;  %s10776_s23 = sshll.u32 %s13626_s14, 4  ;;  %p14556_p1 = scmp.eq.s32.totalorder %s13495_s16, 0 }
  0x92   : > { %s13644_s18 = scalar_lea.vmem [#allocation7], %s10776_s23 }
  0x93   : > { %13338 = dma.done.wait (%p14556_p1), [#allocation9], 39168   ;;  %p14557_p0 = pmov %p14556_p1 }
  0x94   : > { %vm357_vm0 = vcmask 261120   ;;  %v350_v0 = vld [vmem:[%s289_s15] sm:$0xff]  ;;  %v13652_v1 = vld [vmem:[%s280_s30] sm:$0xff]  ;;  %v13367_v17 = vmov 0.0|0.0   ;;  %vm13368_vm1 = vmmov 0   ;;  %v13369_v27 = vmov 0.0  }
  0x95   : > { %13340 = vsyncadd (%p14557_p0), [#allocation9], 4294928128  ;;  %v384_v2 = vsel %vm357_vm0, %v350_v0, 0.0  ;;  %v358_v3 = vsel %vm357_vm0, %v13652_v1, 0.0  ;;  %v497_v14 = vld [vmem:[#allocation8 + $0x60] sm:$0xff]  ;;  %v498_v15 = vld [vmem:[#allocation8 + $0x68] sm:$0xff]  ;;  %12513 = vmatprep.subr.bf16.mxu1 %v13367_v17  ;;  %11528 = vmatprep.mubr.msk.f32.mxu1 %vm13368_vm1, %v13369_v27 }
  0x96   : > { %385 = vadd.xlane.f32.xlu0 %v384_v2  ;;  %v12514_v16 = vpack.c.bf16 %v498_v15, %v497_v14  ;;  %v407_v18 = vld [vmem:[#allocation8 + $0x40] sm:$0xff]  ;;  %v408_v19 = vld [vmem:[#allocation8 + $0x48] sm:$0xff]  ;;  %v499_v21 = vld [vmem:[#allocation8 + $0x70] sm:$0xff]  ;;  %vm656_vm2 = vcmask 64512   ;;  %p344_p4 = scmp.lt.s32.totalorder %s13495_s16, 1  ;;  %vm3652_vm4 = vcmask 130048  }
  0x97   : > { %v12505_v20 = vpack.c.bf16 %v408_v19, %v407_v18  ;;  %v500_v22 = vld [vmem:[#allocation8 + $0x78] sm:$0xff]  ;;  %v409_v24 = vld [vmem:[#allocation8 + $0x50] sm:$0xff]  ;;  %v10781_v40 = vld [vmem:[#allocation8] ss:$0 sm:$0xff]  ;;  %vm6370_vm5 = vcmask 523264   ;;  %s11042_s24 = sshll.u32 %s13495_s16, 7 }
  0x98   : > { %12515 = vmatpush3.bf16.msra.mxu1 %v12514_v16  ;;  %v12517_v23 = vpack.c.bf16 %v500_v22, %v499_v21  ;;  %v410_v25 = vld [vmem:[#allocation8 + $0x58] sm:$0xff]  ;;  %v10783_v35 = vld [vmem:[#allocation8 + $0x10] ss:$0 sm:$0xff]  ;;  %v10782_v43 = vld [vmem:[#allocation8 + $0x8] ss:$0 sm:$0xff]  ;;  %s345_s8 = scalar_select %p344_p4, %s13495_s16, 1 }
  0x99   : > { %12516 = vmatprep.subr.bf16.mxu1 %v13367_v17  ;;  %12506 = vmatprep.subr.bf16.mxu0 %v12505_v20  ;;  %v12509_v26 = vpack.c.bf16 %v410_v25, %v409_v24  ;;  %v10784_v37 = vld [vmem:[#allocation8 + $0x18] ss:$0 sm:$0xff]  ;;  %v576_v44 = vld [vmem:[#allocation8 + $0x80] sm:$0xff]  ;;  %v577_v45 = vld [vmem:[#allocation8 + $0x88] sm:$0xff]  ;;  %s343_s28 = scalar_lea.vmem [#allocation10], %s13629_s26  ;;  %s14470_s1 = scalar_lea.hbm %s14520_s5, %s11042_s24 }
  0x9a   : > { %359 = vadd.xlane.f32.xlu0 %v358_v3  ;;  %12508 = vmatpush3.bf16.msra.mxu0 %v12505_v20  ;;  %v12520_v48 = vpack.c.bf16 %v577_v45, %v576_v44  ;;  %v578_v49 = vld [vmem:[#allocation8 + $0x90] sm:$0xff]  ;;  %v579_v50 = vld [vmem:[#allocation8 + $0x98] sm:$0xff]  ;;  %v10785_v56 = vld [vmem:[#allocation8 + $0xa8] ss:$0 sm:$0xff]  ;;  %s11046_s25 = sshll.u32 %s345_s8, 4  ;;  %s10627_s7 = sshll.u32 %s343_s28, 4  ;;  %s14472_s7 = int_to_ptr.vmem [resolvable:$true] %s10627_s7 }
  0x9b   : > { %12510 = vmatprep.subr.bf16.mxu0 %v12509_v26  ;;  %v12523_v51 = vpack.c.bf16 %v579_v50, %v578_v49  ;;  %v10788_v52 = vld [vmem:[#allocation8 + $0xb0] ss:$0 sm:$0xff]  ;;  %v978_v57 = vld [vmem:[#allocation8 + $0xc0] sm:$0xff]  ;;  %v979_v58 = vld [vmem:[#allocation8 + $0xc8] sm:$0xff]  ;;  %s13715_s11 = scalar_lea.vmem %s14518_s3, %s11046_s25  ;;  %s10614_s9 = scalar_lea.sflag [#allocation4], %s13626_s14 }
  0x9c   : > { %12518 = vmatpush3.bf16.msra.mxu1 %v12517_v23  ;;  %v12525_v62 = vpack.c.bf16 %v979_v58, %v978_v57  ;;  %v980_v63 = vld [vmem:[#allocation8 + $0xd0] sm:$0xff]  ;;  %v10790_v3 = vld [vmem:[#allocation8 + $0xb8] ss:$0 sm:$0xff]  ;;  %v13718_v15 = vld [vmem:[%s13715_s11] sm:$0xff]  ;;  %s13285_s6 = scalar_lea.vmem %s14472_s7, 128  ;;  %p14560_p12 = scmp.ne.s32.totalorder %s14547_s10, 0 }
  0x9d   : > { %11547 = vmatprep.subr.mxu1 %v13369_v27  ;;  %v13722_v21 = vld [vmem:[%s13715_s11 + $0x8] sm:$0xff]  ;;  %v1062_v50 = vld [vmem:[#allocation8 + $0xe0] sm:$0xff]  ;;  %vm13931_vm3 = vmpackc.low %vm656_vm2, %vm656_vm2  ;;  %p13286_p9 = scmp.ne.s32.totalorder %s14472_s7, %s13285_s6  ;;  %s13370_s16 = smov [#allocation10]  }
  0x9e   : > { %12512 = vmatpush3.bf16.msra.mxu0 %v12509_v26  ;;  %s13289_s20 = sshll.u32 %s13370_s16, 4  ;;  %s13290_s20 = int_to_ptr.vmem [resolvable:$false] %s13289_s20 }
  0x9f   : > { %12519 = vmatprep.subr.bf16.mxu0 %v13367_v17  ;;  %p13287_p6 = pnand %p13286_p9, %p14560_p12  ;;  %s13291_s26 = scalar_lea.vmem %s13290_s20, 256 }
  0xa0   : > { %p13292_p5 = scmp.lt.s32.totalorder %s14472_s7, %s13290_s20  ;;  %p13293_p7 = scmp.lt.s32.totalorder %s13291_s26, %s13285_s6 }
  0xa1   : > { %p13288_p3 = pneg %p13287_p6 }
  0xa2   : > { %p13294_p11 = por %p13293_p7, %p13292_p5 }
  0xa4   : > { %p13295_p13 = pnand %p13294_p11, %p13288_p3 }
 0x123   : > { %v386_v4 = vpop.xlane.xlu0 %385 }
 0x124   : > { %v387_v5 = vmul.f32 0.03125, %v386_v4 }
 0x126   : > { %v388_v6 = vsub.f32 %v350_v0, %v387_v5  ;;  %v981_v0 = vld [vmem:[#allocation8 + $0xd8] sm:$0xff] }
 0x127   : > { %v360_v7 = vpop.xlane.xlu0 %359  ;;  %v12529_v4 = vpack.c.bf16 %v981_v0, %v980_v63 }
 0x128   : > { %v362_v8 = vmul.f32 0.03125, %v360_v7  ;;  %v389_v9 = vmul.f32 %v388_v6, %v388_v6 }
 0x12a   : > { %v363_v10 = vsub.f32 %v13652_v1, %v362_v8  ;;  %v390_v11 = vsel %vm357_vm0, %v389_v9, 0.0  ;;  %v1141_v8 = vld [vmem:[#allocation8 + $0x100] sm:$0xff]  ;;  %v1142_v9 = vld [vmem:[#allocation8 + $0x108] sm:$0xff] }
 0x12b   : > { %391 = vadd.xlane.f32.xlu1 %v390_v11  ;;  %v1143_v11 = vld [vmem:[#allocation8 + $0x110] sm:$0xff] }
 0x12c   : > { %v364_v12 = vmul.f32 %v363_v10, %v363_v10 }
 0x12e   : > { %v365_v13 = vsel %vm357_vm0, %v364_v12, 0.0  ;;  %v1144_v12 = vld [vmem:[#allocation8 + $0x118] sm:$0xff] }
 0x12f   : > { %366 = vadd.xlane.f32.xlu1 %v365_v13  ;;  %v12543_v13 = vpack.c.bf16 %v1144_v12, %v1143_v11 }
 0x1b8   : > { %v392_v28 = vpop.xlane.xlu1 %391 }
 0x1b9   : > { %v393_v29 = vmul.f32 0.03125, %v392_v28  ;;  %v10798_v28 = vld [vmem:[#allocation8 + $0x128] ss:$0 sm:$0xff] }
 0x1bb   : > { %v394_v30 = vadd.f32 1e-05, %v393_v29 }
 0x1bc   : > { %v367_v31 = vpop.xlane.xlu1 %366 }
 0x1bd   : > { %13039 = vrsqrt.f32 %v394_v30  ;;  %v368_v32 = vmul.f32 0.03125, %v367_v31 }
 0x1bf   : > { %v369_v33 = vadd.f32 1e-05, %v368_v32 }
 0x1c1   : > { %13041 = vrsqrt.f32 %v369_v33 }
 0x1c7   : > { %v13040_v34 = vpop.eup %13039 }
 0x1c8   : > { %v396_v36 = vmul.f32 %v13040_v34, %v388_v6 }
 0x1ca   : > { %v401_v38 = vmul.f32 %v10783_v35, %v396_v36 }
 0x1cb   : > { %v13042_v39 = vpop.eup %13041 }
 0x1cc   : > { %v13666_v41 = vadd.f32 %v10784_v37, %v401_v38  ;;  %v371_v42 = vmul.f32 %v13042_v39, %v363_v10  ;;  %v12540_v10 = vpack.c.bf16 %v1142_v9, %v1141_v8 }
 0x1ce   : > { %11529 = vmatmul.mubr.msk.f32.vlgmr.msra.gmra.mrb[0].mxu1 %vm357_vm0, %v13666_v41  ;;  %v376_v46 = vmul.f32 %v10781_v40, %v371_v42 }
 0x1cf   : > { %11549 = vmatprep.mubr.msk.f32.mxu1 %vm13368_vm1, %v13369_v27 }
 0x1d0   : > { %v13672_v47 = vadd.f32 %v10782_v43, %v376_v46 }
 0x1d2   : > { %11517 = vmatprep.mubr.msk.f32.mxu0 %vm357_vm0, %v13672_v47 }
 0x1d3   : > { %11518 = vmatmul.mubr.msk.f32.vlgmr.msra.gmra.mrb[0].mxu0 %vm357_vm0, %v13666_v41 }
 0x1d4   : > { %12521 = vmatpush3.bf16.msra.mxu0 %v12520_v48  ;;  %11539 = vmatprep.mubr.msk.f32.mxu0 %vm13368_vm1, %v13369_v27 }
 0x1d5   : > { %12522 = vmatprep.subr.bf16.mxu0 %v13367_v17 }
 0x1d8   : > { %12524 = vmatpush3.bf16.msra.mxu0 %v12523_v51  ;;  %v1063_v51 = vld [vmem:[#allocation8 + $0xe8] sm:$0xff] }
 0x1d9   : > { %11542 = vmatprep.subr.mxu0 %v13369_v27 }
 0x1db   : > { %11540 = vmatmul.mubr.msk.f32.vlgmr.msra.gmra.mrb[2].mxu0 %vm357_vm0, %v13666_v41 }
 0x1dc   : > { %11544 = vmatprep.mubr.msk.f32.mxu0 %vm13368_vm1, %v13369_v27 }
 0x2a1   : > { %v572_v53 = vpop.f32.mrb[0].mxu1 }
 0x2a2   : > { %v573_v54 = vadd.f32 %v10788_v52, %v572_v53  ;;  %v11530_v55 = vpop.f32.mrb[1].mxu1  ;;  %v12534_v53 = vpack.c.bf16 %v1063_v51, %v1062_v50  ;;  %v1920_v50 = vld [vmem:[#allocation8 + $0x170] sm:$0xff]  ;;  %v1921_v51 = vld [vmem:[#allocation8 + $0x178] sm:$0xff] }
 0x2a3   : > { %v1064_v55 = vld [vmem:[#allocation8 + $0xf0] sm:$0xff] }
 0x2a4   : > { %11543 = vmatpush3.xpose.msk.msra.mxu0 %vm656_vm2, %v573_v54 }
 0x2a5   : > { %11552 = vmatprep.subr.mxu0 %v13369_v27 }
 0x2a6   : > { %v11519_v59 = vpop.f32.mrb[0].mxu0 }
 0x2a7   : > { %v488_v60 = vpop.f32.mrb[1].mxu0  ;;  %v494_v2 = vadd.f32 %v11519_v59, %v10785_v56 }
 0x2a8   : > { %v489_v61 = vadd.f32 %v10785_v56, %v488_v60  ;;  %v1065_v56 = vld [vmem:[#allocation8 + $0xf8] sm:$0xff] }
 0x2a9   : > { %v12537_v57 = vpack.c.bf16 %v1065_v56, %v1064_v55  ;;  %v1836_v56 = vld [vmem:[#allocation8 + $0x150] sm:$0xff] }
 0x2aa   : > { %11545 = vmatmul.mubr.msk.f32.vlgmr.msra.gmra.mrb[4].mxu0 %vm656_vm2, %v489_v61 }
 0x2ab   : > { %11553 = vmatpush3.xpose.msk.msra.mxu0 %vm656_vm2, %v573_v54  ;;  %11554 = vmatprep.mubr.msk.f32.mxu0 %vm13368_vm1, %v13369_v27 }
 0x2ac   : > { %12526 = vmatprep.subr.bf16.mxu0 %v12525_v62 }
 0x2ae   : > { %v651_v5 = vpop.f32.mrb[2].mxu0  ;;  %11555 = vmatmul.mubr.msk.f32.vlgmr.msra.gmra.mrb[6].mxu0 %vm656_vm2, %v494_v2 }
 0x2af   : > { %v13693_v6 = vadd.f32 %v10790_v3, %v651_v5  ;;  %v11541_v7 = vpop.f32.mrb[3].mxu0  ;;  %12528 = vmatpush3.bf16.msra.mxu0 %v12525_v62  ;;  %11570 = vmatprep.mubr.msk.f32.mxu0 %vm357_vm0, %v13672_v47  ;;  %v10801_v62 = vld [vmem:[#allocation8 + $0x130] ss:$0 sm:$0xff]  ;;  %v10803_v3 = vld [vmem:[#allocation8 + $0x138] ss:$0 sm:$0xff] }
 0x2b0   : > { %12530 = vmatprep.subr.bf16.mxu0 %v12529_v4 }
 0x2b1   : > { %11548 = vmatpush3.msra.mxu1 %v13693_v6 }
 0x2b2   : > { %11557 = vmatprep.subr.mxu1 %v13369_v27 }
 0x2b3   : > { %12532 = vmatpush3.bf16.msra.mxu0 %v12529_v4 }
 0x2b4   : > { %12539 = vmatprep.subr.bf16.mxu0 %v13367_v17 }
 0x2b6   : > { %11571 = vmatmul.mubr.msk.f32.vlgmr.msra.gmra.mrb[8].mxu0 %vm357_vm0, %v13666_v41 }
 0x2b7   : > { %12541 = vmatpush3.bf16.msra.mxu0 %v12540_v10  ;;  %11592 = vmatprep.mubr.msk.f32.mxu0 %vm13368_vm1, %v13369_v27 }
 0x2b8   : > { %12542 = vmatprep.subr.bf16.mxu0 %v13367_v17 }
 0x2bb   : > { %12544 = vmatpush3.bf16.msra.mxu0 %v12543_v13 }
 0x2bc   : > { %11605 = vmatprep.subr.mxu0 %v13369_v27 }
 0x2be   : > { %11593 = vmatmul.mubr.msk.f32.vlgmr.msra.gmra.mrb[10].mxu0 %vm357_vm0, %v13666_v41 }
 0x2bf   : > { %11607 = vmatprep.mubr.msk.f32.mxu0 %vm13368_vm1, %v13369_v27 }
 0x37d   : > { %v729_v14 = vpop.f32.mrb[4].mxu0 }
 0x37e   : > { %v733_v16 = vmul.f32 0.35355338, %v729_v14  ;;  %v11546_v18 = vpop.f32.mrb[5].mxu0 }
 0x37f   : > { %v1220_v18 = vld [vmem:[#allocation8 + $0x120] sm:$0xff] }
 0x380   : > { %v734_v19 = vadd.f32 %v733_v16, %v13718_v15  ;;  %11606 = vmatpush3.msra.mxu0 %v1220_v18 }
 0x381   : > { %v888_v20 = vpop.f32.mrb[6].mxu0  ;;  %11615 = vmatprep.subr.mxu0 %v13369_v27 }
 0x382   : > { %v892_v22 = vmul.f32 0.35355338, %v888_v20  ;;  %v11556_v23 = vpop.f32.mrb[7].mxu0  ;;  %v735_v24 = vsel %vm656_vm2, %v734_v19, -inf }
 0x383   : > { %736 = vmax.xlane.f32.xlu0 %v735_v24  ;;  %v655_v23 = vld [vmem:[#allocation8 + $0xa0] sm:$0xff] }
 0x384   : > { %v893_v25 = vadd.f32 %v892_v22, %v13722_v21 }
 0x386   : > { %v894_v26 = vsel %vm656_vm2, %v893_v25, -inf }
 0x387   : > { %895 = vmax.xlane.f32.xlu1 %v894_v26 }
 0x389   : > { %v11572_v29 = vpop.f32.mrb[8].mxu0 }
 0x38a   : > { %v13727_v30 = vadd.f32 %v11572_v29, %v10798_v28  ;;  %v1053_v31 = vpop.f32.mrb[9].mxu0 }
 0x38b   : > { %v1054_v4 = vadd.f32 %v10798_v28, %v1053_v31 }
 0x391   : > { %v1216_v32 = vpop.f32.mrb[10].mxu0 }
 0x392   : > { %v11594_v33 = vpop.f32.mrb[11].mxu0  ;;  %v1217_v5 = vadd.f32 %v10803_v3, %v1216_v32  ;;  %v1999_v3 = vld [vmem:[#allocation8 + $0x190] sm:$0xff] }
 0x410   : > { %v737_v34 = vpop.xlane.xlu0 %736 }
 0x411   : > { %v738_v35 = vsub.f32 %v734_v19, %v737_v34 }
 0x413   : > { %v739_v36 = vmul.f32 1.442695, %v738_v35 }
 0x414   : > { %v896_v37 = vpop.xlane.xlu1 %895 }
 0x415   : > { %13043 = vpow2.f32 %v739_v36  ;;  %v897_v38 = vsub.f32 %v893_v25, %v896_v37 }
 0x417   : > { %v898_v39 = vmul.f32 1.442695, %v897_v38 }
 0x419   : > { %13045 = vpow2.f32 %v898_v39 }
 0x41f   : > { %v13044_v40 = vpop.eup %13043 }
 0x420   : > { %v741_v42 = vsel %vm656_vm2, %v13044_v40, 0.0 }
 0x421   : > { %742 = vadd.xlane.f32.xlu0 %v741_v42 }
 0x423   : > { %v13046_v43 = vpop.eup %13045 }
 0x424   : > { %v900_v44 = vsel %vm656_vm2, %v13046_v43, 0.0 }
 0x425   : > { %901 = vadd.xlane.f32.xlu1 %v900_v44 }
 0x4ae   : > { %v743_v45 = vpop.xlane.xlu0 %742 }
 0x4af   : > { %13047 = vrcp.f32 %v743_v45 }
 0x4b2   : > { %v902_v46 = vpop.xlane.xlu1 %901 }
 0x4b3   : > { %13049 = vrcp.f32 %v902_v46  ;;  %v1918_v46 = vld [vmem:[#allocation8 + $0x160] sm:$0xff] }
 0x4b9   : > { %v13048_v48 = vpop.eup %13047 }
 0x4ba   : > { %v745_v49 = vmul.f32 %v13048_v48, %v13044_v40  ;;  %v1919_v48 = vld [vmem:[#allocation8 + $0x168] sm:$0xff] }
 0x4bc   : > { %11550 = vmatmul.mubr.msk.f32.vlgmr.msra.gmra.mrb[2].mxu1 %vm656_vm2, %v745_v49  ;;  %v12554_v49 = vpack.c.bf16 %v1919_v48, %v1918_v46 }
 0x4bd   : > { %v13050_v52 = vpop.eup %13049  ;;  %11558 = vmatpush3.msra.mxu1 %v13693_v6  ;;  %11559 = vmatprep.mubr.msk.f32.mxu1 %vm13368_vm1, %v13369_v27 }
 0x4be   : > { %v904_v54 = vmul.f32 %v13050_v52, %v13046_v43  ;;  %12533 = vmatprep.subr.bf16.mxu1 %v13367_v17  ;;  %v12557_v52 = vpack.c.bf16 %v1921_v51, %v1920_v50 }
 0x4c0   : > { %11560 = vmatmul.mubr.msk.f32.vlgmr.msra.gmra.mrb[4].mxu1 %vm656_vm2, %v904_v54  ;;  %v1835_v54 = vld [vmem:[#allocation8 + $0x148] sm:$0xff] }
 0x4c1   : > { %12535 = vmatpush3.bf16.msra.mxu1 %v12534_v53  ;;  %11581 = vmatprep.mubr.msk.f32.mxu1 %vm13368_vm1, %v13369_v27  ;;  %v1834_v53 = vld [vmem:[#allocation8 + $0x140] sm:$0xff] }
 0x4c2   : > { %12536 = vmatprep.subr.bf16.mxu1 %v13367_v17  ;;  %v12545_v55 = vpack.c.bf16 %v1835_v54, %v1834_v53 }
 0x4c5   : > { %12538 = vmatpush3.bf16.msra.mxu1 %v12537_v57  ;;  %v1837_v57 = vld [vmem:[#allocation8 + $0x158] sm:$0xff] }
 0x4c6   : > { %11595 = vmatprep.subr.mxu1 %v13369_v27 }
 0x4c8   : > { %11582 = vmatmul.mubr.msk.f32.vlgmr.msra.gmra.mrb[6].mxu1 %vm357_vm0, %v13666_v41 }
 0x4c9   : > { %11597 = vmatprep.mubr.msk.f32.mxu1 %vm13368_vm1, %v13369_v27 }
 0x58f   : > { %v815_v58 = vpop.f32.mrb[2].mxu1 }
 0x590   : > { %v11551_v59 = vpop.f32.mrb[3].mxu1 }
 0x593   : > { %v13745_v60 = vpop.f32.mrb[4].mxu1 }
 0x594   : > { %v11561_v61 = vpop.f32.mrb[5].mxu1 }
 0x595   : > { %v1997_v61 = vld [vmem:[#allocation8 + $0x180] sm:$0xff] }
 0x59b   : > { %v1137_v63 = vpop.f32.mrb[6].mxu1 }
 0x59c   : > { %v1138_v0 = vadd.f32 %v10801_v62, %v1137_v63  ;;  %v11583_v2 = vpop.f32.mrb[7].mxu1  ;;  %v1998_v62 = vld [vmem:[#allocation8 + $0x188] sm:$0xff] }
 0x59d   : > { %v12560_v2 = vpack.c.bf16 %v1998_v62, %v1997_v61  ;;  %v2548_v62 = vld [vmem:[#allocation8 + $0x1d0] sm:$0xff] }
 0x59e   : > { %11596 = vmatpush3.xpose.msk.msra.mxu1 %vm656_vm2, %v1138_v0 }
 0x59f   : > { %11600 = vmatprep.subr.mxu1 %v13369_v27 }
 0x5a1   : > { %11598 = vmatmul.mubr.msk.f32.vlgmr.msra.gmra.mrb[8].mxu1 %vm656_vm2, %v1054_v4  ;;  %v2000_v4 = vld [vmem:[#allocation8 + $0x198] sm:$0xff] }
 0x5a2   : > { %11601 = vmatpush3.msra.mxu1 %v1217_v5  ;;  %11602 = vmatprep.mubr.msk.f32.mxu1 %vm13368_vm1, %v13369_v27 }
 0x5a3   : > { %11610 = vmatprep.subr.mxu1 %v13369_v27 }
 0x674   : > { %v1293_v6 = vpop.f32.mrb[8].mxu1 }
 0x675   : > { %v1297_v7 = vmul.f32 0.35355338, %v1293_v6  ;;  %v11599_v8 = vpop.f32.mrb[9].mxu1  ;;  %v12563_v6 = vpack.c.bf16 %v2000_v4, %v1999_v3  ;;  %v2709_v4 = vld [vmem:[#allocation8 + $0x200] sm:$0xff] }
 0x677   : > { %v1298_v9 = vadd.f32 %v1297_v7, %v13718_v15 }
 0x679   : > { %v1299_v10 = vsel %vm656_vm2, %v1298_v9, -inf }
 0x67a   : > { %1300 = vmax.xlane.f32.xlu0 %v1299_v10 }
 0x707   : > { %v1301_v11 = vpop.xlane.xlu0 %1300 }
 0x708   : > { %v1302_v12 = vsub.f32 %v1298_v9, %v1301_v11 }
 0x70a   : > { %v1303_v13 = vmul.f32 1.442695, %v1302_v12 }
 0x70c   : > { %13051 = vpow2.f32 %v1303_v13  ;;  %v10815_v13 = vld [vmem:[#allocation8 + $0x1a8] ss:$0 sm:$0xff] }
 0x716   : > { %v13052_v14 = vpop.eup %13051 }
 0x717   : > { %v1305_v16 = vsel %vm656_vm2, %v13052_v14, 0.0 }
 0x718   : > { %1306 = vadd.xlane.f32.xlu1 %v1305_v16 }
 0x7a5   : > { %v1307_v19 = vpop.xlane.xlu1 %1306 }
 0x7a6   : > { %13053 = vrcp.f32 %v1307_v19 }
 0x7b0   : > { %v13054_v20 = vpop.eup %13053 }
 0x7b1   : > { %v1309_v22 = vmul.f32 %v13054_v20, %v13052_v14  ;;  %v10820_v20 = vld [vmem:[#allocation8 + $0x1b8] ss:$0 sm:$0xff] }
 0x7b3   : > { %11603 = vmatmul.mubr.msk.f32.vlgmr.msra.gmra.mrb[10].mxu1 %vm656_vm2, %v1309_v22 }
 0x7b4   : > { %11611 = vmatpush3.msra.mxu1 %v655_v23  ;;  %11612 = vmatprep.mubr.msk.f32.mxu1 %vm13368_vm1, %v13369_v27 }
 0x7b5   : > { %11620 = vmatprep.subr.mxu1 %v13369_v27 }
 0x7b7   : > { %11613 = vmatmul.mubr.msk.f32.vlgmr.msra.gmra.mrb[12].mxu1 %vm656_vm2, %v815_v58  ;;  %v12549_v58 = vpack.c.bf16 %v1837_v57, %v1836_v56  ;;  %v2547_v56 = vld [vmem:[#allocation8 + $0x1c8] sm:$0xff] }
 0x7b8   : > { %11621 = vmatpush3.msra.mxu1 %v1217_v5  ;;  %11622 = vmatprep.mubr.msk.f32.mxu1 %vm13368_vm1, %v13369_v27  ;;  %v10818_v5 = vld [vmem:[#allocation8 + $0x1b0] ss:$0 sm:$0xff] }
 0x7b9   : > { %11630 = vmatprep.subr.mxu1 %v13369_v27 }
 0x886   : > { %v1379_v24 = vpop.f32.mrb[10].mxu1 }
 0x887   : > { %v11604_v25 = vpop.f32.mrb[11].mxu1  ;;  %11608 = vmatmul.mubr.msk.f32.vlgmr.msra.gmra.mrb[12].mxu0 %vm656_vm2, %v1379_v24 }
 0x888   : > { %11616 = vmatpush3.xpose.msk.msra.mxu0 %vm656_vm2, %v1138_v0  ;;  %11617 = vmatprep.mubr.msk.f32.mxu0 %vm13368_vm1, %v13369_v27 }
 0x889   : > { %11625 = vmatprep.subr.mxu0 %v13369_v27 }
 0x88a   : > { %v1525_v26 = vpop.f32.mrb[12].mxu1 }
 0x88b   : > { %v11614_v28 = vpop.f32.mrb[13].mxu1  ;;  %11618 = vmatmul.mubr.msk.f32.vlgmr.msra.gmra.mrb[14].mxu0 %vm656_vm2, %v13727_v30 }
 0x88c   : > { %11626 = vmatpush3.msra.mxu0 %v1220_v18  ;;  %11627 = vmatprep.mubr.msk.f32.mxu0 %vm13368_vm1, %v13369_v27 }
 0x88d   : > { %12546 = vmatprep.subr.bf16.mxu0 %v12545_v55 }
 0x95a   : > { %v1452_v29 = vpop.f32.mrb[12].mxu0 }
 0x95b   : > { %v13774_v31 = vadd.f32 %v1525_v26, %v1452_v29  ;;  %v11609_v32 = vpop.f32.mrb[13].mxu0 }
 0x95e   : > { %v1598_v33 = vpop.f32.mrb[14].mxu0 }
 0x95f   : > { %v1602_v34 = vmul.f32 0.35355338, %v1598_v33  ;;  %v11619_v35 = vpop.f32.mrb[15].mxu0 }
 0x961   : > { %v1603_v36 = vadd.f32 %v1602_v34, %v13722_v21 }
 0x963   : > { %v1604_v37 = vsel %vm656_vm2, %v1603_v36, -inf }
 0x964   : > { %1605 = vmax.xlane.f32.xlu0 %v1604_v37 }
 0x9f1   : > { %v1606_v38 = vpop.xlane.xlu0 %1605 }
 0x9f2   : > { %v1607_v39 = vsub.f32 %v1603_v36, %v1606_v38  ;;  %v2076_v38 = vld [vmem:[#allocation8 + $0x1a0] sm:$0xff] }
 0x9f4   : > { %v1608_v40 = vmul.f32 1.442695, %v1607_v39 }
 0x9f6   : > { %13055 = vpow2.f32 %v1608_v40 }
 0xa00   : > { %v13056_v30 = vpop.eup %13055 }
 0xa01   : > { %v1610_v42 = vsel %vm656_vm2, %v13056_v30, 0.0 }
 0xa02   : > { %1611 = vadd.xlane.f32.xlu1 %v1610_v42 }
 0xa8f   : > { %v1612_v43 = vpop.xlane.xlu1 %1611 }
 0xa90   : > { %13057 = vrcp.f32 %v1612_v43 }
 0xa9a   : > { %v13058_v44 = vpop.eup %13057 }
 0xa9b   : > { %v1614_v45 = vmul.f32 %v13058_v44, %v13056_v30 }
 0xa9d   : > { %11623 = vmatmul.mubr.msk.f32.vlgmr.msra.gmra.mrb[14].mxu1 %vm656_vm2, %v1614_v45 }
 0xa9e   : > { %11631 = vmatpush3.msra.mxu1 %v655_v23  ;;  %11632 = vmatprep.mubr.msk.f32.mxu1 %vm13368_vm1, %v13369_v27 }
 0xa9f   : > { %12553 = vmatprep.subr.bf16.mxu1 %v13367_v17 }
 0xaa1   : > { %11633 = vmatmul.mubr.msk.f32.vlgmr.msra.gmra.mrb[16].mxu1 %vm656_vm2, %v13745_v60 }
 0xaa2   : > { %12555 = vmatpush3.bf16.msra.mxu1 %v12554_v49  ;;  %11654 = vmatprep.mubr.msk.f32.mxu1 %vm13368_vm1, %v13369_v27 }
 0xaa3   : > { %12556 = vmatprep.subr.bf16.mxu1 %v13367_v17 }
 0xaa6   : > { %12558 = vmatpush3.bf16.msra.mxu1 %v12557_v52 }
 0xaa7   : > { %11668 = vmatprep.subr.mxu1 %v13369_v27 }
 0xaa9   : > { %11655 = vmatmul.mubr.msk.f32.vlgmr.msra.gmra.mrb[18].mxu1 %vm357_vm0, %v13666_v41 }
 0xaaa   : > { %11670 = vmatprep.mubr.msk.f32.mxu1 %vm13368_vm1, %v13369_v27 }
 0xb70   : > { %v1684_v59 = vpop.f32.mrb[14].mxu1 }
 0xb71   : > { %v11624_v60 = vpop.f32.mrb[15].mxu1  ;;  %11628 = vmatmul.mubr.msk.f32.vlgmr.msra.gmra.mrb[16].mxu0 %vm656_vm2, %v1684_v59 }
 0xb72   : > { %12548 = vmatpush3.bf16.msra.mxu0 %v12545_v55  ;;  %11643 = vmatprep.mubr.msk.f32.mxu0 %vm357_vm0, %v13672_v47  ;;  %v2546_v55 = vld [vmem:[#allocation8 + $0x1c0] sm:$0xff] }
 0xb73   : > { %12550 = vmatprep.subr.bf16.mxu0 %v12549_v58  ;;  %v12565_v57 = vpack.c.bf16 %v2547_v56, %v2546_v55 }
 0xb74   : > { %v1830_v63 = vpop.f32.mrb[16].mxu1 }
 0xb75   : > { %v11634_v0 = vpop.f32.mrb[17].mxu1 }
 0xb76   : > { %12552 = vmatpush3.bf16.msra.mxu0 %v12549_v58 }
 0xb77   : > { %12559 = vmatprep.subr.bf16.mxu0 %v13367_v17 }
 0xb79   : > { %11644 = vmatmul.mubr.msk.f32.vlgmr.msra.gmra.mrb[18].mxu0 %vm357_vm0, %v13666_v41 }
 0xb7a   : > { %12561 = vmatpush3.bf16.msra.mxu0 %v12560_v2  ;;  %11665 = vmatprep.mubr.msk.f32.mxu0 %vm13368_vm1, %v13369_v27 }
 0xb7b   : > { %12562 = vmatprep.subr.bf16.mxu0 %v13367_v17 }
 0xb7c   : > { %v1993_v7 = vpop.f32.mrb[18].mxu1 }
 0xb7d   : > { %v1994_v8 = vadd.f32 %v10818_v5, %v1993_v7  ;;  %v11656_v9 = vpop.f32.mrb[19].mxu1  ;;  %v2710_v5 = vld [vmem:[#allocation8 + $0x208] sm:$0xff]  ;;  %v2712_v7 = vld [vmem:[#allocation8 + $0x218] sm:$0xff] }
 0xb7e   : > { %12564 = vmatpush3.bf16.msra.mxu0 %v12563_v6  ;;  %v2711_v6 = vld [vmem:[#allocation8 + $0x210] sm:$0xff]  ;;  %v2631_v9 = vld [vmem:[#allocation8 + $0x1e8] sm:$0xff] }
 0xb7f   : > { %11669 = vmatpush3.xpose.msk.msra.mxu1 %vm656_vm2, %v1994_v8  ;;  %11678 = vmatprep.subr.mxu0 %v13369_v27 }
 0xb80   : > { %11673 = vmatprep.subr.mxu1 %v13369_v27 }
 0xb81   : > { %11666 = vmatmul.mubr.msk.f32.vlgmr.msra.gmra.mrb[20].mxu0 %vm357_vm0, %v13666_v41 }
 0xb82   : > { %11680 = vmatprep.mubr.msk.f32.mxu0 %vm13368_vm1, %v13369_v27  ;;  %11679 = vmatpush3.msra.mxu0 %v2076_v38 }
 0xb83   : > { %11688 = vmatprep.subr.mxu0 %v13369_v27 }
 0xc44   : > { %v1757_v10 = vpop.f32.mrb[16].mxu0 }
 0xc45   : > { %v13809_v11 = vadd.f32 %v1830_v63, %v1757_v10  ;;  %v11629_v12 = vpop.f32.mrb[17].mxu0  ;;  %v2549_v63 = vld [vmem:[#allocation8 + $0x1d8] sm:$0xff] }
 0xc46   : > { %v12569_v3 = vpack.c.bf16 %v2549_v63, %v2548_v62  ;;  %v2632_v12 = vld [vmem:[#allocation8 + $0x1f0] sm:$0xff] }
 0xc4c   : > { %v11645_v14 = vpop.f32.mrb[18].mxu0 }
 0xc4d   : > { %v1915_v16 = vadd.f32 %v11645_v14, %v10815_v13  ;;  %v1909_v18 = vpop.f32.mrb[19].mxu0 }
 0xc4e   : > { %v1910_v19 = vadd.f32 %v10815_v13, %v1909_v18  ;;  %v2633_v13 = vld [vmem:[#allocation8 + $0x1f8] sm:$0xff] }
 0xc4f   : > { %v12577_v18 = vpack.c.bf16 %v2633_v13, %v2632_v12 }
 0xc50   : > { %11671 = vmatmul.mubr.msk.f32.vlgmr.msra.gmra.mrb[20].mxu1 %vm656_vm2, %v1910_v19  ;;  %v10830_v19 = vld [vmem:[#allocation8 + $0x228] ss:$0 sm:$0xff] }
 0xc51   : > { %11675 = vmatprep.mubr.msk.f32.mxu1 %vm13368_vm1, %v13369_v27 }
 0xc54   : > { %v2072_v22 = vpop.f32.mrb[20].mxu0 }
 0xc55   : > { %v2073_v23 = vadd.f32 %v10820_v20, %v2072_v22  ;;  %v11667_v24 = vpop.f32.mrb[21].mxu0 }
 0xc57   : > { %11674 = vmatpush3.msra.mxu1 %v2073_v23 }
 0xc58   : > { %11683 = vmatprep.subr.mxu1 %v13369_v27 }
 0xd23   : > { %v2149_v25 = vpop.f32.mrb[20].mxu1 }
 0xd24   : > { %v2153_v26 = vmul.f32 0.35355338, %v2149_v25  ;;  %v11672_v28 = vpop.f32.mrb[21].mxu1 }
 0xd26   : > { %v2154_v29 = vadd.f32 %v2153_v26, %v13718_v15 }
 0xd28   : > { %v2155_v32 = vsel %vm656_vm2, %v2154_v29, -inf }
 0xd29   : > { %2156 = vmax.xlane.f32.xlu0 %v2155_v32  ;;  %v10833_v32 = vld [vmem:[#allocation8 + $0x230] ss:$0 sm:$0xff] }
 0xdb6   : > { %v2157_v33 = vpop.xlane.xlu0 %2156 }
 0xdb7   : > { %v2158_v34 = vsub.f32 %v2154_v29, %v2157_v33 }
 0xdb9   : > { %v2159_v35 = vmul.f32 1.442695, %v2158_v34 }
 0xdbb   : > { %13059 = vpow2.f32 %v2159_v35 }
 0xdc5   : > { %v13060_v36 = vpop.eup %13059 }
 0xdc6   : > { %v2161_v37 = vsel %vm656_vm2, %v13060_v36, 0.0 }
 0xdc7   : > { %2162 = vadd.xlane.f32.xlu1 %v2161_v37 }
 0xe54   : > { %v2163_v39 = vpop.xlane.xlu1 %2162 }
 0xe55   : > { %13061 = vrcp.f32 %v2163_v39 }
 0xe5f   : > { %v13062_v40 = vpop.eup %13061 }
 0xe60   : > { %v2165_v30 = vmul.f32 %v13062_v40, %v13060_v36  ;;  %v10835_v36 = vld [vmem:[#allocation8 + $0x238] ss:$0 sm:$0xff] }
 0xe62   : > { %11676 = vmatmul.mubr.msk.f32.vlgmr.msra.gmra.mrb[22].mxu1 %vm656_vm2, %v2165_v30 }
 0xe63   : > { %11684 = vmatpush3.xpose.msk.msra.mxu1 %vm656_vm2, %v1994_v8  ;;  %11685 = vmatprep.mubr.msk.f32.mxu1 %vm13368_vm1, %v13369_v27  ;;  %v12583_v8 = vpack.c.bf16 %v2712_v7, %v2711_v6 }
 0xe64   : > { %11693 = vmatprep.subr.mxu1 %v13369_v27 }
 0xe66   : > { %11686 = vmatmul.mubr.msk.f32.vlgmr.msra.gmra.mrb[24].mxu1 %vm656_vm2, %v1915_v16 }
 0xe67   : > { %11694 = vmatpush3.msra.mxu1 %v2076_v38  ;;  %11695 = vmatprep.mubr.msk.f32.mxu1 %vm13368_vm1, %v13369_v27 }
 0xe68   : > { %12573 = vmatprep.subr.bf16.mxu1 %v13367_v17 }
 0xf35   : > { %v2235_v42 = vpop.f32.mrb[22].mxu1 }
 0xf36   : > { %v11677_v43 = vpop.f32.mrb[23].mxu1  ;;  %11681 = vmatmul.mubr.msk.f32.vlgmr.msra.gmra.mrb[22].mxu0 %vm656_vm2, %v2235_v42 }
 0xf37   : > { %11689 = vmatpush3.msra.mxu0 %v2073_v23  ;;  %11690 = vmatprep.mubr.msk.f32.mxu0 %vm13368_vm1, %v13369_v27 }
 0xf38   : > { %12566 = vmatprep.subr.bf16.mxu0 %v12565_v57 }
 0xf39   : > { %v2382_v44 = vpop.f32.mrb[24].mxu1 }
 0xf3a   : > { %v2386_v45 = vmul.f32 0.35355338, %v2382_v44  ;;  %v11687_v46 = vpop.f32.mrb[25].mxu1 }
 0xf3c   : > { %v2387_v48 = vadd.f32 %v2386_v45, %v13722_v21 }
 0xf3e   : > { %v2388_v49 = vsel %vm656_vm2, %v2387_v48, -inf }
 0xf3f   : > { %2389 = vmax.xlane.f32.xlu0 %v2388_v49 }
 0xfcc   : > { %v2390_v50 = vpop.xlane.xlu0 %2389 }
 0xfcd   : > { %v2391_v51 = vsub.f32 %v2387_v48, %v2390_v50  ;;  %v2788_v48 = vld [vmem:[#allocation8 + $0x220] sm:$0xff] }
 0xfcf   : > { %v2392_v52 = vmul.f32 1.442695, %v2391_v51 }
 0xfd1   : > { %13063 = vpow2.f32 %v2392_v52 }
 0xfdb   : > { %v13064_v53 = vpop.eup %13063 }
 0xfdc   : > { %v2394_v54 = vsel %vm656_vm2, %v13064_v53, 0.0 }
 0xfdd   : > { %2395 = vadd.xlane.f32.xlu1 %v2394_v54 }
0x1009   : > { %v2308_v58 = vpop.f32.mrb[22].mxu0 }
0x100a   : > { %v13835_v59 = vadd.f32 %v2308_v58, %v13774_v31  ;;  %v11682_v60 = vpop.f32.mrb[23].mxu0  ;;  %v12580_v31 = vpack.c.bf16 %v2710_v5, %v2709_v4 }
0x106a   : > { %v2396_v61 = vpop.xlane.xlu1 %2395 }
0x106b   : > { %13065 = vrcp.f32 %v2396_v61 }
0x1075   : > { %v13066_v0 = vpop.eup %13065 }
0x1076   : > { %v2398_v2 = vmul.f32 %v13066_v0, %v13064_v53 }
0x1078   : > { %11691 = vmatmul.mubr.msk.f32.vlgmr.msra.gmra.mrb[24].mxu0 %vm656_vm2, %v2398_v2  ;;  %v10845_v2 = vld [vmem:[#allocation8 + $0x240] ss:$0 sm:$0xff] }
0x1079   : > { %12568 = vmatpush3.bf16.msra.mxu0 %v12565_v57  ;;  %11706 = vmatprep.mubr.msk.f32.mxu0 %vm357_vm0, %v13672_v47  ;;  %v2630_v47 = vld [vmem:[#allocation8 + $0x1e0] sm:$0xff] }
0x107a   : > { %12570 = vmatprep.subr.bf16.mxu0 %v12569_v3  ;;  %v12574_v10 = vpack.c.bf16 %v2631_v9, %v2630_v47 }
0x107d   : > { %12572 = vmatpush3.bf16.msra.mxu0 %v12569_v3 }
0x107e   : > { %12579 = vmatprep.subr.bf16.mxu0 %v13367_v17 }
0x1080   : > { %11707 = vmatmul.mubr.msk.f32.vlgmr.msra.gmra.mrb[26].mxu0 %vm357_vm0, %v13666_v41 }
0x1081   : > { %12581 = vmatpush3.bf16.msra.mxu0 %v12580_v31  ;;  %11728 = vmatprep.mubr.msk.f32.mxu0 %vm13368_vm1, %v13369_v27 }
0x1082   : > { %12582 = vmatprep.subr.bf16.mxu0 %v13367_v17 }
0x1085   : > { %12584 = vmatpush3.bf16.msra.mxu0 %v12583_v8 }
0x1086   : > { %11741 = vmatprep.subr.mxu0 %v13369_v27 }
0x1088   : > { %11729 = vmatmul.mubr.msk.f32.vlgmr.msra.gmra.mrb[28].mxu0 %vm357_vm0, %v13666_v41 }
0x1089   : > { %11743 = vmatprep.mubr.msk.f32.mxu0 %vm13368_vm1, %v13369_v27  ;;  %11742 = vmatpush3.msra.mxu0 %v2788_v48 }
0x108a   : > { %11751 = vmatprep.subr.mxu0 %v13369_v27 }
0x114b   : > { %v2468_v14 = vpop.f32.mrb[24].mxu0 }
0x114c   : > { %v11692_v16 = vpop.f32.mrb[25].mxu0  ;;  %11696 = vmatmul.mubr.msk.f32.vlgmr.msra.gmra.mrb[26].mxu1 %vm656_vm2, %v2468_v14 }
0x114d   : > { %12575 = vmatpush3.bf16.msra.mxu1 %v12574_v10  ;;  %11717 = vmatprep.mubr.msk.f32.mxu1 %vm13368_vm1, %v13369_v27 }
0x114e   : > { %12576 = vmatprep.subr.bf16.mxu1 %v13367_v17 }
0x1151   : > { %12578 = vmatpush3.bf16.msra.mxu1 %v12577_v18  ;;  %v10846_v18 = vld [vmem:[#allocation8 + $0x20] ss:$0 sm:$0xff] }
0x1152   : > { %11731 = vmatprep.subr.mxu1 %v13369_v27 }
0x1153   : > { %v11708_v20 = vpop.f32.mrb[26].mxu0 }
0x1154   : > { %v2627_v22 = vadd.f32 %v11708_v20, %v10830_v19  ;;  %v2621_v23 = vpop.f32.mrb[27].mxu0  ;;  %11718 = vmatmul.mubr.msk.f32.vlgmr.msra.gmra.mrb[28].mxu1 %vm357_vm0, %v13666_v41  ;;  %v10847_v20 = vld [vmem:[#allocation8 + $0x28] ss:$0 sm:$0xff] }
0x1155   : > { %11733 = vmatprep.mubr.msk.f32.mxu1 %vm13368_vm1, %v13369_v27  ;;  %v2622_v37 = vadd.f32 %v10830_v19, %v2621_v23 }
0x115b   : > { %v2784_v24 = vpop.f32.mrb[28].mxu0 }
0x115c   : > { %v11730_v25 = vpop.f32.mrb[29].mxu0  ;;  %v2785_v41 = vadd.f32 %v10835_v36, %v2784_v24 }
0x121f   : > { %v2541_v26 = vpop.f32.mrb[26].mxu1 }
0x1220   : > { %v13861_v28 = vadd.f32 %v2541_v26, %v13809_v11  ;;  %v11697_v29 = vpop.f32.mrb[27].mxu1 }
0x1227   : > { %v2705_v33 = vpop.f32.mrb[28].mxu1 }
0x1228   : > { %v2706_v34 = vadd.f32 %v10833_v32, %v2705_v33  ;;  %v11719_v35 = vpop.f32.mrb[29].mxu1 }
0x122a   : > { %11732 = vmatpush3.xpose.msk.msra.mxu1 %vm656_vm2, %v2706_v34 }
0x122b   : > { %11736 = vmatprep.subr.mxu1 %v13369_v27 }
0x122d   : > { %11734 = vmatmul.mubr.msk.f32.vlgmr.msra.gmra.mrb[30].mxu1 %vm656_vm2, %v2622_v37 }
0x122e   : > { %11737 = vmatpush3.msra.mxu1 %v2785_v41  ;;  %11738 = vmatprep.mubr.msk.f32.mxu1 %vm13368_vm1, %v13369_v27 }
0x122f   : > { %11746 = vmatprep.subr.mxu1 %v13369_v27 }
0x1300   : > { %v2861_v11 = vpop.f32.mrb[30].mxu1 }
0x1301   : > { %v2865_v38 = vmul.f32 0.35355338, %v2861_v11  ;;  %v11735_v39 = vpop.f32.mrb[31].mxu1 }
0x1303   : > { %v2866_v40 = vadd.f32 %v2865_v38, %v13718_v15 }
0x1305   : > { %v2867_v30 = vsel %vm656_vm2, %v2866_v40, -inf }
0x1306   : > { %2868 = vmax.xlane.f32.xlu0 %v2867_v30 }
0x1393   : > { %v2869_v42 = vpop.xlane.xlu0 %2868 }
0x1394   : > { %v2870_v43 = vsub.f32 %v2866_v40, %v2869_v42  ;;  %v3398_v40 = vld [vmem:[#allocation8 + $0x270] sm:$0xff]  ;;  %v3399_v42 = vld [vmem:[#allocation8 + $0x278] sm:$0xff] }
0x1396   : > { %v2871_v44 = vmul.f32 1.442695, %v2870_v43  ;;  %v3400_v43 = vld [vmem:[#allocation8 + $0x280] sm:$0xff] }
0x1398   : > { %13067 = vpow2.f32 %v2871_v44  ;;  %v12597_v44 = vpack.c.bf16 %v3400_v43, %v3399_v42  ;;  %v3979_v42 = vld [vmem:[#allocation8 + $0x2e8] sm:$0xff]  ;;  %v3980_v43 = vld [vmem:[#allocation8 + $0x2f0] sm:$0xff] }
0x13a2   : > { %v13068_v45 = vpop.eup %13067 }
0x13a3   : > { %v2873_v46 = vsel %vm656_vm2, %v13068_v45, 0.0 }
0x13a4   : > { %2874 = vadd.xlane.f32.xlu1 %v2873_v46  ;;  %v13917_v46 = vld [vmem:[%s13644_s18 + $0x8] sm:$0xff] }
0x1431   : > { %v2875_v49 = vpop.xlane.xlu1 %2874 }
0x1432   : > { %13069 = vrcp.f32 %v2875_v49  ;;  %v3308_v49 = vld [vmem:[#allocation8 + $0x250] sm:$0xff] }
0x143c   : > { %v13070_v50 = vpop.eup %13069 }
0x143d   : > { %v2877_v51 = vmul.f32 %v13070_v50, %v13068_v45  ;;  %v13911_v45 = vld [vmem:[%s13644_s18] sm:$0xff] }
0x143f   : > { %11739 = vmatmul.mubr.msk.f32.vlgmr.msra.gmra.mrb[32].mxu1 %vm656_vm2, %v2877_v51  ;;  %v3309_v51 = vld [vmem:[#allocation8 + $0x258] sm:$0xff] }
0x1440   : > { %11747 = vmatpush3.xpose.msk.msra.mxu1 %vm656_vm2, %v2706_v34  ;;  %11748 = vmatprep.mubr.msk.f32.mxu1 %vm13368_vm1, %v13369_v27  ;;  %v13163_v34 = vld [vmem:[%s289_s15] sm:$0xff] }
0x1441   : > { %11756 = vmatprep.subr.mxu1 %v13369_v27 }
0x1443   : > { %11749 = vmatmul.mubr.msk.f32.vlgmr.msra.gmra.mrb[34].mxu1 %vm656_vm2, %v2627_v22 }
0x1444   : > { %11757 = vmatpush3.msra.mxu1 %v2788_v48  ;;  %11758 = vmatprep.mubr.msk.f32.mxu1 %vm13368_vm1, %v13369_v27  ;;  %v3307_v48 = vld [vmem:[#allocation8 + $0x248] sm:$0xff] }
0x1445   : > { %v12585_v50 = vpack.c.bf16 %v3308_v49, %v3307_v48  ;;  %v12631_v48 = vpack.c.bf16 %v3980_v43, %v3979_v42  ;;  %v3981_v49 = vld [vmem:[#allocation8 + $0x2f8] sm:$0xff]  ;;  %v13990_v42 = vld [vmem:[#allocation8 + $0x328] sm:$0xff] }
0x1512   : > { %v2947_v15 = vpop.f32.mrb[32].mxu1 }
0x1513   : > { %v11740_v52 = vpop.f32.mrb[33].mxu1  ;;  %11744 = vmatmul.mubr.msk.f32.vlgmr.msra.gmra.mrb[30].mxu0 %vm656_vm2, %v2947_v15  ;;  %v3310_v15 = vld [vmem:[#allocation8 + $0x260] sm:$0xff] }
0x1514   : > { %11752 = vmatpush3.msra.mxu0 %v2785_v41  ;;  %11753 = vmatprep.mubr.msk.f32.mxu0 %vm13368_vm1, %v13369_v27  ;;  %v12589_v52 = vpack.c.bf16 %v3310_v15, %v3309_v51 }
0x1515   : > { %12586 = vmatprep.subr.bf16.mxu0 %v12585_v50 }
0x1516   : > { %v3094_v53 = vpop.f32.mrb[34].mxu1 }
0x1517   : > { %v3098_v54 = vmul.f32 0.35355338, %v3094_v53  ;;  %v11750_v55 = vpop.f32.mrb[35].mxu1 }
0x1519   : > { %v3099_v56 = vadd.f32 %v3098_v54, %v13722_v21 }
0x151b   : > { %v3100_v57 = vsel %vm656_vm2, %v3099_v56, -inf }
0x151c   : > { %3101 = vmax.xlane.f32.xlu0 %v3100_v57 }
0x15a9   : > { %v3102_v58 = vpop.xlane.xlu0 %3101 }
0x15aa   : > { %v3103_v60 = vsub.f32 %v3099_v56, %v3102_v58 }
0x15ac   : > { %v3104_v61 = vmul.f32 1.442695, %v3103_v60 }
0x15ae   : > { %13071 = vpow2.f32 %v3104_v61  ;;  %v10851_v61 = vld [vmem:[#allocation8 + $0x2b8] ss:$0 sm:$0xff] }
0x15b8   : > { %v13072_v62 = vpop.eup %13071 }
0x15b9   : > { %v3106_v63 = vsel %vm656_vm2, %v13072_v62, 0.0 }
0x15ba   : > { %3107 = vadd.xlane.f32.xlu1 %v3106_v63 }
0x15e6   : > { %v3020_v0 = vpop.f32.mrb[30].mxu0 }
0x15e7   : > { %v3024_v3 = vadd.f32 %v3020_v0, %v13835_v59  ;;  %v11745_v4 = vpop.f32.mrb[31].mxu0 }
0x15e9   : > { %v3263_v5 = vadd.f32 %v10845_v2, %v3024_v3 }
0x15eb   : > { %v13889_v31 = vadd.f32 %v3263_v5, %v13652_v1  ;;  %v10848_v5 = vld [vmem:[#allocation8 + $0x2b0] ss:$0 sm:$0xff] }
0x15ed   : > { %v3269_v21 = vsel %vm357_vm0, %v13889_v31, 0.0 }
0x15ee   : > { %3270 = vadd.xlane.f32.xlu0 %v3269_v21 }
0x1647   : > { %v3108_v6 = vpop.xlane.xlu1 %3107 }
0x1648   : > { %13073 = vrcp.f32 %v3108_v6 }
0x1652   : > { %v13074_v7 = vpop.eup %13073 }
0x1653   : > { %v3110_v8 = vmul.f32 %v13074_v7, %v13072_v62 }
0x1655   : > { %11754 = vmatmul.mubr.msk.f32.vlgmr.msra.gmra.mrb[32].mxu0 %vm656_vm2, %v3110_v8 }
0x1656   : > { %12588 = vmatpush3.bf16.msra.mxu0 %v12585_v50  ;;  %v3982_v50 = vld [vmem:[#allocation8 + $0x300] sm:$0xff] }
0x1657   : > { %12590 = vmatprep.subr.bf16.mxu0 %v12589_v52  ;;  %v12635_v51 = vpack.c.bf16 %v3982_v50, %v3981_v49  ;;  %v3571_v49 = vld [vmem:[#allocation8 + $0x2a8] sm:$0xff] }
0x165a   : > { %12592 = vmatpush3.bf16.msra.mxu0 %v12589_v52 }
0x167b   : > { %v3271_v47 = vpop.xlane.xlu0 %3270 }
0x167c   : > { %v3275_v9 = vmul.f32 0.03125, %v3271_v47  ;;  %v3487_v47 = vld [vmem:[#allocation8 + $0x288] sm:$0xff] }
0x167e   : > { %v3277_v10 = vsub.f32 %v13889_v31, %v3275_v9  ;;  %v3488_v9 = vld [vmem:[#allocation8 + $0x290] sm:$0xff] }
0x1680   : > { %v3279_v59 = vmul.f32 %v3277_v10, %v3277_v10 }
0x1682   : > { %v3281_v12 = vsel %vm357_vm0, %v3279_v59, 0.0  ;;  %v12601_v59 = vpack.c.bf16 %v3488_v9, %v3487_v47 }
0x1683   : > { %3282 = vadd.xlane.f32.xlu0 %v3281_v12  ;;  %v3490_v12 = vld [vmem:[#allocation8 + $0x2a0] sm:$0xff] }
0x1684   : > { %12602 = vmatprep.subr.bf16.mxu0 %v12601_v59 }
0x1710   : > { %v3283_v1 = vpop.xlane.xlu0 %3282 }
0x1711   : > { %v3287_v13 = vmul.f32 0.03125, %v3283_v1 }
0x1713   : > { %v3289_v14 = vadd.f32 1e-05, %v3287_v13 }
0x1715   : > { %13075 = vrsqrt.f32 %v3289_v14 }
0x171f   : > { %v13076_v16 = vpop.eup %13075 }
0x1720   : > { %v3293_v19 = vmul.f32 %v13076_v16, %v3277_v10  ;;  %v3489_v10 = vld [vmem:[#allocation8 + $0x298] sm:$0xff] }
0x1721   : > { %v12605_v1 = vpack.c.bf16 %v3490_v12, %v3489_v10 }
0x1722   : > { %v3299_v22 = vmul.f32 %v10846_v18, %v3293_v19 }
0x1724   : > { %v13896_v23 = vadd.f32 %v10847_v20, %v3299_v22 }
0x1726   : > { %11769 = vmatprep.mubr.msk.f32.mxu0 %vm357_vm0, %v13896_v23 }
0x1728   : > { %v3180_v24 = vpop.f32.mrb[32].mxu0 }
0x1729   : > { %v11755_v25 = vpop.f32.mrb[33].mxu0  ;;  %11759 = vmatmul.mubr.msk.f32.vlgmr.msra.gmra.mrb[36].mxu1 %vm656_vm2, %v3180_v24 }
0x172a   : > { %11780 = vmatprep.mubr.msk.f32.mxu1 %vm357_vm0, %v13911_v45 }
0x17fc   : > { %v3253_v26 = vpop.f32.mrb[36].mxu1 }
0x17fd   : > { %v3257_v29 = vadd.f32 %v3253_v26, %v13861_v28  ;;  %v11760_v32 = vpop.f32.mrb[37].mxu1  ;;  %v3397_v28 = vld [vmem:[#allocation8 + $0x268] sm:$0xff] }
0x17fe   : > { %v12593_v30 = vpack.c.bf16 %v3398_v40, %v3397_v28 }
0x17ff   : > { %v3264_v33 = vadd.f32 %v10845_v2, %v3257_v29 }
0x1800   : > { %12594 = vmatprep.subr.bf16.mxu1 %v12593_v30 }
0x1801   : > { %v13904_v35 = vadd.f32 %v13163_v34, %v3264_v33  ;;  %12596 = vmatpush3.bf16.msra.mxu1 %v12593_v30 }
0x1802   : > { %12598 = vmatprep.subr.bf16.mxu1 %v12597_v44 }
0x1803   : > { %v3272_v36 = vsel %vm357_vm0, %v13904_v35, 0.0 }
0x1804   : > { %3273 = vadd.xlane.f32.xlu1 %v3272_v36 }
0x1805   : > { %12600 = vmatpush3.bf16.msra.mxu1 %v12597_v44 }
0x1806   : > { %12609 = vmatprep.subr.bf16.mxu1 %v13367_v17 }
0x1808   : > { %11781 = vmatmul.mubr.msk.f32.vlgmr.msra.gmra.mrb[38].mxu1 %vm357_vm0, %v13917_v46 }
0x1809   : > { %11798 = vmatprep.mubr.msk.f32.mxu1 %vm13368_vm1, %v13369_v27 }
0x1891   : > { %v3274_v37 = vpop.xlane.xlu1 %3273 }
0x1892   : > { %v3276_v41 = vmul.f32 0.03125, %v3274_v37 }
0x1894   : > { %v3278_v11 = vsub.f32 %v13904_v35, %v3276_v41 }
0x1896   : > { %v3280_v38 = vmul.f32 %v3278_v11, %v3278_v11 }
0x1898   : > { %v3284_v39 = vsel %vm357_vm0, %v3280_v38, 0.0 }
0x1899   : > { %3285 = vadd.xlane.f32.xlu1 %v3284_v39  ;;  %v10854_v39 = vld [vmem:[#allocation8 + $0x2c0] ss:$0 sm:$0xff] }
0x18db   : > { %v11782_v62 = vpop.f32.mrb[38].mxu1 }
0x18dc   : > { %v3484_v63 = vadd.f32 %v11782_v62, %v10851_v61  ;;  %v3478_v0 = vpop.f32.mrb[39].mxu1 }
0x18dd   : > { %v3479_v2 = vadd.f32 %v10851_v61, %v3478_v0  ;;  %v3898_v61 = vld [vmem:[#allocation8 + $0x2e0] sm:$0xff] }
0x18df   : > { %v12610_v4 = vpack.c.bf16 %v3484_v63, %v3479_v2  ;;  %v10868_v2 = vld [vmem:[#allocation8 + $0x338] ss:$0 sm:$0xff] }
0x18e1   : > { %12612 = vmatpush3.bf16.xpose.msk.msra.mxu1 %vm13931_vm3, %v12610_v4 }
0x18e2   : > { %12616 = vmatprep.subr.bf16.mxu1 %v13367_v17 }
0x1926   : > { %v3286_v53 = vpop.xlane.xlu1 %3285 }
0x1927   : > { %v3288_v54 = vmul.f32 0.03125, %v3286_v53  ;;  %v3895_v53 = vld [vmem:[#allocation8 + $0x2c8] sm:$0xff] }
0x1929   : > { %v3290_v55 = vadd.f32 1e-05, %v3288_v54  ;;  %v3896_v54 = vld [vmem:[#allocation8 + $0x2d0] sm:$0xff] }
0x192b   : > { %13077 = vrsqrt.f32 %v3290_v55 }
0x1935   : > { %v13078_v56 = vpop.eup %13077 }
0x1936   : > { %v3294_v57 = vmul.f32 %v13078_v56, %v3278_v11 }
0x1938   : > { %v3300_v58 = vmul.f32 %v10846_v18, %v3294_v57  ;;  %v12623_v57 = vpack.c.bf16 %v3896_v54, %v3895_v53 }
0x193a   : > { %v13923_v60 = vadd.f32 %v10847_v20, %v3300_v58  ;;  %v3897_v58 = vld [vmem:[#allocation8 + $0x2d8] sm:$0xff] }
0x193b   : > { %v12627_v0 = vpack.c.bf16 %v3898_v61, %v3897_v58 }
0x193c   : > { %11770 = vmatmul.mubr.msk.f32.vlgmr.msra.gmra.mrb[34].mxu0 %vm357_vm0, %v13923_v60 }
0x193d   : > { %11791 = vmatprep.mubr.msk.f32.mxu0 %vm357_vm0, %v13911_v45  ;;  %12604 = vmatpush3.bf16.msra.mxu0 %v12601_v59  ;;  %v10865_v59 = vld [vmem:[#allocation8 + $0x330] ss:$0 sm:$0xff] }
0x193e   : > { %12606 = vmatprep.subr.bf16.mxu0 %v12605_v1 }
0x1941   : > { %12608 = vmatpush3.bf16.msra.mxu0 %v12605_v1 }
0x1942   : > { %12613 = vmatprep.subr.bf16.mxu0 %v13367_v17 }
0x1944   : > { %11792 = vmatmul.mubr.msk.f32.vlgmr.msra.gmra.mrb[36].mxu0 %vm357_vm0, %v13917_v46 }
0x1945   : > { %11805 = vmatprep.mubr.msk.f32.mxu0 %vm13368_vm1, %v13369_v27 }
0x1a0f   : > { %v11771_v21 = vpop.f32.mrb[34].mxu0 }
0x1a10   : > { %v3388_v6 = vpop.f32.mrb[35].mxu0  ;;  %v3394_v8 = vadd.f32 %v11771_v21, %v10848_v5 }
0x1a11   : > { %v3389_v7 = vadd.f32 %v10848_v5, %v3388_v6 }
0x1a13   : > { %11799 = vmatmul.mubr.msk.f32.vlgmr.msra.gmra.mrb[40].mxu1 %vm656_vm2, %v3389_v7 }
0x1a14   : > { %12619 = vmatpush3.bf16.xpose.msk.msra.mxu1 %vm13931_vm3, %v12610_v4  ;;  %11812 = vmatprep.mubr.msk.f32.mxu1 %vm13368_vm1, %v13369_v27 }
0x1a15   : > { %12632 = vmatprep.subr.bf16.mxu1 %v12631_v48 }
0x1a17   : > { %v11793_v38 = vpop.f32.mrb[36].mxu0 }
0x1a18   : > { %v3562_v28 = vpop.f32.mrb[37].mxu0  ;;  %v3568_v40 = vadd.f32 %v11793_v38, %v10854_v39  ;;  %v10871_v38 = vld [vmem:[#allocation8 + $0x340] ss:$0 sm:$0xff] }
0x1a19   : > { %v3563_v30 = vadd.f32 %v10854_v39, %v3562_v28 }
0x1a1b   : > { %11813 = vmatmul.mubr.msk.f32.vlgmr.msra.gmra.mrb[42].mxu1 %vm656_vm2, %v3394_v8  ;;  %v12614_v44 = vpack.c.bf16 %v3568_v40, %v3563_v30 }
0x1a1c   : > { %11841 = vmatprep.mubr.msk.f32.mxu1 %vm357_vm0, %v13911_v45  ;;  %12634 = vmatpush3.bf16.msra.mxu1 %v12631_v48 }
0x1a1d   : > { %12615 = vmatpush3.bf16.msra.mxu0 %v12614_v44  ;;  %12636 = vmatprep.subr.bf16.mxu1 %v12635_v51 }
0x1a1e   : > { %12620 = vmatprep.subr.bf16.mxu0 %v13367_v17 }
0x1a20   : > { %12638 = vmatpush3.bf16.msra.mxu1 %v12635_v51 }
0x1a21   : > { %12647 = vmatprep.subr.bf16.mxu1 %v13367_v17 }
0x1a23   : > { %11842 = vmatmul.mubr.msk.f32.vlgmr.msra.gmra.mrb[44].mxu1 %vm357_vm0, %v13917_v46 }
0x1a24   : > { %11859 = vmatprep.mubr.msk.f32.mxu1 %vm13368_vm1, %v13369_v27 }
0x1ae6   : > { %v3647_v13 = vpop.f32.mrb[40].mxu1 }
0x1ae7   : > { %v3651_v14 = vmul.f32 0.35355338, %v3647_v13  ;;  %v11800_v16 = vpop.f32.mrb[41].mxu1 }
0x1ae8   : > { %v4063_v16 = vld [vmem:[#allocation8 + $0x308] sm:$0xff] }
0x1ae9   : > { %v3653_v18 = vsel %vm3652_vm4, %v3651_v14, -inf }
0x1aea   : > { %3654 = vmax.xlane.f32.xlu0 %v3653_v18  ;;  %v4064_v18 = vld [vmem:[#allocation8 + $0x310] sm:$0xff] }
0x1aee   : > { %v3806_v19 = vpop.f32.mrb[42].mxu1 }
0x1aef   : > { %v3810_v20 = vmul.f32 0.35355338, %v3806_v19  ;;  %v11814_v22 = vpop.f32.mrb[43].mxu1  ;;  %v4065_v19 = vld [vmem:[#allocation8 + $0x318] sm:$0xff] }
0x1af0   : > { %v4066_v22 = vld [vmem:[#allocation8 + $0x320] sm:$0xff] }
0x1af1   : > { %v3811_v24 = vsel %vm3652_vm4, %v3810_v20, -inf }
0x1af2   : > { %3812 = vmax.xlane.f32.xlu1 %v3811_v24  ;;  %v12643_v24 = vpack.c.bf16 %v4066_v22, %v4065_v19 }
0x1af6   : > { %v11843_v4 = vpop.f32.mrb[44].mxu1 }
0x1af7   : > { %v4060_v5 = vadd.f32 %v11843_v4, %v10868_v2  ;;  %v4054_v21 = vpop.f32.mrb[45].mxu1 }
0x1af8   : > { %v4055_v6 = vadd.f32 %v10868_v2, %v4054_v21 }
0x1afa   : > { %v13971_v7 = vpack.c.bf16 %v4060_v5, %v4055_v6  ;;  %v4846_v6 = vld [vmem:[#allocation8 + $0x368] sm:$0xff] }
0x1afc   : > { %12650 = vmatpush3.bf16.xpose.msk.msra.mxu1 %vm13931_vm3, %v13971_v7 }
0x1afd   : > { %11869 = vmatprep.subr.mxu1 %v13369_v27 }
0x1b77   : > { %v3655_v25 = vpop.xlane.xlu0 %3654 }
0x1b78   : > { %v3656_v26 = vsub.f32 %v3651_v14, %v3655_v25 }
0x1b7a   : > { %v3657_v29 = vmul.f32 1.442695, %v3656_v26 }
0x1b7c   : > { %13079 = vpow2.f32 %v3657_v29 }
0x1b7f   : > { %v3813_v32 = vpop.xlane.xlu1 %3812 }
0x1b80   : > { %v3814_v33 = vsub.f32 %v3810_v20, %v3813_v32  ;;  %v12639_v20 = vpack.c.bf16 %v4064_v18, %v4063_v16  ;;  %v10889_v18 = vld [vmem:[#allocation8 + $0x3b8] ss:$0 sm:$0xff] }
0x1b82   : > { %v3815_v34 = vmul.f32 1.442695, %v3814_v33 }
0x1b84   : > { %13081 = vpow2.f32 %v3815_v34 }
0x1b86   : > { %v13080_v36 = vpop.eup %13079 }
0x1b87   : > { %v3659_v37 = vsel %vm3652_vm4, %v13080_v36, 0.0 }
0x1b88   : > { %3660 = vadd.xlane.f32.xlu0 %v3659_v37 }
0x1b8e   : > { %v13082_v41 = vpop.eup %13081 }
0x1b8f   : > { %v3817_v11 = vsel %vm3652_vm4, %v13082_v41, 0.0 }
0x1b90   : > { %3818 = vadd.xlane.f32.xlu1 %v3817_v11 }
0x1c15   : > { %v3661_v15 = vpop.xlane.xlu0 %3660 }
0x1c16   : > { %13083 = vrcp.f32 %v3661_v15 }
0x1c1d   : > { %v3819_v52 = vpop.xlane.xlu1 %3818 }
0x1c1e   : > { %13085 = vrcp.f32 %v3819_v52 }
0x1c20   : > { %v13084_v55 = vpop.eup %13083 }
0x1c21   : > { %v3663_v56 = vmul.f32 %v13084_v55, %v13080_v36 }
0x1c23   : > { %11806 = vmatmul.mubr.msk.f32.vlgmr.msra.gmra.mrb[38].mxu0 %vm3652_vm4, %v3663_v56 }
0x1c24   : > { %12622 = vmatpush3.bf16.msra.mxu0 %v12614_v44  ;;  %11819 = vmatprep.mubr.msk.f32.mxu0 %vm13368_vm1, %v13369_v27 }
0x1c25   : > { %12624 = vmatprep.subr.bf16.mxu0 %v12623_v57 }
0x1c28   : > { %v13086_v62 = vpop.eup %13085 }
0x1c29   : > { %v3821_v63 = vmul.f32 %v13086_v62, %v13082_v41 }
0x1c2b   : > { %11820 = vmatmul.mubr.msk.f32.vlgmr.msra.gmra.mrb[40].mxu0 %vm3652_vm4, %v3821_v63 }
0x1c2c   : > { %12626 = vmatpush3.bf16.msra.mxu0 %v12623_v57  ;;  %11830 = vmatprep.mubr.msk.f32.mxu0 %vm357_vm0, %v13896_v23 }
0x1c2d   : > { %12628 = vmatprep.subr.bf16.mxu0 %v12627_v0 }
0x1c30   : > { %12630 = vmatpush3.bf16.msra.mxu0 %v12627_v0 }
0x1c31   : > { %12640 = vmatprep.subr.bf16.mxu0 %v12639_v20 }
0x1c33   : > { %11831 = vmatmul.mubr.msk.f32.vlgmr.msra.gmra.mrb[42].mxu0 %vm357_vm0, %v13923_v60 }
0x1c34   : > { %11852 = vmatprep.mubr.msk.f32.mxu0 %vm357_vm0, %v13911_v45  ;;  %12642 = vmatpush3.bf16.msra.mxu0 %v12639_v20 }
0x1c35   : > { %12644 = vmatprep.subr.bf16.mxu0 %v12643_v24 }
0x1c38   : > { %12646 = vmatpush3.bf16.msra.mxu0 %v12643_v24 }
0x1c39   : > { %12651 = vmatprep.subr.bf16.mxu0 %v13367_v17 }
0x1c3b   : > { %11853 = vmatmul.mubr.msk.f32.vlgmr.msra.gmra.mrb[44].mxu0 %vm357_vm0, %v13917_v46 }
0x1c3c   : > { %11866 = vmatprep.mubr.msk.f32.mxu0 %vm13368_vm1, %v13369_v27 }
0x1cf6   : > { %v3733_v8 = vpop.f32.mrb[38].mxu0 }
0x1cf7   : > { %v11807_v47 = vpop.f32.mrb[39].mxu0 }
0x1cfe   : > { %v13977_v9 = vpop.f32.mrb[40].mxu0 }
0x1cff   : > { %v11821_v10 = vpop.f32.mrb[41].mxu0 }
0x1d06   : > { %v11832_v12 = vpop.f32.mrb[42].mxu0 }
0x1d07   : > { %v3976_v1 = vadd.f32 %v11832_v12, %v10865_v59  ;;  %v3970_v13 = vpop.f32.mrb[43].mxu0 }
0x1d08   : > { %v3971_v14 = vadd.f32 %v10865_v59, %v3970_v13  ;;  %v4762_v13 = vld [vmem:[#allocation8 + $0x348] sm:$0xff] }
0x1d0a   : > { %11860 = vmatmul.mubr.msk.f32.vlgmr.msra.gmra.mrb[46].mxu1 %vm656_vm2, %v3971_v14  ;;  %v4763_v14 = vld [vmem:[#allocation8 + $0x350] sm:$0xff] }
0x1d0b   : > { %11871 = vmatprep.mubr.msk.f32.mxu1 %vm13368_vm1, %v13369_v27  ;;  %11870 = vmatpush3.msra.mxu1 %v13990_v42  ;;  %v12661_v16 = vpack.c.bf16 %v4763_v14, %v4762_v13 }
0x1d0c   : > { %12654 = vmatprep.subr.bf16.mxu1 %v13367_v17 }
0x1d0e   : > { %v11854_v11 = vpop.f32.mrb[44].mxu0 }
0x1d0f   : > { %v4138_v39 = vpop.f32.mrb[45].mxu0  ;;  %v4144_v28 = vadd.f32 %v11854_v11, %v10871_v38  ;;  %v10886_v11 = vld [vmem:[#allocation8 + $0x3b0] ss:$0 sm:$0xff] }
0x1d10   : > { %v4139_v40 = vadd.f32 %v10871_v38, %v4138_v39 }
0x1d12   : > { %v12652_v30 = vpack.c.bf16 %v4144_v28, %v4139_v40 }
0x1d14   : > { %12653 = vmatpush3.bf16.msra.mxu0 %v12652_v30 }
0x1d15   : > { %11874 = vmatprep.subr.mxu0 %v13369_v27 }
0x1ddd   : > { %v4223_v25 = vpop.f32.mrb[46].mxu1 }
0x1dde   : > { %v4227_v26 = vmul.f32 0.35355338, %v4223_v25  ;;  %v11861_v29 = vpop.f32.mrb[47].mxu1 }
0x1ddf   : > { %v4765_v29 = vld [vmem:[#allocation8 + $0x360] sm:$0xff] }
0x1de0   : > { %v4228_v32 = vsel %vm3652_vm4, %v4227_v26, -inf }
0x1de1   : > { %4229 = vmax.xlane.f32.xlu0 %v4228_v32 }
0x1e6e   : > { %v4230_v33 = vpop.xlane.xlu0 %4229 }
0x1e6f   : > { %v4231_v34 = vsub.f32 %v4227_v26, %v4230_v33  ;;  %v4764_v26 = vld [vmem:[#allocation8 + $0x358] sm:$0xff] }
0x1e70   : > { %v12665_v32 = vpack.c.bf16 %v4765_v29, %v4764_v26 }
0x1e71   : > { %v4232_v36 = vmul.f32 1.442695, %v4231_v34 }
0x1e73   : > { %13087 = vpow2.f32 %v4232_v36 }
0x1e7d   : > { %v13088_v37 = vpop.eup %13087 }
0x1e7e   : > { %v4234_v41 = vsel %vm3652_vm4, %v13088_v37, 0.0 }
0x1e7f   : > { %4235 = vadd.xlane.f32.xlu1 %v4234_v41 }
0x1f0c   : > { %v4236_v43 = vpop.xlane.xlu1 %4235 }
0x1f0d   : > { %13089 = vrcp.f32 %v4236_v43  ;;  %v4932_v43 = vld [vmem:[#allocation8 + $0x398] sm:$0xff] }
0x1f17   : > { %v13090_v44 = vpop.eup %13089 }
0x1f18   : > { %v4238_v48 = vmul.f32 %v13090_v44, %v13088_v37 }
0x1f1a   : > { %11867 = vmatmul.mubr.msk.f32.vlgmr.msra.gmra.mrb[46].mxu0 %vm3652_vm4, %v4238_v48  ;;  %v4933_v48 = vld [vmem:[#allocation8 + $0x3a0] sm:$0xff] }
0x1f1b   : > { %11875 = vmatpush3.msra.mxu0 %v3571_v49  ;;  %11876 = vmatprep.mubr.msk.f32.mxu0 %vm13368_vm1, %v13369_v27 }
0x1f1c   : > { %12658 = vmatprep.subr.bf16.mxu0 %v13367_v17 }
0x1f1e   : > { %11877 = vmatmul.mubr.msk.f32.vlgmr.msra.gmra.mrb[48].mxu0 %vm656_vm2, %v3733_v8  ;;  %v4848_v8 = vld [vmem:[#allocation8 + $0x378] sm:$0xff] }
0x1f1f   : > { %12660 = vmatpush3.bf16.msra.mxu0 %v12652_v30  ;;  %11890 = vmatprep.mubr.msk.f32.mxu0 %vm13368_vm1, %v13369_v27  ;;  %v4930_v30 = vld [vmem:[#allocation8 + $0x388] sm:$0xff] }
0x1f20   : > { %11893 = vmatprep.subr.mxu0 %v13369_v27 }
0x1fed   : > { %v4308_v50 = vpop.f32.mrb[46].mxu0 }
0x1fee   : > { %v11868_v51 = vpop.f32.mrb[47].mxu0  ;;  %11872 = vmatmul.mubr.msk.f32.vlgmr.msra.gmra.mrb[48].mxu1 %vm656_vm2, %v4308_v50 }
0x1fef   : > { %12657 = vmatpush3.bf16.xpose.msk.msra.mxu1 %vm13931_vm3, %v13971_v7  ;;  %11883 = vmatprep.mubr.msk.f32.mxu1 %vm13368_vm1, %v13369_v27  ;;  %v4847_v7 = vld [vmem:[#allocation8 + $0x370] sm:$0xff] }
0x1ff0   : > { %11898 = vmatprep.subr.mxu1 %v13369_v27  ;;  %v12669_v47 = vpack.c.bf16 %v4847_v7, %v4846_v6  ;;  %v5485_v6 = vld [vmem:[#allocation8 + $0x3c8] sm:$0xff]  ;;  %v5486_v7 = vld [vmem:[#allocation8 + $0x3d0] sm:$0xff] }
0x1ff1   : > { %v4454_v15 = vpop.f32.mrb[48].mxu0 }
0x1ff2   : > { %v11878_v52 = vpop.f32.mrb[49].mxu0 }
0x1ff6   : > { %11884 = vmatmul.mubr.msk.f32.vlgmr.msra.gmra.mrb[50].mxu1 %vm656_vm2, %v3976_v1 }
0x1ff7   : > { %11899 = vmatpush3.msra.mxu1 %v3571_v49  ;;  %11900 = vmatprep.mubr.msk.f32.mxu1 %vm13368_vm1, %v13369_v27  ;;  %v12681_v49 = vpack.c.bf16 %v4933_v48, %v4932_v43 }
0x1ff8   : > { %12670 = vmatprep.subr.bf16.mxu1 %v12669_v47 }
0x1ffa   : > { %11901 = vmatmul.mubr.msk.f32.vlgmr.msra.gmra.mrb[52].mxu1 %vm656_vm2, %v13977_v9  ;;  %v4849_v9 = vld [vmem:[#allocation8 + $0x380] sm:$0xff] }
0x1ffb   : > { %11922 = vmatprep.mubr.msk.f32.mxu1 %vm357_vm0, %v13911_v45  ;;  %v12673_v10 = vpack.c.bf16 %v4849_v9, %v4848_v8  ;;  %12672 = vmatpush3.bf16.msra.mxu1 %v12669_v47  ;;  %v12699_v9 = vpack.c.bf16 %v5486_v7, %v5485_v6 }
0x1ffd   : > { %12674 = vmatprep.subr.bf16.mxu1 %v12673_v10 }
0x1fff   : > { %12676 = vmatpush3.bf16.msra.mxu1 %v12673_v10  ;;  %v5487_v10 = vld [vmem:[#allocation8 + $0x3d8] sm:$0xff] }
0x2000   : > { %12685 = vmatprep.subr.bf16.mxu1 %v13367_v17 }
0x2002   : > { %11923 = vmatmul.mubr.msk.f32.vlgmr.msra.gmra.mrb[54].mxu1 %vm357_vm0, %v13917_v46 }
0x2003   : > { %11940 = vmatprep.mubr.msk.f32.mxu1 %vm13368_vm1, %v13369_v27 }
0x20c1   : > { %v4381_v53 = vpop.f32.mrb[48].mxu1 }
0x20c2   : > { %v14016_v54 = vadd.f32 %v4454_v15, %v4381_v53  ;;  %v11873_v55 = vpop.f32.mrb[49].mxu1  ;;  %v10892_v53 = vld [vmem:[#allocation8 + $0x3c0] ss:$0 sm:$0xff] }
0x20c9   : > { %v4527_v56 = vpop.f32.mrb[50].mxu1 }
0x20ca   : > { %v4531_v57 = vmul.f32 0.35355338, %v4527_v56  ;;  %v11885_v58 = vpop.f32.mrb[51].mxu1 }
0x20cc   : > { %v4532_v61 = vsel %vm3652_vm4, %v4531_v57, -inf }
0x20cd   : > { %4533 = vmax.xlane.f32.xlu0 %v4532_v61  ;;  %v4758_v62 = vpop.f32.mrb[52].mxu1 }
0x20ce   : > { %v11902_v63 = vpop.f32.mrb[53].mxu1 }
0x20d5   : > { %v11924_v19 = vpop.f32.mrb[54].mxu1 }
0x20d6   : > { %v4927_v20 = vadd.f32 %v11924_v19, %v10889_v18  ;;  %v4921_v22 = vpop.f32.mrb[55].mxu1 }
0x20d7   : > { %v4922_v24 = vadd.f32 %v10889_v18, %v4921_v22 }
0x20d9   : > { %v14029_v25 = vpack.c.bf16 %v4927_v20, %v4922_v24 }
0x20db   : > { %12688 = vmatpush3.bf16.xpose.msk.msra.mxu1 %vm13931_vm3, %v14029_v25 }
0x20dc   : > { %11950 = vmatprep.subr.mxu1 %v13369_v27 }
0x215a   : > { %v4534_v0 = vpop.xlane.xlu0 %4533 }
0x215b   : > { %v4535_v2 = vsub.f32 %v4531_v57, %v4534_v0 }
0x215d   : > { %v4536_v4 = vmul.f32 1.442695, %v4535_v2 }
0x215f   : > { %13091 = vpow2.f32 %v4536_v4 }
0x2169   : > { %v13092_v5 = vpop.eup %13091 }
0x216a   : > { %v4538_v21 = vsel %vm3652_vm4, %v13092_v5, 0.0 }
0x216b   : > { %4539 = vadd.xlane.f32.xlu1 %v4538_v21 }
0x21f8   : > { %v4540_v59 = vpop.xlane.xlu1 %4539 }
0x21f9   : > { %13093 = vrcp.f32 %v4540_v59  ;;  %v5488_v59 = vld [vmem:[#allocation8 + $0x3e0] sm:$0xff] }
0x2203   : > { %v13094_v12 = vpop.eup %13093 }
0x2204   : > { %v4542_v1 = vmul.f32 %v13094_v12, %v13092_v5  ;;  %v5014_v5 = vld [vmem:[#allocation8 + $0x3a8] sm:$0xff]  ;;  %v12703_v12 = vpack.c.bf16 %v5488_v59, %v5487_v10 }
0x2206   : > { %11891 = vmatmul.mubr.msk.f32.vlgmr.msra.gmra.mrb[50].mxu0 %vm3652_vm4, %v4542_v1 }
0x2207   : > { %11894 = vmatpush3.msra.mxu0 %v13990_v42  ;;  %11895 = vmatprep.mubr.msk.f32.mxu0 %vm13368_vm1, %v13369_v27  ;;  %v4931_v42 = vld [vmem:[#allocation8 + $0x390] sm:$0xff] }
0x2208   : > { %12662 = vmatprep.subr.bf16.mxu0 %v12661_v16  ;;  %v12677_v44 = vpack.c.bf16 %v4931_v42, %v4930_v30  ;;  %v5571_v30 = vld [vmem:[#allocation8 + $0x3f8] sm:$0xff]  ;;  %v5572_v42 = vld [vmem:[#allocation8 + $0x400] sm:$0xff] }
0x2209   : > { %v12711_v43 = vpack.c.bf16 %v5572_v42, %v5571_v30 }
0x22d9   : > { %v4612_v33 = vpop.f32.mrb[50].mxu0 }
0x22da   : > { %v11892_v34 = vpop.f32.mrb[51].mxu0  ;;  %11896 = vmatmul.mubr.msk.f32.vlgmr.msra.gmra.mrb[52].mxu0 %vm656_vm2, %v4612_v33 }
0x22db   : > { %12664 = vmatpush3.bf16.msra.mxu0 %v12661_v16  ;;  %11911 = vmatprep.mubr.msk.f32.mxu0 %vm357_vm0, %v13896_v23 }
0x22dc   : > { %12666 = vmatprep.subr.bf16.mxu0 %v12665_v32 }
0x22df   : > { %12668 = vmatpush3.bf16.msra.mxu0 %v12665_v32 }
0x22e0   : > { %12678 = vmatprep.subr.bf16.mxu0 %v12677_v44 }
0x22e2   : > { %11912 = vmatmul.mubr.msk.f32.vlgmr.msra.gmra.mrb[54].mxu0 %vm357_vm0, %v13923_v60 }
0x22e3   : > { %11933 = vmatprep.mubr.msk.f32.mxu0 %vm357_vm0, %v13911_v45  ;;  %12680 = vmatpush3.bf16.msra.mxu0 %v12677_v44 }
0x22e4   : > { %12682 = vmatprep.subr.bf16.mxu0 %v12681_v49 }
0x22e7   : > { %12684 = vmatpush3.bf16.msra.mxu0 %v12681_v49 }
0x22e8   : > { %12689 = vmatprep.subr.bf16.mxu0 %v13367_v17 }
0x22ea   : > { %11934 = vmatmul.mubr.msk.f32.vlgmr.msra.gmra.mrb[56].mxu0 %vm357_vm0, %v13917_v46 }
0x22eb   : > { %11947 = vmatprep.mubr.msk.f32.mxu0 %vm13368_vm1, %v13369_v27 }
0x23ad   : > { %v4685_v36 = vpop.f32.mrb[52].mxu0 }
0x23ae   : > { %v14042_v37 = vadd.f32 %v4758_v62, %v4685_v36  ;;  %v11897_v41 = vpop.f32.mrb[53].mxu0 }
0x23b5   : > { %v11913_v38 = vpop.f32.mrb[54].mxu0 }
0x23b6   : > { %v4843_v39 = vadd.f32 %v11913_v38, %v10886_v11  ;;  %v4837_v28 = vpop.f32.mrb[55].mxu0 }
0x23b7   : > { %v4838_v40 = vadd.f32 %v10886_v11, %v4837_v28  ;;  %v5570_v28 = vld [vmem:[#allocation8 + $0x3f0] sm:$0xff] }
0x23b9   : > { %11941 = vmatmul.mubr.msk.f32.vlgmr.msra.gmra.mrb[56].mxu1 %vm656_vm2, %v4838_v40 }
0x23ba   : > { %11952 = vmatprep.mubr.msk.f32.mxu1 %vm13368_vm1, %v13369_v27  ;;  %11951 = vmatpush3.msra.mxu1 %v5014_v5 }
0x23bb   : > { %12696 = vmatprep.subr.bf16.mxu1 %v13367_v17 }
0x23bd   : > { %v11935_v55 = vpop.f32.mrb[56].mxu0 }
0x23be   : > { %v5011_v56 = vadd.f32 %v11935_v55, %v10892_v53  ;;  %v5005_v57 = vpop.f32.mrb[57].mxu0 }
0x23bf   : > { %v5006_v58 = vadd.f32 %v10892_v53, %v5005_v57  ;;  %v5654_v57 = vld [vmem:[#allocation8 + $0x410] sm:$0xff] }
0x23c1   : > { %v12690_v61 = vpack.c.bf16 %v5011_v56, %v5006_v58  ;;  %v5655_v58 = vld [vmem:[#allocation8 + $0x418] sm:$0xff] }
0x23c3   : > { %12691 = vmatpush3.bf16.msra.mxu0 %v12690_v61 }
0x23c4   : > { %12692 = vmatprep.subr.bf16.mxu0 %v13367_v17 }
0x248c   : > { %v5090_v50 = vpop.f32.mrb[56].mxu1 }
0x248d   : > { %v5094_v51 = vmul.f32 0.35355338, %v5090_v50  ;;  %v11942_v15 = vpop.f32.mrb[57].mxu1 }
0x248f   : > { %v5095_v52 = vsel %vm3652_vm4, %v5094_v51, -inf }
0x2490   : > { %5096 = vmax.xlane.f32.xlu0 %v5095_v52 }
0x251d   : > { %v5097_v62 = vpop.xlane.xlu0 %5096 }
0x251e   : > { %v5098_v63 = vsub.f32 %v5094_v51, %v5097_v62  ;;  %v10908_v51 = vld [vmem:[#allocation8 + $0x438] ss:$0 sm:$0xff]  ;;  %v5656_v62 = vld [vmem:[#allocation8 + $0x420] sm:$0xff] }
0x2520   : > { %v5099_v0 = vmul.f32 1.442695, %v5098_v63  ;;  %v12719_v63 = vpack.c.bf16 %v5656_v62, %v5655_v58 }
0x2522   : > { %13095 = vpow2.f32 %v5099_v0 }
0x252c   : > { %v13096_v2 = vpop.eup %13095 }
0x252d   : > { %v5101_v4 = vsel %vm3652_vm4, %v13096_v2, 0.0 }
0x252e   : > { %5102 = vadd.xlane.f32.xlu1 %v5101_v4 }
0x25bb   : > { %v5103_v21 = vpop.xlane.xlu1 %5102 }
0x25bc   : > { %13097 = vrcp.f32 %v5103_v21  ;;  %v10911_v21 = vld [vmem:[#allocation8 + $0x440] ss:$0 sm:$0xff] }
0x25c6   : > { %v13098_v8 = vpop.eup %13097 }
0x25c7   : > { %v5105_v47 = vmul.f32 %v13098_v8, %v13096_v2 }
0x25c9   : > { %11948 = vmatmul.mubr.msk.f32.vlgmr.msra.gmra.mrb[58].mxu0 %vm3652_vm4, %v5105_v47 }
0x25ca   : > { %12695 = vmatpush3.bf16.xpose.msk.msra.mxu0 %vm13931_vm3, %v14029_v25  ;;  %11959 = vmatprep.mubr.msk.f32.mxu0 %vm13368_vm1, %v13369_v27 }
0x25cb   : > { %12700 = vmatprep.subr.bf16.mxu0 %v12699_v9 }
0x25d1   : > { %11960 = vmatmul.mubr.msk.f32.vlgmr.msra.gmra.mrb[60].mxu0 %vm656_vm2, %v4843_v39  ;;  %v5569_v39 = vld [vmem:[#allocation8 + $0x3e8] sm:$0xff] }
0x25d2   : > { %12702 = vmatpush3.bf16.msra.mxu0 %v12699_v9  ;;  %11982 = vmatprep.mubr.msk.f32.mxu0 %vm357_vm0, %v13896_v23  ;;  %v12707_v40 = vpack.c.bf16 %v5570_v28, %v5569_v39 }
0x25d3   : > { %12704 = vmatprep.subr.bf16.mxu0 %v12703_v12 }
0x25d6   : > { %12706 = vmatpush3.bf16.msra.mxu0 %v12703_v12 }
0x25d9   : > { %11983 = vmatmul.mubr.msk.f32.vlgmr.msra.gmra.mrb[62].mxu0 %vm357_vm0, %v13923_v60  ;;  %v10905_v60 = vld [vmem:[#allocation8 + $0x430] ss:$0 sm:$0xff] }
0x25da   : > { %12004 = vmatprep.mubr.msk.f32.mxu0 %vm357_vm0, %v13911_v45 }
0x269c   : > { %v5175_v1 = vpop.f32.mrb[58].mxu0 }
0x269d   : > { %v11949_v13 = vpop.f32.mrb[59].mxu0  ;;  %11953 = vmatmul.mubr.msk.f32.vlgmr.msra.gmra.mrb[58].mxu1 %vm656_vm2, %v5175_v1 }
0x269e   : > { %12698 = vmatpush3.bf16.msra.mxu1 %v12690_v61  ;;  %11966 = vmatprep.mubr.msk.f32.mxu1 %vm13368_vm1, %v13369_v27  ;;  %v5737_v13 = vld [vmem:[#allocation8 + $0x428] sm:$0xff] }
0x269f   : > { %11969 = vmatprep.subr.mxu1 %v13369_v27 }
0x26a4   : > { %v5322_v14 = vpop.f32.mrb[60].mxu0 }
0x26a5   : > { %v5326_v23 = vmul.f32 0.35355338, %v5322_v14  ;;  %v11961_v16 = vpop.f32.mrb[61].mxu0 }
0x26a7   : > { %v5327_v18 = vsel %vm3652_vm4, %v5326_v23, -inf }
0x26a8   : > { %5328 = vmax.xlane.f32.xlu0 %v5327_v18 }
0x26ac   : > { %v11984_v19 = vpop.f32.mrb[62].mxu0 }
0x26ad   : > { %v14074_v20 = vadd.f32 %v11984_v19, %v10905_v60  ;;  %v5560_v22 = vpop.f32.mrb[63].mxu0 }
0x26ae   : > { %v5561_v56 = vadd.f32 %v10905_v60, %v5560_v22 }
0x2735   : > { %v5329_v24 = vpop.xlane.xlu0 %5328 }
0x2736   : > { %v5330_v25 = vsub.f32 %v5326_v23, %v5329_v24 }
0x2738   : > { %v5331_v26 = vmul.f32 1.442695, %v5330_v25 }
0x273a   : > { %13099 = vpow2.f32 %v5331_v26 }
0x2744   : > { %v13100_v29 = vpop.eup %13099 }
0x2745   : > { %v5333_v32 = vsel %vm3652_vm4, %v13100_v29, 0.0 }
0x2746   : > { %5334 = vadd.xlane.f32.xlu1 %v5333_v32 }
0x2770   : > { %v5248_v33 = vpop.f32.mrb[58].mxu1 }
0x2771   : > { %v14078_v34 = vadd.f32 %v5248_v33, %v14016_v54  ;;  %v11954_v36 = vpop.f32.mrb[59].mxu1 }
0x27d3   : > { %v5335_v41 = vpop.xlane.xlu1 %5334 }
0x27d4   : > { %13101 = vrcp.f32 %v5335_v41  ;;  %v10924_v41 = vld [vmem:[#allocation8 + $0x448] ss:$0 sm:$0xff] }
0x27de   : > { %v13102_v11 = vpop.eup %13101 }
0x27df   : > { %v5337_v38 = vmul.f32 %v13102_v11, %v13100_v29 }
0x27e1   : > { %11967 = vmatmul.mubr.msk.f32.vlgmr.msra.gmra.mrb[60].mxu1 %vm3652_vm4, %v5337_v38 }
0x27e2   : > { %11970 = vmatpush3.msra.mxu1 %v5014_v5  ;;  %11971 = vmatprep.mubr.msk.f32.mxu1 %vm13368_vm1, %v13369_v27 }
0x27e3   : > { %12708 = vmatprep.subr.bf16.mxu1 %v12707_v40 }
0x28b4   : > { %v5407_v54 = vpop.f32.mrb[60].mxu1 }
0x28b5   : > { %v11968_v44 = vpop.f32.mrb[61].mxu1  ;;  %11972 = vmatmul.mubr.msk.f32.vlgmr.msra.gmra.mrb[62].mxu1 %vm656_vm2, %v5407_v54 }
0x28b6   : > { %12710 = vmatpush3.bf16.msra.mxu1 %v12707_v40  ;;  %11993 = vmatprep.mubr.msk.f32.mxu1 %vm357_vm0, %v13911_v45 }
0x28b7   : > { %12712 = vmatprep.subr.bf16.mxu1 %v12711_v43 }
0x28ba   : > { %12714 = vmatpush3.bf16.msra.mxu1 %v12711_v43 }
0x28bb   : > { %12723 = vmatprep.subr.bf16.mxu1 %v13367_v17 }
0x28bd   : > { %11994 = vmatmul.mubr.msk.f32.vlgmr.msra.gmra.mrb[64].mxu1 %vm357_vm0, %v13917_v46 }
0x28be   : > { %12011 = vmatprep.mubr.msk.f32.mxu1 %vm13368_vm1, %v13369_v27 }
0x2988   : > { %v5480_v48 = vpop.f32.mrb[62].mxu1 }
0x2989   : > { %v14092_v49 = vadd.f32 %v5480_v48, %v14042_v37  ;;  %v11973_v50 = vpop.f32.mrb[63].mxu1  ;;  %v5653_v37 = vld [vmem:[#allocation8 + $0x408] sm:$0xff] }
0x298a   : > { %v12715_v61 = vpack.c.bf16 %v5654_v57, %v5653_v37 }
0x298c   : > { %12716 = vmatprep.subr.bf16.mxu0 %v12715_v61 }
0x298d   : > { %12718 = vmatpush3.bf16.msra.mxu0 %v12715_v61 }
0x298e   : > { %12720 = vmatprep.subr.bf16.mxu0 %v12719_v63 }
0x2990   : > { %v11995_v15 = vpop.f32.mrb[64].mxu1 }
0x2991   : > { %v5650_v52 = vadd.f32 %v11995_v15, %v10908_v51  ;;  %v5644_v53 = vpop.f32.mrb[65].mxu1  ;;  %12722 = vmatpush3.bf16.msra.mxu0 %v12719_v63 }
0x2992   : > { %v5645_v45 = vadd.f32 %v10908_v51, %v5644_v53  ;;  %12727 = vmatprep.subr.bf16.mxu0 %v13367_v17  ;;  %v10925_v53 = vld [vmem:[#allocation8 + $0x30] ss:$0 sm:$0xff] }
0x2994   : > { %v12724_v55 = vpack.c.bf16 %v5650_v52, %v5645_v45  ;;  %12005 = vmatmul.mubr.msk.f32.vlgmr.msra.gmra.mrb[64].mxu0 %vm357_vm0, %v13917_v46 }
0x2995   : > { %12018 = vmatprep.mubr.msk.f32.mxu0 %vm13368_vm1, %v13369_v27 }
0x2996   : > { %12726 = vmatpush3.bf16.xpose.msk.msra.mxu1 %vm13931_vm3, %v12724_v55 }
0x2997   : > { %12021 = vmatprep.subr.mxu1 %v13369_v27 }
0x299d   : > { %12012 = vmatmul.mubr.msk.f32.vlgmr.msra.gmra.mrb[66].mxu1 %vm656_vm2, %v5561_v56 }
0x299e   : > { %12023 = vmatprep.mubr.msk.f32.mxu1 %vm13368_vm1, %v13369_v27  ;;  %12022 = vmatpush3.msra.mxu1 %v5737_v13 }
0x299f   : > { %12734 = vmatprep.subr.bf16.mxu1 %v13367_v17 }
0x2a67   : > { %v12006_v6 = vpop.f32.mrb[64].mxu0 }
0x2a68   : > { %v5734_v7 = vadd.f32 %v12006_v6, %v10911_v21  ;;  %v5728_v8 = vpop.f32.mrb[65].mxu0 }
0x2a69   : > { %v5729_v47 = vadd.f32 %v10911_v21, %v5728_v8 }
0x2a6b   : > { %v12728_v9 = vpack.c.bf16 %v5734_v7, %v5729_v47  ;;  %v6257_v47 = vld [vmem:[#allocation8 + $0x450] sm:$0xff] }
0x2a6d   : > { %12729 = vmatpush3.bf16.msra.mxu0 %v12728_v9 }
0x2a6e   : > { %12730 = vmatprep.subr.bf16.mxu0 %v13367_v17 }
0x2a70   : > { %v5813_v0 = vpop.f32.mrb[66].mxu1 }
0x2a71   : > { %v5817_v2 = vmul.f32 0.35355338, %v5813_v0  ;;  %v12013_v4 = vpop.f32.mrb[67].mxu1 }
0x2a73   : > { %v5818_v5 = vsel %vm3652_vm4, %v5817_v2, -inf }
0x2a74   : > { %5819 = vmax.xlane.f32.xlu0 %v5818_v5 }
0x2b01   : > { %v5820_v10 = vpop.xlane.xlu0 %5819 }
0x2b02   : > { %v5821_v46 = vsub.f32 %v5817_v2, %v5820_v10  ;;  %v6259_v10 = vld [vmem:[#allocation8 + $0x460] sm:$0xff] }
0x2b04   : > { %v5822_v59 = vmul.f32 1.442695, %v5821_v46 }
0x2b06   : > { %13103 = vpow2.f32 %v5822_v59 }
0x2b10   : > { %v13104_v12 = vpop.eup %13103 }
0x2b11   : > { %v5824_v1 = vsel %vm3652_vm4, %v13104_v12, 0.0 }
0x2b12   : > { %5825 = vadd.xlane.f32.xlu1 %v5824_v1 }
0x2b9f   : > { %v5826_v14 = vpop.xlane.xlu1 %5825 }
0x2ba0   : > { %13105 = vrcp.f32 %v5826_v14 }
0x2baa   : > { %v13106_v23 = vpop.eup %13105 }
0x2bab   : > { %v5828_v16 = vmul.f32 %v13106_v23, %v13104_v12 }
0x2bad   : > { %12019 = vmatmul.mubr.msk.f32.vlgmr.msra.gmra.mrb[66].mxu0 %vm3652_vm4, %v5828_v16 }
0x2bae   : > { %12733 = vmatpush3.bf16.xpose.msk.msra.mxu0 %vm13931_vm3, %v12724_v55  ;;  %12030 = vmatprep.mubr.msk.f32.mxu0 %vm13368_vm1, %v13369_v27  ;;  %v10926_v55 = vld [vmem:[#allocation8 + $0x38] ss:$0 sm:$0xff] }
0x2bb5   : > { %12031 = vmatmul.mubr.msk.f32.vlgmr.msra.gmra.mrb[68].mxu0 %vm656_vm2, %v14074_v20 }
0x2c80   : > { %v5898_v18 = vpop.f32.mrb[66].mxu0 }
0x2c81   : > { %v12020_v60 = vpop.f32.mrb[67].mxu0  ;;  %12024 = vmatmul.mubr.msk.f32.vlgmr.msra.gmra.mrb[68].mxu1 %vm656_vm2, %v5898_v18  ;;  %v6357_v18 = vld [vmem:[#allocation8 + $0x478] sm:$0xff] }
0x2c82   : > { %12736 = vmatpush3.bf16.msra.mxu1 %v12728_v9  ;;  %12037 = vmatprep.mubr.msk.f32.mxu1 %vm13368_vm1, %v13369_v27  ;;  %v6258_v9 = vld [vmem:[#allocation8 + $0x458] sm:$0xff]  ;;  %v6358_v60 = vld [vmem:[#allocation8 + $0x480] sm:$0xff] }
0x2c83   : > { %12040 = vmatprep.subr.mxu1 %v13369_v27 }
0x2c88   : > { %v6045_v19 = vpop.f32.mrb[68].mxu0 }
0x2c89   : > { %v6049_v22 = vmul.f32 0.35355338, %v6045_v19  ;;  %v12032_v24 = vpop.f32.mrb[69].mxu0  ;;  %v12745_v19 = vpack.c.bf16 %v6358_v60, %v6357_v18 }
0x2c8a   : > { %v6360_v24 = vld [vmem:[#allocation8 + $0x490] sm:$0xff] }
0x2c8b   : > { %v6050_v25 = vsel %vm3652_vm4, %v6049_v22, -inf }
0x2c8c   : > { %6051 = vmax.xlane.f32.xlu0 %v6050_v25 }
0x2d19   : > { %v6052_v26 = vpop.xlane.xlu0 %6051 }
0x2d1a   : > { %v6053_v29 = vsub.f32 %v6049_v22, %v6052_v26  ;;  %v6359_v22 = vld [vmem:[#allocation8 + $0x488] sm:$0xff]  ;;  %v6361_v26 = vld [vmem:[#allocation8 + $0x498] sm:$0xff] }
0x2d1b   : > { %v12749_v25 = vpack.c.bf16 %v6360_v24, %v6359_v22  ;;  %v10935_v24 = vld [vmem:[#allocation8 + $0x4d0] ss:$0 sm:$0xff] }
0x2d1c   : > { %v6054_v32 = vmul.f32 1.442695, %v6053_v29  ;;  %v6362_v29 = vld [vmem:[#allocation8 + $0x4a0] sm:$0xff] }
0x2d1e   : > { %13107 = vpow2.f32 %v6054_v32  ;;  %v12753_v32 = vpack.c.bf16 %v6362_v29, %v6361_v26  ;;  %v10933_v29 = vld [vmem:[#allocation8 + $0x4c0] ss:$0 sm:$0xff] }
0x2d28   : > { %v13108_v20 = vpop.eup %13107 }
0x2d29   : > { %v6056_v33 = vsel %vm3652_vm4, %v13108_v20, 0.0 }
0x2d2a   : > { %6057 = vadd.xlane.f32.xlu1 %v6056_v33  ;;  %v6364_v33 = vld [vmem:[#allocation8 + $0x4b0] sm:$0xff] }
0x2d54   : > { %v5971_v36 = vpop.f32.mrb[68].mxu1 }
0x2d55   : > { %v5975_v11 = vadd.f32 %v5971_v36, %v14078_v34  ;;  %v12025_v38 = vpop.f32.mrb[69].mxu1 }
0x2d57   : > { %v6213_v39 = vadd.f32 %v10924_v41, %v5975_v11 }
0x2d59   : > { %v14124_v28 = vadd.f32 %v6213_v39, %v13889_v31 }
0x2d5b   : > { %v6219_v40 = vsel %vm357_vm0, %v14124_v28, 0.0 }
0x2d5c   : > { %6220 = vadd.xlane.f32.xlu0 %v6219_v40 }
0x2db7   : > { %v6058_v30 = vpop.xlane.xlu1 %6057 }
0x2db8   : > { %13109 = vrcp.f32 %v6058_v30 }
0x2dc2   : > { %v13110_v42 = vpop.eup %13109 }
0x2dc3   : > { %v6060_v43 = vmul.f32 %v13110_v42, %v13108_v20  ;;  %v6363_v20 = vld [vmem:[#allocation8 + $0x4a8] sm:$0xff] }
0x2dc4   : > { %v12757_v36 = vpack.c.bf16 %v6364_v33, %v6363_v20  ;;  %v6586_v33 = vld [vmem:[#allocation8 + $0x520] sm:$0xff] }
0x2dc5   : > { %12038 = vmatmul.mubr.msk.f32.vlgmr.msra.gmra.mrb[70].mxu1 %vm3652_vm4, %v6060_v43 }
0x2dc6   : > { %12041 = vmatpush3.msra.mxu1 %v5737_v13  ;;  %12042 = vmatprep.mubr.msk.f32.mxu1 %vm13368_vm1, %v13369_v27 }
0x2dc7   : > { %12746 = vmatprep.subr.bf16.mxu1 %v12745_v19 }
0x2de9   : > { %v6221_v34 = vpop.xlane.xlu0 %6220 }
0x2dea   : > { %v6225_v54 = vmul.f32 0.03125, %v6221_v34 }
0x2dec   : > { %v6227_v44 = vsub.f32 %v14124_v28, %v6225_v54 }
0x2dee   : > { %v6229_v31 = vmul.f32 %v6227_v44, %v6227_v44 }
0x2df0   : > { %v6231_v48 = vsel %vm357_vm0, %v6229_v31, 0.0 }
0x2df1   : > { %6232 = vadd.xlane.f32.xlu0 %v6231_v48 }
0x2e7e   : > { %v6233_v50 = vpop.xlane.xlu0 %6232 }
0x2e7f   : > { %v6237_v51 = vmul.f32 0.03125, %v6233_v50 }
0x2e81   : > { %v6239_v15 = vadd.f32 1e-05, %v6237_v51 }
0x2e83   : > { %13111 = vrsqrt.f32 %v6239_v15  ;;  %v10930_v15 = vld [vmem:[#allocation8 + $0x4b8] ss:$0 sm:$0xff] }
0x2e8d   : > { %v13112_v52 = vpop.eup %13111 }
0x2e8e   : > { %v6243_v45 = vmul.f32 %v13112_v52, %v6227_v44 }
0x2e90   : > { %v6249_v56 = vmul.f32 %v10925_v53, %v6243_v45 }
0x2e92   : > { %v6255_v37 = vadd.f32 %v10926_v55, %v6249_v56 }
0x2e94   : > { %12053 = vmatprep.mubr.msk.f32.mxu0 %vm357_vm0, %v6255_v37 }
0x2e98   : > { %v6130_v57 = vpop.f32.mrb[70].mxu1 }
0x2e99   : > { %v12039_v58 = vpop.f32.mrb[71].mxu1  ;;  %12043 = vmatmul.mubr.msk.f32.vlgmr.msra.gmra.mrb[72].mxu1 %vm656_vm2, %v6130_v57 }
0x2e9a   : > { %12748 = vmatpush3.bf16.msra.mxu1 %v12745_v19 }
0x2e9b   : > { %12750 = vmatprep.subr.bf16.mxu1 %v12749_v25 }
0x2e9e   : > { %12752 = vmatpush3.bf16.msra.mxu1 %v12749_v25 }
0x2e9f   : > { %12754 = vmatprep.subr.bf16.mxu1 %v12753_v32 }
0x2ea2   : > { %12756 = vmatpush3.bf16.msra.mxu1 %v12753_v32  ;;  %v10936_v32 = vld [vmem:[#allocation8 + $0x4d8] ss:$0 sm:$0xff] }
0x2ea3   : > { %12758 = vmatprep.subr.bf16.mxu1 %v12757_v36 }
0x2ea6   : > { %12760 = vmatpush3.bf16.msra.mxu1 %v12757_v36  ;;  %v6587_v36 = vld [vmem:[#allocation8 + $0x528] sm:$0xff] }
0x2ea7   : > { %12773 = vmatprep.subr.bf16.mxu1 %v13367_v17 }
0x2f6c   : > { %v6203_v61 = vpop.f32.mrb[72].mxu1 }
0x2f6d   : > { %v6207_v62 = vadd.f32 %v6203_v61, %v14092_v49  ;;  %v12044_v63 = vpop.f32.mrb[73].mxu1  ;;  %v12737_v49 = vpack.c.bf16 %v6258_v9, %v6257_v47  ;;  %v6668_v47 = vld [vmem:[#allocation8 + $0x540] sm:$0xff] }
0x2f6f   : > { %v6214_v0 = vadd.f32 %v10924_v41, %v6207_v62  ;;  %12738 = vmatprep.subr.bf16.mxu0 %v12737_v49  ;;  %v10927_v41 = vld [vmem:[#allocation8 + $0x470] ss:$0 sm:$0xff] }
0x2f70   : > { %12740 = vmatpush3.bf16.msra.mxu0 %v12737_v49  ;;  %v6669_v49 = vld [vmem:[#allocation8 + $0x548] sm:$0xff] }
0x2f71   : > { %v14137_v2 = vadd.f32 %v6214_v0, %v13904_v35  ;;  %v6260_v35 = vld [vmem:[#allocation8 + $0x468] sm:$0xff] }
0x2f72   : > { %v12741_v46 = vpack.c.bf16 %v6260_v35, %v6259_v10  ;;  %v12774_v10 = vpack.c.bf16 %v6669_v49, %v6668_v47  ;;  %v6506_v35 = vld [vmem:[#allocation8 + $0x510] sm:$0xff] }
0x2f73   : > { %v6222_v4 = vsel %vm357_vm0, %v14137_v2, 0.0 }
0x2f74   : > { %6223 = vadd.xlane.f32.xlu1 %v6222_v4  ;;  %12742 = vmatprep.subr.bf16.mxu0 %v12741_v46 }
0x2f75   : > { %12744 = vmatpush3.bf16.msra.mxu0 %v12741_v46  ;;  %v6507_v46 = vld [vmem:[#allocation8 + $0x518] sm:$0xff] }
0x2f76   : > { %12761 = vmatprep.subr.bf16.mxu0 %v13367_v17 }
0x3001   : > { %v6224_v5 = vpop.xlane.xlu1 %6223 }
0x3002   : > { %v6226_v21 = vmul.f32 0.03125, %v6224_v5 }
0x3004   : > { %v6228_v6 = vsub.f32 %v14137_v2, %v6226_v21 }
0x3006   : > { %v6230_v7 = vmul.f32 %v6228_v6, %v6228_v6 }
0x3008   : > { %v6234_v8 = vsel %vm357_vm0, %v6230_v7, 0.0  ;;  %v6504_v7 = vld [vmem:[#allocation8 + $0x500] sm:$0xff] }
0x3009   : > { %6235 = vadd.xlane.f32.xlu1 %v6234_v8  ;;  %v6505_v8 = vld [vmem:[#allocation8 + $0x508] sm:$0xff] }
0x300a   : > { %v12762_v9 = vpack.c.bf16 %v6505_v8, %v6504_v7 }
0x3096   : > { %v6236_v59 = vpop.xlane.xlu1 %6235 }
0x3097   : > { %v6238_v12 = vmul.f32 0.03125, %v6236_v59  ;;  %v6670_v59 = vld [vmem:[#allocation8 + $0x550] sm:$0xff] }
0x3099   : > { %v6240_v1 = vadd.f32 1e-05, %v6238_v12  ;;  %v12765_v12 = vpack.c.bf16 %v6507_v46, %v6506_v35 }
0x309b   : > { %13113 = vrsqrt.f32 %v6240_v1  ;;  %v6671_v1 = vld [vmem:[#allocation8 + $0x558] sm:$0xff] }
0x30a5   : > { %v13114_v13 = vpop.eup %13113 }
0x30a6   : > { %v6244_v14 = vmul.f32 %v13114_v13, %v6228_v6  ;;  %v12777_v13 = vpack.c.bf16 %v6671_v1, %v6670_v59 }
0x30a8   : > { %v6250_v23 = vmul.f32 %v10925_v53, %v6244_v14 }
0x30aa   : > { %v6256_v16 = vadd.f32 %v10926_v55, %v6250_v23 }
0x30ac   : > { %12054 = vmatmul.mubr.msk.f32.vlgmr.msra.gmra.mrb[70].mxu0 %vm357_vm0, %v6256_v16 }
0x30ad   : > { %12083 = vmatprep.mubr.msk.f32.mxu0 %vm13368_vm1, %v13369_v27  ;;  %12763 = vmatpush3.bf16.msra.mxu0 %v12762_v9  ;;  %v14203_v9 = vld [vmem:[%s13715_s11] sm:$0xff] }
0x30ae   : > { %12764 = vmatprep.subr.bf16.mxu0 %v13367_v17 }
0x30b1   : > { %12766 = vmatpush3.bf16.msra.mxu0 %v12765_v12 }
0x30b2   : > { %12767 = vmatprep.subr.bf16.mxu0 %v13367_v17 }
0x317f   : > { %v12055_v11 = vpop.f32.mrb[70].mxu0 }
0x3180   : > { %v6344_v38 = vadd.f32 %v12055_v11, %v10927_v41  ;;  %v6338_v39 = vpop.f32.mrb[71].mxu0  ;;  %v10934_v11 = vld [vmem:[#allocation8 + $0x4c8] ss:$0 sm:$0xff] }
0x3181   : > { %v6339_v40 = vadd.f32 %v10927_v41, %v6338_v39 }
0x3182   : > { %v6350_v30 = vmul.f32 0.70710677, %v6344_v38  ;;  %v6348_v48 = vmul.f32 0.5, %v6344_v38 }
0x3183   : > { %v6349_v42 = vmul.f32 0.70710677, %v6339_v40  ;;  %v6347_v44 = vmul.f32 0.5, %v6339_v40  ;;  %v12768_v40 = vpack.c.bf16 %v6587_v36, %v6586_v33  ;;  %v10948_v36 = vld [vmem:[#allocation8 + $0x5f0] ss:$0 sm:$0xff] }
0x3184   : > { %13115 = verf.f32 %v6350_v30 }
0x3185   : > { %13117 = verf.f32 %v6349_v42  ;;  %v6588_v42 = vld [vmem:[#allocation8 + $0x530] sm:$0xff] }
0x318e   : > { %v13116_v43 = vpop.eup %13115 }
0x318f   : > { %v13118_v34 = vpop.eup %13117  ;;  %v6354_v54 = vadd.f32 1.0, %v13116_v43  ;;  %v6589_v43 = vld [vmem:[#allocation8 + $0x538] sm:$0xff] }
0x3190   : > { %v6353_v31 = vadd.f32 1.0, %v13118_v34  ;;  %v12771_v34 = vpack.c.bf16 %v6589_v43, %v6588_v42  ;;  %v10950_v42 = vld [vmem:[#allocation8 + $0x5f8] ss:$0 sm:$0xff] }
0x3191   : > { %v6356_v51 = vmul.f32 %v6354_v54, %v6348_v48  ;;  %v10941_v54 = vld [vmem:[#allocation8 + $0x578] ss:$0 sm:$0xff] }
0x3192   : > { %v6355_v50 = vmul.f32 %v6353_v31, %v6347_v44 }
0x3194   : > { %12072 = vmatprep.mubr.msk.f32.mxu1 %vm6370_vm5, %v6355_v50 }
0x3195   : > { %12073 = vmatmul.mubr.msk.f32.vlgmr.msra.gmra.mrb[74].mxu1 %vm6370_vm5, %v6356_v51 }
0x3196   : > { %12105 = vmatprep.mubr.msk.f32.mxu1 %vm13368_vm1, %v13369_v27  ;;  %12775 = vmatpush3.bf16.msra.mxu1 %v12774_v10 }
0x3197   : > { %12776 = vmatprep.subr.bf16.mxu1 %v13367_v17 }
0x319a   : > { %12778 = vmatpush3.bf16.msra.mxu1 %v12777_v13 }
0x319b   : > { %12113 = vmatprep.subr.mxu1 %v13369_v27 }
0x3268   : > { %v12074_v52 = vpop.f32.mrb[74].mxu1 }
0x3269   : > { %v6449_v53 = vadd.f32 %v12074_v52, %v10930_v15  ;;  %v6443_v45 = vpop.f32.mrb[75].mxu1 }
0x326a   : > { %v6444_v55 = vadd.f32 %v10930_v15, %v6443_v45  ;;  %v10939_v15 = vld [vmem:[#allocation8 + $0x570] ss:$0 sm:$0xff]  ;;  %v6911_v45 = vld [vmem:[#allocation8 + $0x588] sm:$0xff] }
0x326b   : > { %v6453_v56 = vadd.f32 %v6449_v53, %v14137_v2  ;;  %v6910_v53 = vld [vmem:[#allocation8 + $0x580] sm:$0xff] }
0x326c   : > { %v14154_v37 = vadd.f32 %v6444_v55, %v14124_v28  ;;  %v10937_v55 = vld [vmem:[#allocation8 + $0x568] ss:$0 sm:$0xff] }
0x326d   : > { %v6481_v57 = vsel %vm357_vm0, %v6453_v56, 0.0 }
0x326e   : > { %6482 = vadd.xlane.f32.xlu1 %v6481_v57  ;;  %v6456_v58 = vsel %vm357_vm0, %v14154_v37, 0.0 }
0x326f   : > { %6457 = vadd.xlane.f32.xlu0 %v6456_v58  ;;  %v12780_v58 = vpack.c.bf16 %v6911_v45, %v6910_v53 }
0x32fb   : > { %v6483_v61 = vpop.xlane.xlu1 %6482 }
0x32fc   : > { %v6484_v62 = vmul.f32 0.03125, %v6483_v61  ;;  %v6458_v63 = vpop.xlane.xlu0 %6457 }
0x32fd   : > { %v6459_v0 = vmul.f32 0.03125, %v6458_v63  ;;  %v6913_v63 = vld [vmem:[#allocation8 + $0x598] sm:$0xff] }
0x32fe   : > { %v6485_v4 = vsub.f32 %v6453_v56, %v6484_v62  ;;  %v6912_v62 = vld [vmem:[#allocation8 + $0x590] sm:$0xff] }
0x32ff   : > { %v6460_v5 = vsub.f32 %v14154_v37, %v6459_v0  ;;  %v12783_v0 = vpack.c.bf16 %v6913_v63, %v6912_v62  ;;  %v7535_v62 = vld [vmem:[#allocation8 + $0x620] sm:$0xff]  ;;  %v7536_v63 = vld [vmem:[#allocation8 + $0x628] sm:$0xff] }
0x3300   : > { %v6486_v21 = vmul.f32 %v6485_v4, %v6485_v4 }
0x3301   : > { %v6461_v6 = vmul.f32 %v6460_v5, %v6460_v5 }
0x3302   : > { %v6487_v2 = vsel %vm357_vm0, %v6486_v21, 0.0 }
0x3303   : > { %6488 = vadd.xlane.f32.xlu1 %v6487_v2  ;;  %v6462_v28 = vsel %vm357_vm0, %v6461_v6, 0.0  ;;  %v7070_v6 = vld [vmem:[#allocation8 + $0x5d0] sm:$0xff]  ;;  %v7071_v2 = vld [vmem:[#allocation8 + $0x5d8] sm:$0xff] }
0x3304   : > { %6463 = vadd.xlane.f32.xlu0 %v6462_v28  ;;  %v12795_v28 = vpack.c.bf16 %v7071_v2, %v7070_v6  ;;  %v7456_v6 = vld [vmem:[#allocation8 + $0x600] sm:$0xff]  ;;  %v7457_v2 = vld [vmem:[#allocation8 + $0x608] sm:$0xff] }
0x3390   : > { %v6489_v14 = vpop.xlane.xlu1 %6488 }
0x3391   : > { %v6490_v23 = vmul.f32 0.03125, %v6489_v14  ;;  %v6464_v16 = vpop.xlane.xlu0 %6463 }
0x3392   : > { %v6465_v18 = vmul.f32 0.03125, %v6464_v16 }
0x3393   : > { %v6491_v60 = vadd.f32 1e-05, %v6490_v23 }
0x3394   : > { %v6466_v19 = vadd.f32 1e-05, %v6465_v18 }
0x3395   : > { %13119 = vrsqrt.f32 %v6491_v60  ;;  %v6989_v60 = vld [vmem:[#allocation8 + $0x5a0] sm:$0xff] }
0x3396   : > { %13121 = vrsqrt.f32 %v6466_v19  ;;  %v6990_v19 = vld [vmem:[#allocation8 + $0x5a8] sm:$0xff] }
0x339f   : > { %v13120_v22 = vpop.eup %13119 }
0x33a0   : > { %v13122_v25 = vpop.eup %13121  ;;  %v6493_v26 = vmul.f32 %v13120_v22, %v6485_v4  ;;  %v7068_v4 = vld [vmem:[#allocation8 + $0x5c0] sm:$0xff] }
0x33a1   : > { %v6468_v20 = vmul.f32 %v13122_v25, %v6460_v5  ;;  %v7069_v5 = vld [vmem:[#allocation8 + $0x5c8] sm:$0xff] }
0x33a2   : > { %v6498_v41 = vmul.f32 %v10935_v24, %v6493_v26  ;;  %v12792_v21 = vpack.c.bf16 %v7069_v5, %v7068_v4  ;;  %v12786_v24 = vpack.c.bf16 %v6990_v19, %v6989_v60  ;;  %v6991_v26 = vld [vmem:[#allocation8 + $0x5b0] sm:$0xff]  ;;  %v7538_v5 = vld [vmem:[#allocation8 + $0x638] sm:$0xff] }
0x33a3   : > { %v6473_v38 = vmul.f32 %v10933_v29, %v6468_v20  ;;  %v6992_v29 = vld [vmem:[#allocation8 + $0x5b8] sm:$0xff]  ;;  %v7537_v4 = vld [vmem:[#allocation8 + $0x630] sm:$0xff] }
0x33a4   : > { %v14166_v39 = vadd.f32 %v10936_v32, %v6498_v41  ;;  %v12789_v32 = vpack.c.bf16 %v6992_v29, %v6991_v26  ;;  %v10957_v26 = vld [vmem:[#allocation8 + $0x668] ss:$0 sm:$0xff] }
0x33a5   : > { %v14168_v30 = vadd.f32 %v10934_v11, %v6473_v38  ;;  %v10946_v11 = vld [vmem:[#allocation8 + $0x5e8] ss:$0 sm:$0xff] }
0x33a6   : > { %12106 = vmatmul.mubr.msk.f32.vlgmr.msra.gmra.mrb[76].mxu1 %vm357_vm0, %v14166_v39 }
0x33a7   : > { %12084 = vmatmul.mubr.msk.f32.vlgmr.msra.gmra.mrb[72].mxu0 %vm357_vm0, %v14168_v30  ;;  %12115 = vmatprep.mubr.msk.f32.mxu1 %vm13368_vm1, %v13369_v27 }
0x33a8   : > { %12769 = vmatpush3.bf16.msra.mxu0 %v12768_v40  ;;  %12094 = vmatprep.mubr.msk.f32.mxu0 %vm13368_vm1, %v13369_v27 }
0x33a9   : > { %12770 = vmatprep.subr.bf16.mxu0 %v13367_v17 }
0x33ac   : > { %12772 = vmatpush3.bf16.msra.mxu0 %v12771_v34 }
0x33ad   : > { %12108 = vmatprep.subr.mxu0 %v13369_v27 }
0x33af   : > { %12095 = vmatmul.mubr.msk.f32.vlgmr.msra.gmra.mrb[74].mxu0 %vm357_vm0, %v14166_v39 }
0x33b0   : > { %12110 = vmatprep.mubr.msk.f32.mxu0 %vm13368_vm1, %v13369_v27 }
0x3479   : > { %v6743_v44 = vpop.f32.mrb[76].mxu1 }
0x347a   : > { %v6744_v31 = vadd.f32 %v10941_v54, %v6743_v44  ;;  %v6582_v48 = vpop.f32.mrb[72].mxu0  ;;  %v12107_v50 = vpop.f32.mrb[77].mxu1 }
0x347b   : > { %v12085_v51 = vpop.f32.mrb[73].mxu0  ;;  %v6583_v61 = vadd.f32 %v10937_v55, %v6582_v48  ;;  %v7147_v55 = vld [vmem:[#allocation8 + $0x5e0] sm:$0xff] }
0x347c   : > { %12114 = vmatpush3.msra.mxu1 %v6744_v31 }
0x347d   : > { %12785 = vmatprep.subr.bf16.mxu1 %v13367_v17 }
0x3482   : > { %v6664_v52 = vpop.f32.mrb[74].mxu0 }
0x3483   : > { %v6665_v56 = vadd.f32 %v10939_v15, %v6664_v52  ;;  %v12096_v57 = vpop.f32.mrb[75].mxu0 }
0x3485   : > { %12109 = vmatpush3.xpose.msk.msra.mxu0 %vm656_vm2, %v6665_v56 }
0x3486   : > { %12779 = vmatprep.subr.bf16.mxu0 %v13367_v17 }
0x3488   : > { %12111 = vmatmul.mubr.msk.f32.vlgmr.msra.gmra.mrb[76].mxu0 %vm656_vm2, %v6583_v61  ;;  %v6747_v61 = vld [vmem:[#allocation8 + $0x560] sm:$0xff] }
0x3489   : > { %12781 = vmatpush3.bf16.msra.mxu0 %v12780_v58  ;;  %12126 = vmatprep.mubr.msk.f32.mxu0 %vm13368_vm1, %v13369_v27 }
0x348a   : > { %12782 = vmatprep.subr.bf16.mxu0 %v13367_v17 }
0x348d   : > { %12784 = vmatpush3.bf16.msra.mxu0 %v12783_v0  ;;  %v12804_v0 = vpack.c.bf16 %v7536_v63, %v7535_v62  ;;  %v8088_v62 = vld [vmem:[#allocation8 + $0x6c0] sm:$0xff]  ;;  %v8089_v63 = vld [vmem:[#allocation8 + $0x6c8] sm:$0xff] }
0x348e   : > { %12791 = vmatprep.subr.bf16.mxu0 %v13367_v17 }
0x3490   : > { %12127 = vmatmul.mubr.msk.f32.vlgmr.msra.gmra.mrb[78].mxu0 %vm357_vm0, %v14168_v30 }
0x3491   : > { %12793 = vmatpush3.bf16.msra.mxu0 %v12792_v21  ;;  %12148 = vmatprep.mubr.msk.f32.mxu0 %vm13368_vm1, %v13369_v27  ;;  %v12807_v21 = vpack.c.bf16 %v7538_v5, %v7537_v4  ;;  %v8090_v4 = vld [vmem:[#allocation8 + $0x6d0] sm:$0xff]  ;;  %v8091_v5 = vld [vmem:[#allocation8 + $0x6d8] sm:$0xff] }
0x3492   : > { %12794 = vmatprep.subr.bf16.mxu0 %v13367_v17 }
0x3495   : > { %12796 = vmatpush3.bf16.msra.mxu0 %v12795_v28  ;;  %v12798_v28 = vpack.c.bf16 %v7457_v2, %v7456_v6  ;;  %v8009_v6 = vld [vmem:[#allocation8 + $0x6a0] sm:$0xff]  ;;  %v8010_v2 = vld [vmem:[#allocation8 + $0x6a8] sm:$0xff] }
0x3496   : > { %12161 = vmatprep.subr.mxu0 %v13369_v27 }
0x3498   : > { %12149 = vmatmul.mubr.msk.f32.vlgmr.msra.gmra.mrb[80].mxu0 %vm357_vm0, %v14166_v39 }
0x3499   : > { %12163 = vmatprep.mubr.msk.f32.mxu0 %vm13368_vm1, %v13369_v27  ;;  %12162 = vmatpush3.msra.mxu0 %v7147_v55 }
0x349a   : > { %12797 = vmatprep.subr.bf16.mxu0 %v13367_v17 }
0x355b   : > { %v6820_v7 = vpop.f32.mrb[76].mxu0 }
0x355c   : > { %v6824_v8 = vmul.f32 0.35355338, %v6820_v7  ;;  %v12112_v47 = vpop.f32.mrb[77].mxu0  ;;  %v7458_v7 = vld [vmem:[#allocation8 + $0x610] sm:$0xff] }
0x355e   : > { %v6825_v49 = vadd.f32 %v14203_v9, %v6824_v8  ;;  %v7459_v8 = vld [vmem:[#allocation8 + $0x618] sm:$0xff] }
0x3560   : > { %v6826_v10 = vsel %vm656_vm2, %v6825_v49, -inf }
0x3561   : > { %6827 = vmax.xlane.f32.xlu0 %v6826_v10  ;;  %v12801_v10 = vpack.c.bf16 %v7459_v8, %v7458_v7  ;;  %v8012_v7 = vld [vmem:[#allocation8 + $0x6b8] sm:$0xff] }
0x3563   : > { %v6985_v35 = vpop.f32.mrb[78].mxu0 }
0x3564   : > { %v12128_v46 = vpop.f32.mrb[79].mxu0  ;;  %v6986_v43 = vadd.f32 %v10946_v11, %v6985_v35  ;;  %v7614_v35 = vld [vmem:[#allocation8 + $0x640] sm:$0xff] }
0x3565   : > { %v7615_v46 = vld [vmem:[#allocation8 + $0x648] sm:$0xff] }
0x356b   : > { %v7143_v59 = vpop.f32.mrb[80].mxu0 }
0x356c   : > { %v12150_v12 = vpop.f32.mrb[81].mxu0  ;;  %v7144_v34 = vadd.f32 %v10950_v42, %v7143_v59 }
0x35ee   : > { %v6828_v1 = vpop.xlane.xlu0 %6827 }
0x35ef   : > { %v6829_v13 = vsub.f32 %v6825_v49, %v6828_v1  ;;  %v12810_v1 = vpack.c.bf16 %v7615_v46, %v7614_v35 }
0x35f1   : > { %v6830_v14 = vmul.f32 1.442695, %v6829_v13  ;;  %v7616_v13 = vld [vmem:[#allocation8 + $0x650] sm:$0xff] }
0x35f3   : > { %13123 = vpow2.f32 %v6830_v14  ;;  %v7617_v14 = vld [vmem:[#allocation8 + $0x658] sm:$0xff] }
0x35fd   : > { %v13124_v23 = vpop.eup %13123 }
0x35fe   : > { %v6832_v16 = vsel %vm656_vm2, %v13124_v23, 0.0 }
0x35ff   : > { %6833 = vadd.xlane.f32.xlu1 %v6832_v16  ;;  %v12813_v16 = vpack.c.bf16 %v7617_v14, %v7616_v13  ;;  %v10969_v14 = vld [vmem:[#allocation8 + $0x6f0] ss:$0 sm:$0xff] }
0x368c   : > { %v6834_v18 = vpop.xlane.xlu1 %6833 }
0x368d   : > { %13125 = vrcp.f32 %v6834_v18 }
0x3697   : > { %v13126_v22 = vpop.eup %13125 }
0x3698   : > { %v6836_v25 = vmul.f32 %v13126_v22, %v13124_v23  ;;  %v10959_v23 = vld [vmem:[#allocation8 + $0x670] ss:$0 sm:$0xff] }
0x369a   : > { %12116 = vmatmul.mubr.msk.f32.vlgmr.msra.gmra.mrb[78].mxu1 %vm656_vm2, %v6836_v25 }
0x369b   : > { %12787 = vmatpush3.bf16.msra.mxu1 %v12786_v24  ;;  %12137 = vmatprep.mubr.msk.f32.mxu1 %vm13368_vm1, %v13369_v27 }
0x369c   : > { %12788 = vmatprep.subr.bf16.mxu1 %v13367_v17 }
0x369f   : > { %12790 = vmatpush3.bf16.msra.mxu1 %v12789_v32 }
0x36a0   : > { %12151 = vmatprep.subr.mxu1 %v13369_v27 }
0x36a2   : > { %12138 = vmatmul.mubr.msk.f32.vlgmr.msra.gmra.mrb[80].mxu1 %vm357_vm0, %v14166_v39 }
0x36a3   : > { %12153 = vmatprep.mubr.msk.f32.mxu1 %vm13368_vm1, %v13369_v27 }
0x376d   : > { %v6906_v20 = vpop.f32.mrb[78].mxu1 }
0x376e   : > { %v12117_v33 = vpop.f32.mrb[79].mxu1 }
0x376f   : > { %v10961_v33 = vld [vmem:[#allocation8 + $0x678] ss:$0 sm:$0xff] }
0x3775   : > { %v7064_v41 = vpop.f32.mrb[80].mxu1 }
0x3776   : > { %v7065_v38 = vadd.f32 %v10948_v36, %v7064_v41  ;;  %v12139_v40 = vpop.f32.mrb[81].mxu1 }
0x3778   : > { %12152 = vmatpush3.xpose.msk.msra.mxu1 %vm656_vm2, %v7065_v38 }
0x3779   : > { %12156 = vmatprep.subr.mxu1 %v13369_v27 }
0x377b   : > { %12154 = vmatmul.mubr.msk.f32.vlgmr.msra.gmra.mrb[82].mxu1 %vm656_vm2, %v6986_v43 }
0x377c   : > { %12157 = vmatpush3.msra.mxu1 %v7144_v34  ;;  %12158 = vmatprep.mubr.msk.f32.mxu1 %vm13368_vm1, %v13369_v27 }
0x377d   : > { %12166 = vmatprep.subr.mxu1 %v13369_v27 }
0x384e   : > { %v7220_v54 = vpop.f32.mrb[82].mxu1 }
0x384f   : > { %v7224_v44 = vmul.f32 0.35355338, %v7220_v54  ;;  %v12155_v31 = vpop.f32.mrb[83].mxu1 }
0x3851   : > { %v7225_v48 = vadd.f32 %v14203_v9, %v7224_v44 }
0x3853   : > { %v7226_v50 = vsel %vm656_vm2, %v7225_v48, -inf }
0x3854   : > { %7227 = vmax.xlane.f32.xlu0 %v7226_v50 }
0x38e1   : > { %v7228_v51 = vpop.xlane.xlu0 %7227 }
0x38e2   : > { %v7229_v15 = vsub.f32 %v7225_v48, %v7228_v51  ;;  %v7693_v51 = vld [vmem:[#allocation8 + $0x660] sm:$0xff] }
0x38e4   : > { %v7230_v52 = vmul.f32 1.442695, %v7229_v15 }
0x38e6   : > { %13127 = vpow2.f32 %v7230_v52  ;;  %v7930_v52 = vld [vmem:[#allocation8 + $0x680] sm:$0xff] }
0x38f0   : > { %v13128_v53 = vpop.eup %13127 }
0x38f1   : > { %v7232_v45 = vsel %vm656_vm2, %v13128_v53, 0.0 }
0x38f2   : > { %7233 = vadd.xlane.f32.xlu1 %v7232_v45 }
0x397f   : > { %v7234_v56 = vpop.xlane.xlu1 %7233 }
0x3980   : > { %13129 = vrcp.f32 %v7234_v56 }
0x398a   : > { %v13130_v57 = vpop.eup %13129 }
0x398b   : > { %v7236_v58 = vmul.f32 %v13130_v57, %v13128_v53  ;;  %v7931_v53 = vld [vmem:[#allocation8 + $0x688] sm:$0xff]  ;;  %v7932_v57 = vld [vmem:[#allocation8 + $0x690] sm:$0xff] }
0x398c   : > { %v12816_v55 = vpack.c.bf16 %v7931_v53, %v7930_v52 }
0x398d   : > { %12159 = vmatmul.mubr.msk.f32.vlgmr.msra.gmra.mrb[84].mxu1 %vm656_vm2, %v7236_v58  ;;  %v7933_v58 = vld [vmem:[#allocation8 + $0x698] sm:$0xff] }
0x398e   : > { %12167 = vmatpush3.msra.mxu1 %v6747_v61  ;;  %12168 = vmatprep.mubr.msk.f32.mxu1 %vm13368_vm1, %v13369_v27  ;;  %v12819_v61 = vpack.c.bf16 %v7933_v58, %v7932_v57  ;;  %v8518_v58 = vld [vmem:[#allocation8 + $0x728] sm:$0xff] }
0x398f   : > { %12803 = vmatprep.subr.bf16.mxu1 %v13367_v17 }
0x3991   : > { %12169 = vmatmul.mubr.msk.f32.vlgmr.msra.gmra.mrb[86].mxu1 %vm656_vm2, %v6906_v20 }
0x3992   : > { %12805 = vmatpush3.bf16.msra.mxu1 %v12804_v0  ;;  %12190 = vmatprep.mubr.msk.f32.mxu1 %vm13368_vm1, %v13369_v27  ;;  %v12828_v0 = vpack.c.bf16 %v8089_v63, %v8088_v62  ;;  %v8521_v63 = vld [vmem:[#allocation8 + $0x740] sm:$0xff] }
0x3993   : > { %12806 = vmatprep.subr.bf16.mxu1 %v13367_v17 }
0x3996   : > { %12808 = vmatpush3.bf16.msra.mxu1 %v12807_v21  ;;  %v12831_v21 = vpack.c.bf16 %v8091_v5, %v8090_v4  ;;  %v14319_v4 = vld [vmem:[%s13644_s18 + $0x8] sm:$0xff] }
0x3997   : > { %12204 = vmatprep.subr.mxu1 %v13369_v27  ;;  %v8436_v5 = vld [vmem:[#allocation8 + $0x708] sm:$0xff] }
0x3999   : > { %12191 = vmatmul.mubr.msk.f32.vlgmr.msra.gmra.mrb[88].mxu1 %vm357_vm0, %v14166_v39 }
0x399a   : > { %12206 = vmatprep.mubr.msk.f32.mxu1 %vm13368_vm1, %v13369_v27 }
0x3a60   : > { %v7306_v47 = vpop.f32.mrb[84].mxu1 }
0x3a61   : > { %v12160_v49 = vpop.f32.mrb[85].mxu1  ;;  %12164 = vmatmul.mubr.msk.f32.vlgmr.msra.gmra.mrb[82].mxu0 %vm656_vm2, %v7306_v47 }
0x3a62   : > { %12799 = vmatpush3.bf16.msra.mxu0 %v12798_v28  ;;  %12179 = vmatprep.mubr.msk.f32.mxu0 %vm13368_vm1, %v13369_v27  ;;  %v12822_v28 = vpack.c.bf16 %v8010_v2, %v8009_v6  ;;  %v8438_v2 = vld [vmem:[#allocation8 + $0x718] sm:$0xff] }
0x3a63   : > { %12800 = vmatprep.subr.bf16.mxu0 %v13367_v17 }
0x3a64   : > { %v7452_v59 = vpop.f32.mrb[86].mxu1 }
0x3a65   : > { %v12170_v12 = vpop.f32.mrb[87].mxu1 }
0x3a66   : > { %12802 = vmatpush3.bf16.msra.mxu0 %v12801_v10 }
0x3a67   : > { %12809 = vmatprep.subr.bf16.mxu0 %v13367_v17 }
0x3a69   : > { %12180 = vmatmul.mubr.msk.f32.vlgmr.msra.gmra.mrb[84].mxu0 %vm357_vm0, %v14168_v30 }
0x3a6a   : > { %12811 = vmatpush3.bf16.msra.mxu0 %v12810_v1  ;;  %12201 = vmatprep.mubr.msk.f32.mxu0 %vm13368_vm1, %v13369_v27 }
0x3a6b   : > { %12812 = vmatprep.subr.bf16.mxu0 %v13367_v17 }
0x3a6c   : > { %v7610_v18 = vpop.f32.mrb[88].mxu1 }
0x3a6d   : > { %v7611_v60 = vadd.f32 %v10959_v23, %v7610_v18  ;;  %v12192_v19 = vpop.f32.mrb[89].mxu1 }
0x3a6e   : > { %12814 = vmatpush3.bf16.msra.mxu0 %v12813_v16  ;;  %v10967_v16 = vld [vmem:[#allocation8 + $0x6e8] ss:$0 sm:$0xff]  ;;  %v10971_v19 = vld [vmem:[#allocation8 + $0x6f8] ss:$0 sm:$0xff] }
0x3a6f   : > { %12205 = vmatpush3.xpose.msk.msra.mxu1 %vm656_vm2, %v7611_v60  ;;  %12214 = vmatprep.subr.mxu0 %v13369_v27 }
0x3a70   : > { %12209 = vmatprep.subr.mxu1 %v13369_v27 }
0x3a71   : > { %12202 = vmatmul.mubr.msk.f32.vlgmr.msra.gmra.mrb[86].mxu0 %vm357_vm0, %v14166_v39 }
0x3a72   : > { %12216 = vmatprep.mubr.msk.f32.mxu0 %vm13368_vm1, %v13369_v27  ;;  %12215 = vmatpush3.msra.mxu0 %v7693_v51 }
0x3a73   : > { %12821 = vmatprep.subr.bf16.mxu0 %v13367_v17 }
0x3b34   : > { %v7379_v22 = vpop.f32.mrb[82].mxu0 }
0x3b35   : > { %v14257_v24 = vadd.f32 %v7452_v59, %v7379_v22  ;;  %v12165_v25 = vpop.f32.mrb[83].mxu0 }
0x3b3c   : > { %v7531_v29 = vpop.f32.mrb[84].mxu0 }
0x3b3d   : > { %v7532_v32 = vadd.f32 %v10957_v26, %v7531_v29  ;;  %v12181_v20 = vpop.f32.mrb[85].mxu0 }
0x3b3f   : > { %12207 = vmatmul.mubr.msk.f32.vlgmr.msra.gmra.mrb[90].mxu1 %vm656_vm2, %v7532_v32 }
0x3b40   : > { %12211 = vmatprep.mubr.msk.f32.mxu1 %vm13368_vm1, %v13369_v27 }
0x3b44   : > { %v7689_v36 = vpop.f32.mrb[86].mxu0 }
0x3b45   : > { %v7690_v41 = vadd.f32 %v10961_v33, %v7689_v36  ;;  %v12203_v11 = vpop.f32.mrb[87].mxu0 }
0x3b47   : > { %12210 = vmatpush3.msra.mxu1 %v7690_v41 }
0x3b48   : > { %12815 = vmatprep.subr.bf16.mxu1 %v13367_v17 }
0x3c12   : > { %v7766_v38 = vpop.f32.mrb[90].mxu1 }
0x3c13   : > { %v7770_v40 = vmul.f32 0.35355338, %v7766_v38  ;;  %v12208_v42 = vpop.f32.mrb[91].mxu1  ;;  %v8167_v38 = vld [vmem:[#allocation8 + $0x6e0] sm:$0xff] }
0x3c15   : > { %v7771_v43 = vadd.f32 %v14203_v9, %v7770_v40 }
0x3c17   : > { %v7772_v34 = vsel %vm656_vm2, %v7771_v43, -inf }
0x3c18   : > { %7773 = vmax.xlane.f32.xlu0 %v7772_v34 }
0x3ca5   : > { %v7774_v54 = vpop.xlane.xlu0 %7773 }
0x3ca6   : > { %v7775_v44 = vsub.f32 %v7771_v43, %v7774_v54  ;;  %v14306_v54 = vld [vmem:[%s13644_s18] sm:$0xff] }
0x3ca8   : > { %v7776_v31 = vmul.f32 1.442695, %v7775_v44 }
0x3caa   : > { %13131 = vpow2.f32 %v7776_v31  ;;  %v10977_v31 = vld [vmem:[#allocation8 + $0x700] ss:$0 sm:$0xff] }
0x3cb4   : > { %v13132_v48 = vpop.eup %13131 }
0x3cb5   : > { %v7778_v50 = vsel %vm656_vm2, %v13132_v48, 0.0 }
0x3cb6   : > { %7779 = vadd.xlane.f32.xlu1 %v7778_v50 }
0x3d43   : > { %v7780_v15 = vpop.xlane.xlu1 %7779 }
0x3d44   : > { %13133 = vrcp.f32 %v7780_v15 }
0x3d4e   : > { %v13134_v45 = vpop.eup %13133 }
0x3d4f   : > { %v7782_v56 = vmul.f32 %v13134_v45, %v13132_v48 }
0x3d51   : > { %12212 = vmatmul.mubr.msk.f32.vlgmr.msra.gmra.mrb[92].mxu1 %vm656_vm2, %v7782_v56 }
0x3d52   : > { %12817 = vmatpush3.bf16.msra.mxu1 %v12816_v55  ;;  %12227 = vmatprep.mubr.msk.f32.mxu1 %vm13368_vm1, %v13369_v27 }
0x3d53   : > { %12818 = vmatprep.subr.bf16.mxu1 %v13367_v17 }
0x3d56   : > { %12820 = vmatpush3.bf16.msra.mxu1 %v12819_v61  ;;  %v8519_v61 = vld [vmem:[#allocation8 + $0x730] sm:$0xff] }
0x3d57   : > { %12827 = vmatprep.subr.bf16.mxu1 %v13367_v17  ;;  %v12839_v62 = vpack.c.bf16 %v8519_v61, %v8518_v58 }
0x3d59   : > { %12228 = vmatmul.mubr.msk.f32.vlgmr.msra.gmra.mrb[94].mxu1 %vm357_vm0, %v14168_v30  ;;  %v8011_v30 = vld [vmem:[#allocation8 + $0x6b0] sm:$0xff] }
0x3d5a   : > { %12829 = vmatpush3.bf16.msra.mxu1 %v12828_v0  ;;  %12249 = vmatprep.mubr.msk.f32.mxu1 %vm13368_vm1, %v13369_v27  ;;  %v12825_v49 = vpack.c.bf16 %v8012_v7, %v8011_v30 }
0x3d5b   : > { %12830 = vmatprep.subr.bf16.mxu1 %v13367_v17 }
0x3d5e   : > { %12832 = vmatpush3.bf16.msra.mxu1 %v12831_v21  ;;  %v8437_v21 = vld [vmem:[#allocation8 + $0x710] sm:$0xff] }
0x3d5f   : > { %12262 = vmatprep.subr.mxu1 %v13369_v27  ;;  %v12834_v6 = vpack.c.bf16 %v8437_v21, %v8436_v5  ;;  %v8932_v5 = vld [vmem:[#allocation8 + $0x7b8] sm:$0xff]  ;;  %v8933_v21 = vld [vmem:[#allocation8 + $0x7c0] sm:$0xff] }
0x3d61   : > { %12250 = vmatmul.mubr.msk.f32.vlgmr.msra.gmra.mrb[96].mxu1 %vm357_vm0, %v14166_v39 }
0x3d62   : > { %12264 = vmatprep.mubr.msk.f32.mxu1 %vm13368_vm1, %v13369_v27  ;;  %12263 = vmatpush3.msra.mxu1 %v8167_v38  ;;  %v8605_v38 = vld [vmem:[#allocation8 + $0x760] sm:$0xff] }
0x3d63   : > { %12840 = vmatprep.subr.bf16.mxu1 %v12839_v62 }
0x3e24   : > { %v7852_v8 = vpop.f32.mrb[92].mxu1 }
0x3e25   : > { %v12213_v47 = vpop.f32.mrb[93].mxu1  ;;  %12217 = vmatmul.mubr.msk.f32.vlgmr.msra.gmra.mrb[88].mxu0 %vm656_vm2, %v7852_v8 }
0x3e26   : > { %12823 = vmatpush3.bf16.msra.mxu0 %v12822_v28  ;;  %12238 = vmatprep.mubr.msk.f32.mxu0 %vm13368_vm1, %v13369_v27  ;;  %v8439_v28 = vld [vmem:[#allocation8 + $0x720] sm:$0xff] }
0x3e27   : > { %12824 = vmatprep.subr.bf16.mxu0 %v13367_v17  ;;  %v12837_v30 = vpack.c.bf16 %v8439_v28, %v8438_v2  ;;  %v12872_v28 = vpack.c.bf16 %v8933_v21, %v8932_v5  ;;  %v11008_v5 = vld [vmem:[#allocation8 + $0x878] ss:$0 sm:$0xff] }
0x3e2a   : > { %12826 = vmatpush3.bf16.msra.mxu0 %v12825_v49 }
0x3e2b   : > { %12252 = vmatprep.subr.mxu0 %v13369_v27 }
0x3e2c   : > { %v8005_v10 = vpop.f32.mrb[94].mxu1 }
0x3e2d   : > { %v12229_v35 = vpop.f32.mrb[95].mxu1  ;;  %12239 = vmatmul.mubr.msk.f32.vlgmr.msra.gmra.mrb[90].mxu0 %vm357_vm0, %v14166_v39  ;;  %v8006_v22 = vadd.f32 %v10967_v16, %v8005_v10  ;;  %v10978_v10 = vld [vmem:[#allocation8 + $0x4e0] ss:$0 sm:$0xff] }
0x3e2e   : > { %12254 = vmatprep.mubr.msk.f32.mxu0 %vm13368_vm1, %v13369_v27 }
0x3e34   : > { %v8163_v46 = vpop.f32.mrb[96].mxu1 }
0x3e35   : > { %v12251_v59 = vpop.f32.mrb[97].mxu1  ;;  %v8164_v39 = vadd.f32 %v10971_v19, %v8163_v46  ;;  %v10979_v46 = vld [vmem:[#allocation8 + $0x4e8] ss:$0 sm:$0xff]  ;;  %v8852_v19 = vld [vmem:[#allocation8 + $0x790] sm:$0xff] }
0x3ef8   : > { %v7925_v12 = vpop.f32.mrb[88].mxu0 }
0x3ef9   : > { %v7929_v1 = vadd.f32 %v7925_v12, %v14257_v24  ;;  %v12218_v13 = vpop.f32.mrb[89].mxu0 }
0x3f00   : > { %v8084_v23 = vpop.f32.mrb[90].mxu0 }
0x3f01   : > { %v8085_v18 = vadd.f32 %v10969_v14, %v8084_v23  ;;  %v12240_v60 = vpop.f32.mrb[91].mxu0 }
0x3f02   : > { %v8851_v60 = vld [vmem:[#allocation8 + $0x788] sm:$0xff] }
0x3f03   : > { %12253 = vmatpush3.xpose.msk.msra.mxu0 %vm656_vm2, %v8085_v18 }
0x3f04   : > { %12257 = vmatprep.subr.mxu0 %v13369_v27 }
0x3f06   : > { %12255 = vmatmul.mubr.msk.f32.vlgmr.msra.gmra.mrb[92].mxu0 %vm656_vm2, %v8006_v22  ;;  %v10980_v22 = vld [vmem:[#allocation8 + $0x770] ss:$0 sm:$0xff] }
0x3f07   : > { %12258 = vmatpush3.msra.mxu0 %v8164_v39  ;;  %12259 = vmatprep.mubr.msk.f32.mxu0 %vm13368_vm1, %v13369_v27 }
0x3f08   : > { %12833 = vmatprep.subr.bf16.mxu0 %v13367_v17 }
0x3fd9   : > { %v8240_v24 = vpop.f32.mrb[92].mxu0 }
0x3fda   : > { %v8244_v25 = vmul.f32 0.35355338, %v8240_v24  ;;  %v12256_v26 = vpop.f32.mrb[93].mxu0  ;;  %v12863_v24 = vpack.c.bf16 %v8852_v19, %v8851_v60 }
0x3fdc   : > { %v8245_v29 = vadd.f32 %v14203_v9, %v8244_v25 }
0x3fde   : > { %v8246_v32 = vsel %vm656_vm2, %v8245_v29, -inf }
0x3fdf   : > { %8247 = vmax.xlane.f32.xlu0 %v8246_v32  ;;  %v8854_v32 = vld [vmem:[#allocation8 + $0x7a0] sm:$0xff] }
0x406c   : > { %v8248_v20 = vpop.xlane.xlu0 %8247 }
0x406d   : > { %v8249_v33 = vsub.f32 %v8245_v29, %v8248_v20  ;;  %v8853_v29 = vld [vmem:[#allocation8 + $0x798] sm:$0xff] }
0x406e   : > { %v12866_v20 = vpack.c.bf16 %v8854_v32, %v8853_v29 }
0x406f   : > { %v8250_v36 = vmul.f32 1.442695, %v8249_v33  ;;  %v8602_v33 = vld [vmem:[#allocation8 + $0x748] sm:$0xff] }
0x4071   : > { %13135 = vpow2.f32 %v8250_v36  ;;  %v8603_v36 = vld [vmem:[#allocation8 + $0x750] sm:$0xff] }
0x407b   : > { %v13136_v41 = vpop.eup %13135 }
0x407c   : > { %v8252_v11 = vsel %vm656_vm2, %v13136_v41, 0.0 }
0x407d   : > { %8253 = vadd.xlane.f32.xlu1 %v8252_v11  ;;  %v12847_v11 = vpack.c.bf16 %v8603_v36, %v8602_v33  ;;  %v10997_v36 = vld [vmem:[#allocation8 + $0x800] ss:$0 sm:$0xff] }
0x410a   : > { %v8254_v40 = vpop.xlane.xlu1 %8253 }
0x410b   : > { %13137 = vrcp.f32 %v8254_v40 }
0x4115   : > { %v13138_v42 = vpop.eup %13137 }
0x4116   : > { %v8256_v43 = vmul.f32 %v13138_v42, %v13136_v41  ;;  %v8604_v41 = vld [vmem:[#allocation8 + $0x758] sm:$0xff] }
0x4117   : > { %v12851_v40 = vpack.c.bf16 %v8605_v38, %v8604_v41 }
0x4118   : > { %12260 = vmatmul.mubr.msk.f32.vlgmr.msra.gmra.mrb[94].mxu0 %vm656_vm2, %v8256_v43 }
0x4119   : > { %12275 = vmatprep.mubr.msk.f32.mxu0 %vm13368_vm1, %v13369_v27  ;;  %12835 = vmatpush3.bf16.msra.mxu0 %v12834_v6 }
0x411a   : > { %12836 = vmatprep.subr.bf16.mxu0 %v13367_v17 }
0x411d   : > { %12838 = vmatpush3.bf16.msra.mxu0 %v12837_v30 }
0x411e   : > { %12848 = vmatprep.subr.bf16.mxu0 %v12847_v11 }
0x41eb   : > { %v8326_v9 = vpop.f32.mrb[94].mxu0 }
0x41ec   : > { %v12261_v34 = vpop.f32.mrb[95].mxu0  ;;  %12265 = vmatmul.mubr.msk.f32.vlgmr.msra.gmra.mrb[98].mxu1 %vm656_vm2, %v8326_v9 }
0x41ed   : > { %12286 = vmatprep.mubr.msk.f32.mxu1 %vm357_vm0, %v14306_v54  ;;  %12842 = vmatpush3.bf16.msra.mxu1 %v12839_v62  ;;  %v8930_v62 = vld [vmem:[#allocation8 + $0x7a8] sm:$0xff] }
0x42bf   : > { %v8399_v44 = vpop.f32.mrb[98].mxu1 }
0x42c0   : > { %v8403_v48 = vadd.f32 %v8399_v44, %v7929_v1  ;;  %v12266_v50 = vpop.f32.mrb[99].mxu1  ;;  %v10982_v1 = vld [vmem:[#allocation8 + $0x778] ss:$0 sm:$0xff] }
0x42c2   : > { %v8409_v51 = vadd.f32 %v10977_v31, %v8403_v48 }
0x42c4   : > { %v14311_v15 = vadd.f32 %v8409_v51, %v14154_v37  ;;  %v8520_v37 = vld [vmem:[#allocation8 + $0x738] sm:$0xff] }
0x42c5   : > { %v12843_v0 = vpack.c.bf16 %v8521_v63, %v8520_v37  ;;  %v8931_v37 = vld [vmem:[#allocation8 + $0x7b0] sm:$0xff] }
0x42c6   : > { %v8413_v52 = vsel %vm357_vm0, %v14311_v15, 0.0  ;;  %v12868_v63 = vpack.c.bf16 %v8931_v37, %v8930_v62 }
0x42c7   : > { %8414 = vadd.xlane.f32.xlu0 %v8413_v52  ;;  %12844 = vmatprep.subr.bf16.mxu1 %v12843_v0 }
0x42c8   : > { %12846 = vmatpush3.bf16.msra.mxu1 %v12843_v0 }
0x42c9   : > { %12855 = vmatprep.subr.bf16.mxu1 %v13367_v17 }
0x42cb   : > { %12287 = vmatmul.mubr.msk.f32.vlgmr.msra.gmra.mrb[100].mxu1 %vm357_vm0, %v14319_v4 }
0x42cc   : > { %12304 = vmatprep.mubr.msk.f32.mxu1 %vm13368_vm1, %v13369_v27 }
0x4354   : > { %v8415_v53 = vpop.xlane.xlu0 %8414 }
0x4355   : > { %v8416_v45 = vmul.f32 0.03125, %v8415_v53 }
0x4357   : > { %v8417_v55 = vsub.f32 %v14311_v15, %v8416_v45 }
0x4359   : > { %v8418_v56 = vmul.f32 %v8417_v55, %v8417_v55 }
0x435b   : > { %v8419_v57 = vsel %vm357_vm0, %v8418_v56, 0.0 }
0x435c   : > { %8420 = vadd.xlane.f32.xlu1 %v8419_v57 }
0x439e   : > { %v12288_v13 = vpop.f32.mrb[100].mxu1 }
0x439f   : > { %v8599_v14 = vadd.f32 %v12288_v13, %v10982_v1  ;;  %v8593_v23 = vpop.f32.mrb[101].mxu1  ;;  %v9014_v13 = vld [vmem:[#allocation8 + $0x7c8] sm:$0xff] }
0x43a0   : > { %v8594_v16 = vadd.f32 %v10982_v1, %v8593_v23  ;;  %v9016_v23 = vld [vmem:[#allocation8 + $0x7d8] sm:$0xff] }
0x43a2   : > { %v12856_v18 = vpack.c.bf16 %v8599_v14, %v8594_v16  ;;  %v9015_v14 = vld [vmem:[#allocation8 + $0x7d0] sm:$0xff] }
0x43a3   : > { %v12876_v16 = vpack.c.bf16 %v9015_v14, %v9014_v13  ;;  %v9574_v13 = vld [vmem:[#allocation8 + $0x858] sm:$0xff] }
0x43a4   : > { %12858 = vmatpush3.bf16.xpose.msk.msra.mxu1 %vm13931_vm3, %v12856_v18  ;;  %v9017_v18 = vld [vmem:[#allocation8 + $0x7e0] sm:$0xff] }
0x43a5   : > { %12862 = vmatprep.subr.bf16.mxu1 %v13367_v17  ;;  %v12880_v60 = vpack.c.bf16 %v9017_v18, %v9016_v23  ;;  %v9575_v23 = vld [vmem:[#allocation8 + $0x860] sm:$0xff] }
0x43e9   : > { %v8421_v7 = vpop.xlane.xlu1 %8420 }
0x43ea   : > { %v8422_v8 = vmul.f32 0.03125, %v8421_v7 }
0x43ec   : > { %v8423_v47 = vadd.f32 1e-05, %v8422_v8  ;;  %v10994_v8 = vld [vmem:[#allocation8 + $0x7f8] ss:$0 sm:$0xff] }
0x43ee   : > { %13139 = vrsqrt.f32 %v8423_v47 }
0x43f8   : > { %v13140_v49 = vpop.eup %13139 }
0x43f9   : > { %v8425_v35 = vmul.f32 %v13140_v49, %v8417_v55  ;;  %v10985_v55 = vld [vmem:[#allocation8 + $0x780] ss:$0 sm:$0xff] }
0x43fb   : > { %v8430_v59 = vmul.f32 %v10978_v10, %v8425_v35 }
0x43fd   : > { %v14326_v12 = vadd.f32 %v10979_v46, %v8430_v59  ;;  %v10992_v59 = vld [vmem:[#allocation8 + $0x7f0] ss:$0 sm:$0xff] }
0x43ff   : > { %12276 = vmatmul.mubr.msk.f32.vlgmr.msra.gmra.mrb[96].mxu0 %vm357_vm0, %v14326_v12 }
0x4400   : > { %12297 = vmatprep.mubr.msk.f32.mxu0 %vm357_vm0, %v14306_v54  ;;  %12850 = vmatpush3.bf16.msra.mxu0 %v12847_v11 }
0x4401   : > { %12852 = vmatprep.subr.bf16.mxu0 %v12851_v40 }
0x4404   : > { %12854 = vmatpush3.bf16.msra.mxu0 %v12851_v40 }
0x4405   : > { %12859 = vmatprep.subr.bf16.mxu0 %v13367_v17 }
0x4407   : > { %12298 = vmatmul.mubr.msk.f32.vlgmr.msra.gmra.mrb[98].mxu0 %vm357_vm0, %v14319_v4 }
0x4408   : > { %12311 = vmatprep.mubr.msk.f32.mxu0 %vm13368_vm1, %v13369_v27 }
0x44d2   : > { %v8514_v39 = vpop.f32.mrb[96].mxu0 }
0x44d3   : > { %v8515_v25 = vadd.f32 %v10980_v22, %v8514_v39  ;;  %v12277_v26 = vpop.f32.mrb[97].mxu0 }
0x44d5   : > { %12305 = vmatmul.mubr.msk.f32.vlgmr.msra.gmra.mrb[102].mxu1 %vm656_vm2, %v8515_v25 }
0x44d6   : > { %12864 = vmatpush3.bf16.msra.mxu1 %v12863_v24  ;;  %12322 = vmatprep.mubr.msk.f32.mxu1 %vm13368_vm1, %v13369_v27 }
0x44d7   : > { %12865 = vmatprep.subr.bf16.mxu1 %v13367_v17 }
0x44da   : > { %12867 = vmatpush3.bf16.msra.mxu1 %v12866_v20  ;;  %v12299_v45 = vpop.f32.mrb[98].mxu0 }
0x44db   : > { %v8677_v56 = vpop.f32.mrb[99].mxu0  ;;  %v8683_v57 = vadd.f32 %v12299_v45, %v10985_v55  ;;  %12877 = vmatprep.subr.bf16.mxu1 %v12876_v16  ;;  %v9409_v45 = vld [vmem:[#allocation8 + $0x808] sm:$0xff] }
0x44dc   : > { %v8678_v58 = vadd.f32 %v10985_v55, %v8677_v56  ;;  %v9410_v55 = vld [vmem:[#allocation8 + $0x810] sm:$0xff] }
0x44dd   : > { %12323 = vmatmul.mubr.msk.f32.vlgmr.msra.gmra.mrb[104].mxu1 %vm357_vm0, %v14326_v12  ;;  %v12892_v56 = vpack.c.bf16 %v9410_v55, %v9409_v45  ;;  %v9976_v45 = vld [vmem:[#allocation8 + $0x8b8] sm:$0xff]  ;;  %v9977_v55 = vld [vmem:[#allocation8 + $0x8c0] sm:$0xff] }
0x44de   : > { %12344 = vmatprep.mubr.msk.f32.mxu1 %vm357_vm0, %v14306_v54  ;;  %v12860_v61 = vpack.c.bf16 %v8683_v57, %v8678_v58  ;;  %12879 = vmatpush3.bf16.msra.mxu1 %v12876_v16  ;;  %v9411_v57 = vld [vmem:[#allocation8 + $0x818] sm:$0xff]  ;;  %v9412_v58 = vld [vmem:[#allocation8 + $0x820] sm:$0xff]  ;;  %v12909_v16 = vpack.c.bf16 %v9575_v23, %v9574_v13 }
0x44df   : > { %12881 = vmatprep.subr.bf16.mxu1 %v12880_v60  ;;  %v12895_v37 = vpack.c.bf16 %v9412_v58, %v9411_v57 }
0x44e0   : > { %12861 = vmatpush3.bf16.msra.mxu0 %v12860_v61 }
0x44e1   : > { %12869 = vmatprep.subr.bf16.mxu0 %v12868_v63 }
0x44e2   : > { %12883 = vmatpush3.bf16.msra.mxu1 %v12880_v60 }
0x44e3   : > { %12888 = vmatprep.subr.bf16.mxu1 %v13367_v17 }
0x44e5   : > { %12345 = vmatmul.mubr.msk.f32.vlgmr.msra.gmra.mrb[106].mxu1 %vm357_vm0, %v14319_v4 }
0x44e6   : > { %12358 = vmatprep.mubr.msk.f32.mxu1 %vm13368_vm1, %v13369_v27 }
0x45a8   : > { %v8762_v42 = vpop.f32.mrb[102].mxu1 }
0x45a9   : > { %v8766_v43 = vmul.f32 0.35355338, %v8762_v42  ;;  %v12306_v9 = vpop.f32.mrb[103].mxu1  ;;  %v9098_v42 = vld [vmem:[#allocation8 + $0x7e8] sm:$0xff] }
0x45aa   : > { %v9488_v9 = vld [vmem:[#allocation8 + $0x828] sm:$0xff] }
0x45ab   : > { %v8767_v34 = vsel %vm3652_vm4, %v8766_v43, -inf }
0x45ac   : > { %8768 = vmax.xlane.f32.xlu0 %v8767_v34  ;;  %v9489_v34 = vld [vmem:[#allocation8 + $0x830] sm:$0xff] }
0x45b0   : > { %v8926_v44 = vpop.f32.mrb[104].mxu1 }
0x45b1   : > { %v12324_v31 = vpop.f32.mrb[105].mxu1  ;;  %v8927_v1 = vadd.f32 %v10992_v59, %v8926_v44  ;;  %v9572_v59 = vld [vmem:[#allocation8 + $0x848] sm:$0xff] }
0x45b8   : > { %v12346_v33 = vpop.f32.mrb[106].mxu1 }
0x45b9   : > { %v9089_v41 = vpop.f32.mrb[107].mxu1  ;;  %v9095_v11 = vadd.f32 %v12346_v33, %v10997_v36 }
0x45ba   : > { %v9090_v38 = vadd.f32 %v10997_v36, %v9089_v41 }
0x45bc   : > { %v12889_v40 = vpack.c.bf16 %v9095_v11, %v9090_v38  ;;  %v9656_v38 = vld [vmem:[#allocation8 + $0x868] sm:$0xff] }
0x45be   : > { %12890 = vmatpush3.bf16.msra.mxu1 %v12889_v40 }
0x45bf   : > { %12366 = vmatprep.subr.mxu1 %v13369_v27 }
0x4639   : > { %v8769_v48 = vpop.xlane.xlu0 %8768 }
0x463a   : > { %v8770_v50 = vsub.f32 %v8766_v43, %v8769_v48  ;;  %v8686_v48 = vld [vmem:[#allocation8 + $0x768] sm:$0xff] }
0x463c   : > { %v8771_v51 = vmul.f32 1.442695, %v8770_v50  ;;  %v12897_v50 = vpack.c.bf16 %v9489_v34, %v9488_v9 }
0x463e   : > { %13141 = vpow2.f32 %v8771_v51  ;;  %v9490_v51 = vld [vmem:[#allocation8 + $0x838] sm:$0xff] }
0x4648   : > { %v13142_v52 = vpop.eup %13141 }
0x4649   : > { %v8773_v53 = vsel %vm3652_vm4, %v13142_v52, 0.0 }
0x464a   : > { %8774 = vadd.xlane.f32.xlu1 %v8773_v53 }
0x46d7   : > { %v8775_v0 = vpop.xlane.xlu1 %8774 }
0x46d8   : > { %13143 = vrcp.f32 %v8775_v0 }
0x46e2   : > { %v13144_v6 = vpop.eup %13143 }
0x46e3   : > { %v8777_v2 = vmul.f32 %v13144_v6, %v13142_v52  ;;  %v9491_v52 = vld [vmem:[#allocation8 + $0x840] sm:$0xff] }
0x46e4   : > { %v12901_v53 = vpack.c.bf16 %v9491_v52, %v9490_v51  ;;  %v9974_v51 = vld [vmem:[#allocation8 + $0x8a8] sm:$0xff]  ;;  %v9975_v52 = vld [vmem:[#allocation8 + $0x8b0] sm:$0xff] }
0x46e5   : > { %12312 = vmatmul.mubr.msk.f32.vlgmr.msra.gmra.mrb[100].mxu0 %vm3652_vm4, %v8777_v2 }
0x46e6   : > { %12871 = vmatpush3.bf16.msra.mxu0 %v12868_v63  ;;  %12333 = vmatprep.mubr.msk.f32.mxu0 %vm357_vm0, %v14306_v54 }
0x46e7   : > { %12873 = vmatprep.subr.bf16.mxu0 %v12872_v28 }
0x46ea   : > { %12875 = vmatpush3.bf16.msra.mxu0 %v12872_v28 }
0x46eb   : > { %12884 = vmatprep.subr.bf16.mxu0 %v13367_v17 }
0x46ed   : > { %12334 = vmatmul.mubr.msk.f32.vlgmr.msra.gmra.mrb[102].mxu0 %vm357_vm0, %v14319_v4 }
0x46ee   : > { %12351 = vmatprep.mubr.msk.f32.mxu0 %vm13368_vm1, %v13369_v27 }
0x47b8   : > { %v14358_v30 = vpop.f32.mrb[100].mxu0 }
0x47b9   : > { %v12313_v7 = vpop.f32.mrb[101].mxu0 }
0x47c0   : > { %v12335_v47 = vpop.f32.mrb[102].mxu0 }
0x47c1   : > { %v9011_v49 = vadd.f32 %v12335_v47, %v10994_v8  ;;  %v9005_v10 = vpop.f32.mrb[103].mxu0 }
0x47c2   : > { %v9006_v35 = vadd.f32 %v10994_v8, %v9005_v10 }
0x47c4   : > { %v12885_v46 = vpack.c.bf16 %v9011_v49, %v9006_v35  ;;  %v11006_v49 = vld [vmem:[#allocation8 + $0x870] ss:$0 sm:$0xff] }
0x47c6   : > { %12887 = vmatpush3.bf16.xpose.msk.msra.mxu0 %vm13931_vm3, %v12885_v46 }
0x47c7   : > { %12361 = vmatprep.subr.mxu0 %v13369_v27 }
0x47cd   : > { %12352 = vmatmul.mubr.msk.f32.vlgmr.msra.gmra.mrb[104].mxu0 %vm656_vm2, %v8927_v1  ;;  %v9573_v1 = vld [vmem:[#allocation8 + $0x850] sm:$0xff] }
0x47ce   : > { %12363 = vmatprep.mubr.msk.f32.mxu0 %vm13368_vm1, %v13369_v27  ;;  %12362 = vmatpush3.msra.mxu0 %v9098_v42  ;;  %v12905_v14 = vpack.c.bf16 %v9573_v1, %v9572_v59  ;;  %v9895_v42 = vld [vmem:[#allocation8 + $0x888] sm:$0xff] }
0x47cf   : > { %12891 = vmatprep.subr.bf16.mxu0 %v13367_v17 }
0x48a0   : > { %v9174_v19 = vpop.f32.mrb[104].mxu0 }
0x48a1   : > { %v9178_v22 = vmul.f32 0.35355338, %v9174_v19  ;;  %v12353_v39 = vpop.f32.mrb[105].mxu0 }
0x48a3   : > { %v9179_v24 = vsel %vm3652_vm4, %v9178_v22, -inf }
0x48a4   : > { %9180 = vmax.xlane.f32.xlu0 %v9179_v24 }
0x4931   : > { %v9181_v25 = vpop.xlane.xlu0 %9180 }
0x4932   : > { %v9182_v26 = vsub.f32 %v9178_v22, %v9181_v25 }
0x4934   : > { %v9183_v29 = vmul.f32 1.442695, %v9182_v26 }
0x4936   : > { %13145 = vpow2.f32 %v9183_v29 }
0x4940   : > { %v13146_v32 = vpop.eup %13145 }
0x4941   : > { %v9185_v20 = vsel %vm3652_vm4, %v13146_v32, 0.0 }
0x4942   : > { %9186 = vadd.xlane.f32.xlu1 %v9185_v20  ;;  %v11011_v20 = vld [vmem:[#allocation8 + $0x880] ss:$0 sm:$0xff] }
0x49cf   : > { %v9187_v43 = vpop.xlane.xlu1 %9186 }
0x49d0   : > { %13147 = vrcp.f32 %v9187_v43  ;;  %v9896_v43 = vld [vmem:[#allocation8 + $0x890] sm:$0xff] }
0x49d1   : > { %v12921_v34 = vpack.c.bf16 %v9896_v43, %v9895_v42 }
0x49da   : > { %v13148_v44 = vpop.eup %13147 }
0x49db   : > { %v9189_v31 = vmul.f32 %v13148_v44, %v13146_v32 }
0x49dd   : > { %12359 = vmatmul.mubr.msk.f32.vlgmr.msra.gmra.mrb[108].mxu1 %vm3652_vm4, %v9189_v31  ;;  %v9897_v31 = vld [vmem:[#allocation8 + $0x898] sm:$0xff] }
0x49de   : > { %12367 = vmatpush3.msra.mxu1 %v8686_v48  ;;  %12368 = vmatprep.mubr.msk.f32.mxu1 %vm13368_vm1, %v13369_v27  ;;  %v9898_v48 = vld [vmem:[#allocation8 + $0x8a0] sm:$0xff] }
0x49df   : > { %12898 = vmatprep.subr.bf16.mxu1 %v12897_v50 }
0x49e1   : > { %12369 = vmatmul.mubr.msk.f32.vlgmr.msra.gmra.mrb[110].mxu1 %vm656_vm2, %v14358_v30 }
0x49e2   : > { %12900 = vmatpush3.bf16.msra.mxu1 %v12897_v50  ;;  %12390 = vmatprep.mubr.msk.f32.mxu1 %vm357_vm0, %v14306_v54  ;;  %v12924_v50 = vpack.c.bf16 %v9898_v48, %v9897_v31 }
0x49e3   : > { %12902 = vmatprep.subr.bf16.mxu1 %v12901_v53 }
0x49e6   : > { %12904 = vmatpush3.bf16.msra.mxu1 %v12901_v53  ;;  %v12926_v53 = vpack.c.bf16 %v9975_v52, %v9974_v51  ;;  %v10416_v52 = vld [vmem:[#allocation8 + $0x928] sm:$0xff] }
0x49e7   : > { %12913 = vmatprep.subr.bf16.mxu1 %v13367_v17 }
0x49e9   : > { %12391 = vmatmul.mubr.msk.f32.vlgmr.msra.gmra.mrb[112].mxu1 %vm357_vm0, %v14319_v4 }
0x49ea   : > { %12408 = vmatprep.mubr.msk.f32.mxu1 %vm13368_vm1, %v13369_v27 }
0x4ab0   : > { %v9259_v61 = vpop.f32.mrb[108].mxu1 }
0x4ab1   : > { %v12360_v62 = vpop.f32.mrb[109].mxu1  ;;  %12364 = vmatmul.mubr.msk.f32.vlgmr.msra.gmra.mrb[106].mxu0 %vm656_vm2, %v9259_v61 }
0x4ab2   : > { %12893 = vmatpush3.bf16.msra.mxu0 %v12892_v56  ;;  %12379 = vmatprep.mubr.msk.f32.mxu0 %vm13368_vm1, %v13369_v27  ;;  %v12930_v56 = vpack.c.bf16 %v9977_v55, %v9976_v45 }
0x4ab3   : > { %12894 = vmatprep.subr.bf16.mxu0 %v13367_v17 }
0x4ab4   : > { %v9405_v63 = vpop.f32.mrb[110].mxu1 }
0x4ab5   : > { %v12370_v0 = vpop.f32.mrb[111].mxu1 }
0x4ab6   : > { %12896 = vmatpush3.bf16.msra.mxu0 %v12895_v37  ;;  %v11021_v0 = vld [vmem:[#allocation8 + $0x8f8] ss:$0 sm:$0xff] }
0x4ab7   : > { %12906 = vmatprep.subr.bf16.mxu0 %v12905_v14 }
0x4ab9   : > { %12380 = vmatmul.mubr.msk.f32.vlgmr.msra.gmra.mrb[108].mxu0 %vm357_vm0, %v14326_v12 }
0x4aba   : > { %12401 = vmatprep.mubr.msk.f32.mxu0 %vm357_vm0, %v14306_v54  ;;  %12908 = vmatpush3.bf16.msra.mxu0 %v12905_v14 }
0x4abb   : > { %12910 = vmatprep.subr.bf16.mxu0 %v12909_v16 }
0x4abc   : > { %v12392_v21 = vpop.f32.mrb[112].mxu1 }
0x4abd   : > { %v9569_v6 = vadd.f32 %v12392_v21, %v11008_v5  ;;  %v9563_v2 = vpop.f32.mrb[113].mxu1 }
0x4abe   : > { %v9564_v28 = vadd.f32 %v11008_v5, %v9563_v2  ;;  %12912 = vmatpush3.bf16.msra.mxu0 %v12909_v16 }
0x4abf   : > { %12917 = vmatprep.subr.bf16.mxu0 %v13367_v17 }
0x4ac0   : > { %v12914_v30 = vpack.c.bf16 %v9569_v6, %v9564_v28  ;;  %v11019_v28 = vld [vmem:[#allocation8 + $0x8f0] ss:$0 sm:$0xff] }
0x4ac1   : > { %12402 = vmatmul.mubr.msk.f32.vlgmr.msra.gmra.mrb[110].mxu0 %vm357_vm0, %v14319_v4 }
0x4ac2   : > { %12916 = vmatpush3.bf16.xpose.msk.msra.mxu1 %vm13931_vm3, %v12914_v30  ;;  %12415 = vmatprep.mubr.msk.f32.mxu0 %vm13368_vm1, %v13369_v27 }
0x4ac3   : > { %12418 = vmatprep.subr.mxu1 %v13369_v27 }
0x4b84   : > { %v9332_v7 = vpop.f32.mrb[106].mxu0 }
0x4b85   : > { %v14398_v8 = vadd.f32 %v9405_v63, %v9332_v7  ;;  %v12365_v47 = vpop.f32.mrb[107].mxu0  ;;  %v10058_v7 = vld [vmem:[#allocation8 + $0x8c8] sm:$0xff] }
0x4b86   : > { %v10060_v47 = vld [vmem:[#allocation8 + $0x8d8] sm:$0xff] }
0x4b8c   : > { %v9484_v10 = vpop.f32.mrb[108].mxu0 }
0x4b8d   : > { %v9485_v35 = vadd.f32 %v11006_v49, %v9484_v10  ;;  %v12381_v46 = vpop.f32.mrb[109].mxu0  ;;  %v10061_v10 = vld [vmem:[#allocation8 + $0x8e0] sm:$0xff] }
0x4b8f   : > { %12409 = vmatmul.mubr.msk.f32.vlgmr.msra.gmra.mrb[114].mxu1 %vm656_vm2, %v9485_v35  ;;  %v12938_v35 = vpack.c.bf16 %v10061_v10, %v10060_v47 }
0x4b90   : > { %12420 = vmatprep.mubr.msk.f32.mxu1 %vm13368_vm1, %v13369_v27  ;;  %12419 = vmatpush3.msra.mxu1 %v9656_v38 }
0x4b91   : > { %12927 = vmatprep.subr.bf16.mxu1 %v12926_v53 }
0x4b94   : > { %v12403_v32 = vpop.f32.mrb[110].mxu0 }
0x4b95   : > { %v9647_v33 = vpop.f32.mrb[111].mxu0  ;;  %v9653_v36 = vadd.f32 %v12403_v32, %v11011_v20 }
0x4b96   : > { %v9648_v41 = vadd.f32 %v11011_v20, %v9647_v33 }
0x4b98   : > { %v12918_v11 = vpack.c.bf16 %v9653_v36, %v9648_v41  ;;  %v11032_v41 = vld [vmem:[#allocation8 + $0x908] ss:$0 sm:$0xff] }
0x4b9a   : > { %12919 = vmatpush3.bf16.msra.mxu0 %v12918_v11 }
0x4b9b   : > { %12920 = vmatprep.subr.bf16.mxu0 %v13367_v17 }
0x4c62   : > { %v9732_v18 = vpop.f32.mrb[114].mxu1 }
0x4c63   : > { %v9736_v60 = vmul.f32 0.35355338, %v9732_v18  ;;  %v12410_v19 = vpop.f32.mrb[115].mxu1 }
0x4c64   : > { %v11024_v19 = vld [vmem:[#allocation8 + $0x900] ss:$0 sm:$0xff] }
0x4c65   : > { %v9737_v22 = vsel %vm3652_vm4, %v9736_v60, -inf }
0x4c66   : > { %9738 = vmax.xlane.f32.xlu0 %v9737_v22 }
0x4cf3   : > { %v9739_v39 = vpop.xlane.xlu0 %9738 }
0x4cf4   : > { %v9740_v24 = vsub.f32 %v9736_v60, %v9739_v39 }
0x4cf6   : > { %v9741_v25 = vmul.f32 1.442695, %v9740_v24 }
0x4cf8   : > { %13149 = vpow2.f32 %v9741_v25  ;;  %v10142_v25 = vld [vmem:[#allocation8 + $0x8e8] sm:$0xff] }
0x4d02   : > { %v13150_v26 = vpop.eup %13149 }
0x4d03   : > { %v9743_v29 = vsel %vm3652_vm4, %v13150_v26, 0.0 }
0x4d04   : > { %9744 = vadd.xlane.f32.xlu1 %v9743_v29 }
0x4d91   : > { %v9745_v40 = vpop.xlane.xlu1 %9744 }
0x4d92   : > { %13151 = vrcp.f32 %v9745_v40 }
0x4d9c   : > { %v13152_v9 = vpop.eup %13151 }
0x4d9d   : > { %v9747_v44 = vmul.f32 %v13152_v9, %v13150_v26 }
0x4d9f   : > { %12416 = vmatmul.mubr.msk.f32.vlgmr.msra.gmra.mrb[112].mxu0 %vm3652_vm4, %v9747_v44 }
0x4da0   : > { %12922 = vmatpush3.bf16.msra.mxu0 %v12921_v34  ;;  %12431 = vmatprep.mubr.msk.f32.mxu0 %vm13368_vm1, %v13369_v27 }
0x4da1   : > { %12923 = vmatprep.subr.bf16.mxu0 %v13367_v17 }
0x4da4   : > { %12925 = vmatpush3.bf16.msra.mxu0 %v12924_v50  ;;  %v10414_v50 = vld [vmem:[#allocation8 + $0x918] sm:$0xff] }
0x4da7   : > { %12432 = vmatmul.mubr.msk.f32.vlgmr.msra.gmra.mrb[114].mxu0 %vm357_vm0, %v14326_v12 }
0x4da8   : > { %12453 = vmatprep.mubr.msk.f32.mxu0 %vm357_vm0, %v14306_v54 }
0x4e72   : > { %v9817_v57 = vpop.f32.mrb[112].mxu0 }
0x4e73   : > { %v12417_v58 = vpop.f32.mrb[113].mxu0  ;;  %12421 = vmatmul.mubr.msk.f32.vlgmr.msra.gmra.mrb[116].mxu1 %vm656_vm2, %v9817_v57 }
0x4e74   : > { %12929 = vmatpush3.bf16.msra.mxu1 %v12926_v53  ;;  %12442 = vmatprep.mubr.msk.f32.mxu1 %vm357_vm0, %v14306_v54  ;;  %v11033_v58 = vld [vmem:[#allocation8 + $0x4f0] ss:$0 sm:$0xff] }
0x4e75   : > { %12931 = vmatprep.subr.bf16.mxu1 %v12930_v56 }
0x4e78   : > { %12933 = vmatpush3.bf16.msra.mxu1 %v12930_v56 }
0x4e79   : > { %12942 = vmatprep.subr.bf16.mxu1 %v13367_v17 }
0x4e7a   : > { %v9970_v12 = vpop.f32.mrb[114].mxu0 }
0x4e7b   : > { %v12433_v61 = vpop.f32.mrb[115].mxu0  ;;  %12443 = vmatmul.mubr.msk.f32.vlgmr.msra.gmra.mrb[118].mxu1 %vm357_vm0, %v14319_v4  ;;  %v9971_v30 = vadd.f32 %v11019_v28, %v9970_v12  ;;  %v10505_v28 = vld [vmem:[#allocation8 + $0x960] sm:$0xff] }
0x4e7c   : > { %12460 = vmatprep.mubr.msk.f32.mxu1 %vm13368_vm1, %v13369_v27  ;;  %v11034_v61 = vld [vmem:[#allocation8 + $0x4f8] ss:$0 sm:$0xff] }
0x4f46   : > { %v9890_v62 = vpop.f32.mrb[116].mxu1 }
0x4f47   : > { %v9894_v37 = vadd.f32 %v9890_v62, %v14398_v8  ;;  %v12422_v63 = vpop.f32.mrb[117].mxu1  ;;  %v10059_v8 = vld [vmem:[#allocation8 + $0x8d0] sm:$0xff] }
0x4f48   : > { %v12934_v49 = vpack.c.bf16 %v10059_v8, %v10058_v7  ;;  %v10500_v63 = vld [vmem:[#allocation8 + $0x938] sm:$0xff]  ;;  %v10506_v7 = vld [vmem:[#allocation8 + $0x968] sm:$0xff]  ;;  %v10507_v8 = vld [vmem:[#allocation8 + $0x970] sm:$0xff] }
0x4f49   : > { %v12965_v47 = vpack.c.bf16 %v10507_v8, %v10506_v7 }
0x4f4a   : > { %12935 = vmatprep.subr.bf16.mxu0 %v12934_v49 }
0x4f4b   : > { %12937 = vmatpush3.bf16.msra.mxu0 %v12934_v49  ;;  %v11035_v49 = vld [vmem:[#allocation8 + $0x930] ss:$0 sm:$0xff] }
0x4f4c   : > { %12939 = vmatprep.subr.bf16.mxu0 %v12938_v35 }
0x4f4e   : > { %v12444_v5 = vpop.f32.mrb[118].mxu1 }
0x4f4f   : > { %v10055_v21 = vadd.f32 %v12444_v5, %v11021_v0  ;;  %v10049_v54 = vpop.f32.mrb[119].mxu1  ;;  %12941 = vmatpush3.bf16.msra.mxu0 %v12938_v35 }
0x4f50   : > { %v10050_v6 = vadd.f32 %v11021_v0, %v10049_v54  ;;  %12946 = vmatprep.subr.bf16.mxu0 %v13367_v17  ;;  %v10501_v0 = vld [vmem:[#allocation8 + $0x940] sm:$0xff]  ;;  %v10503_v54 = vld [vmem:[#allocation8 + $0x950] sm:$0xff] }
0x4f51   : > { %v12956_v5 = vpack.c.bf16 %v10501_v0, %v10500_v63 }
0x4f52   : > { %v12943_v2 = vpack.c.bf16 %v10055_v21, %v10050_v6  ;;  %12454 = vmatmul.mubr.msk.f32.vlgmr.msra.gmra.mrb[116].mxu0 %vm357_vm0, %v14319_v4  ;;  %v10502_v21 = vld [vmem:[#allocation8 + $0x948] sm:$0xff] }
0x4f53   : > { %12467 = vmatprep.mubr.msk.f32.mxu0 %vm13368_vm1, %v13369_v27  ;;  %v12959_v6 = vpack.c.bf16 %v10503_v54, %v10502_v21 }
0x4f54   : > { %12945 = vmatpush3.bf16.xpose.msk.msra.mxu1 %vm13931_vm3, %v12943_v2  ;;  %v10504_v2 = vld [vmem:[#allocation8 + $0x958] sm:$0xff] }
0x4f55   : > { %12470 = vmatprep.subr.mxu1 %v13369_v27 }
0x4f5b   : > { %12461 = vmatmul.mubr.msk.f32.vlgmr.msra.gmra.mrb[120].mxu1 %vm656_vm2, %v9971_v30  ;;  %v12962_v30 = vpack.c.bf16 %v10505_v28, %v10504_v2 }
0x4f5c   : > { %12472 = vmatprep.mubr.msk.f32.mxu1 %vm13368_vm1, %v13369_v27  ;;  %12471 = vmatpush3.msra.mxu1 %v10142_v25 }
0x4f5d   : > { %12955 = vmatprep.subr.bf16.mxu1 %v13367_v17 }
0x5025   : > { %v12455_v60 = vpop.f32.mrb[116].mxu0 }
0x5026   : > { %v10133_v4 = vpop.f32.mrb[117].mxu0  ;;  %v10139_v22 = vadd.f32 %v12455_v60, %v11024_v19 }
0x5027   : > { %v10134_v39 = vadd.f32 %v11024_v19, %v10133_v4 }
0x5029   : > { %v12947_v24 = vpack.c.bf16 %v10139_v22, %v10134_v39 }
0x502b   : > { %12948 = vmatpush3.bf16.msra.mxu0 %v12947_v24 }
0x502c   : > { %12949 = vmatprep.subr.bf16.mxu0 %v13367_v17 }
0x502e   : > { %v10218_v3 = vpop.f32.mrb[120].mxu1 }
0x502f   : > { %v10222_v46 = vmul.f32 0.35355338, %v10218_v3  ;;  %v12462_v59 = vpop.f32.mrb[121].mxu1 }
0x5031   : > { %v10223_v1 = vsel %vm3652_vm4, %v10222_v46, -inf }
0x5032   : > { %10224 = vmax.xlane.f32.xlu0 %v10223_v1 }
0x50bf   : > { %v10225_v13 = vpop.xlane.xlu0 %10224 }
0x50c0   : > { %v10226_v14 = vsub.f32 %v10222_v46, %v10225_v13 }
0x50c2   : > { %v10227_v23 = vmul.f32 1.442695, %v10226_v14 }
0x50c4   : > { %13153 = vpow2.f32 %v10227_v23  ;;  %v11037_v23 = vld [vmem:[#allocation8 + $0x978] ss:$0 sm:$0xff] }
0x50ce   : > { %v13154_v16 = vpop.eup %13153 }
0x50cf   : > { %v10229_v18 = vsel %vm3652_vm4, %v13154_v16, 0.0 }
0x50d0   : > { %10230 = vadd.xlane.f32.xlu1 %v10229_v18 }
0x515d   : > { %v10231_v26 = vpop.xlane.xlu1 %10230 }
0x515e   : > { %13155 = vrcp.f32 %v10231_v26 }
0x5168   : > { %v13156_v29 = vpop.eup %13155 }
0x5169   : > { %v10233_v32 = vmul.f32 %v13156_v29, %v13154_v16 }
0x516b   : > { %12468 = vmatmul.mubr.msk.f32.vlgmr.msra.gmra.mrb[118].mxu0 %vm3652_vm4, %v10233_v32 }
0x516c   : > { %12483 = vmatprep.mubr.msk.f32.mxu0 %vm13368_vm1, %v13369_v27 }
0x523e   : > { %v10303_v20 = vpop.f32.mrb[118].mxu0 }
0x523f   : > { %v12469_v33 = vpop.f32.mrb[119].mxu0  ;;  %12473 = vmatmul.mubr.msk.f32.vlgmr.msra.gmra.mrb[122].mxu1 %vm656_vm2, %v10303_v20 }
0x5240   : > { %12502 = vmatprep.mubr.msk.f32.mxu1 %vm13368_vm1, %v13369_v27  ;;  %v10413_v27 = vld [vmem:[#allocation8 + $0x910] sm:$0xff]  ;;  %12957 = vmatpush3.bf16.msra.mxu1 %v12956_v5  ;;  %v11039_v33 = vld [vmem:[#allocation8 + $0x980] ss:$0 sm:$0xff] }
0x5241   : > { %v12950_v51 = vpack.c.bf16 %v10414_v50, %v10413_v27  ;;  %12958 = vmatprep.subr.bf16.mxu1 %v13367_v17 }
0x5243   : > { %12951 = vmatpush3.bf16.msra.mxu0 %v12950_v51 }
0x5244   : > { %12952 = vmatprep.subr.bf16.mxu0 %v13367_v17  ;;  %12960 = vmatpush3.bf16.msra.mxu1 %v12959_v6 }
0x5245   : > { %12961 = vmatprep.subr.bf16.mxu1 %v13367_v17 }
0x5248   : > { %12963 = vmatpush3.bf16.msra.mxu1 %v12962_v30 }
0x5249   : > { %12964 = vmatprep.subr.bf16.mxu1 %v13367_v17 }
0x524c   : > { %12966 = vmatpush3.bf16.msra.mxu1 %v12965_v47 }
0x5312   : > { %v10376_v36 = vpop.f32.mrb[122].mxu1 }
0x5313   : > { %v10380_v11 = vadd.f32 %v10376_v36, %v9894_v37  ;;  %v12474_v38 = vpop.f32.mrb[123].mxu1 }
0x5315   : > { %v10386_v40 = vadd.f32 %v11032_v41, %v10380_v11  ;;  %v11040_v41 = vld [vmem:[#allocation8 + $0x988] ss:$0 sm:$0xff] }
0x5317   : > { %v14450_v42 = vadd.f32 %v10386_v40, %v14311_v15  ;;  %v10415_v15 = vld [vmem:[#allocation8 + $0x920] sm:$0xff] }
0x5318   : > { %v12953_v53 = vpack.c.bf16 %v10416_v52, %v10415_v15 }
0x5319   : > { %v10390_v43 = vsel %vm357_vm0, %v14450_v42, 0.0 }
0x531a   : > { %10391 = vadd.xlane.f32.xlu0 %v10390_v43  ;;  %12954 = vmatpush3.bf16.msra.mxu0 %v12953_v53 }
0x53a7   : > { %v10392_v9 = vpop.xlane.xlu0 %10391 }
0x53a8   : > { %v10393_v34 = vmul.f32 0.03125, %v10392_v9 }
0x53aa   : > { %v10394_v44 = vsub.f32 %v14450_v42, %v10393_v34 }
0x53ac   : > { %v10395_v31 = vmul.f32 %v10394_v44, %v10394_v44 }
0x53ae   : > { %v10396_v48 = vsel %vm357_vm0, %v10395_v31, 0.0 }
0x53af   : > { %10397 = vadd.xlane.f32.xlu1 %v10396_v48 }
0x543c   : > { %v10398_v45 = vpop.xlane.xlu1 %10397 }
0x543d   : > { %v10399_v55 = vmul.f32 0.03125, %v10398_v45 }
0x543f   : > { %v10400_v56 = vadd.f32 1e-05, %v10399_v55 }
0x5441   : > { %13157 = vrsqrt.f32 %v10400_v56 }
0x544b   : > { %v13158_v57 = vpop.eup %13157 }
0x544c   : > { %v10402_v12 = vmul.f32 %v13158_v57, %v10394_v44 }
0x544e   : > { %v10407_v62 = vmul.f32 %v11033_v58, %v10402_v12 }
0x5450   : > { %v10412_v37 = vadd.f32 %v11034_v61, %v10407_v62 }
0x5452   : > { %12484 = vmatmul.mubr.msk.f32.vlgmr.msra.gmra.mrb[120].mxu0 %vm357_vm0, %v10412_v37 }
0x5525   : > { %v10491_v10 = vpop.f32.mrb[120].mxu0 }
0x5526   : > { %v10492_v35 = vadd.f32 %v11035_v49, %v10491_v10  ;;  %v12485_v3 = vpop.f32.mrb[121].mxu0 }
0x5528   : > { %v10496_v46 = vmul.f32 0.70710677, %v10492_v35  ;;  %v10495_v1 = vmul.f32 0.5, %v10492_v35 }
0x552a   : > { %13159 = verf.f32 %v10496_v46 }
0x5534   : > { %v13160_v59 = vpop.eup %13159 }
0x5535   : > { %v10498_v13 = vadd.f32 1.0, %v13160_v59 }
0x5537   : > { %v10499_v14 = vmul.f32 %v10498_v13, %v10495_v1 }
0x5539   : > { %12503 = vmatmul.mubr.msk.f32.vlgmr.msra.gmra.mrb[124].mxu1 %vm6370_vm5, %v10499_v14 }
0x560c   : > { %v10582_v16 = vpop.f32.mrb[124].mxu1 }
0x560d   : > { %v10583_v18 = vadd.f32 %v11037_v23, %v10582_v16  ;;  %v12504_v17 = vpop.f32.mrb[125].mxu1 }
0x560f   : > { %v10586_v60 = vadd.f32 %v10583_v18, %v14450_v42 }
0x5611   : > { %v10589_v19 = vsel %vm357_vm0, %v10586_v60, 0.0 }
0x5612   : > { %10590 = vadd.xlane.f32.xlu0 %v10589_v19 }
0x569f   : > { %v10591_v4 = vpop.xlane.xlu0 %10590 }
0x56a0   : > { %v10592_v22 = vmul.f32 0.03125, %v10591_v4 }
0x56a2   : > { %v10593_v39 = vsub.f32 %v10586_v60, %v10592_v22 }
0x56a4   : > { %v10594_v24 = vmul.f32 %v10593_v39, %v10593_v39 }
0x56a6   : > { %v10595_v25 = vsel %vm357_vm0, %v10594_v24, 0.0 }
0x56a7   : > { %10596 = vadd.xlane.f32.xlu1 %v10595_v25 }
0x5734   : > { %v10597_v26 = vpop.xlane.xlu1 %10596 }
0x5735   : > { %v10598_v29 = vmul.f32 0.03125, %v10597_v26 }
0x5737   : > { %v10599_v32 = vadd.f32 1e-05, %v10598_v29 }
0x5739   : > { %13161 = vrsqrt.f32 %v10599_v32 }
0x5743   : > { %v13162_v20 = vpop.eup %13161 }
0x5744   : > { %v10601_v36 = vmul.f32 %v13162_v20, %v10593_v39 }
0x5746   : > { %v10606_v11 = vmul.f32 %v11039_v33, %v10601_v36 }
0x5748   : > { %v10611_v38 = vadd.f32 %v11040_v41, %v10606_v11 }
0x574a   : > { %10612 = vst.msk [vmem:[%s343_s28] sm:$0xff] %vm357_vm0, %v10611_v38 }
0x574b   : > { %13298 = shalt.err (!%p13295_p13)
}
0x574c   : > { %s13299_s14 = scalar_lea.hbm %s14470_s1, 128  ;;  %s13303_s22 = scalar_lea.hbm %s14520_s5, 256 }
0x574d   : > { %p13300_p2 = scmp.ne.s32.totalorder %s14470_s1, %s13299_s14  ;;  %p13304_p1 = scmp.lt.u32.totalorder %s14470_s1, %s14520_s5 }
0x574e   : > { %p13305_p0 = scmp.lt.u32.totalorder %s13303_s22, %s13299_s14  ;;  %p13307_p9 = scmp.lt.u32.totalorder %s13299_s14, %s14470_s1 }
0x574f   : > { %p13301_p8 = pnand %p13300_p2, %p14560_p12 }
0x5750   : > { %p13306_p4 = por %p13305_p0, %p13304_p1 }
0x5751   : > { %p13302_p10 = pneg %p13301_p8 }
0x5752   : > { %p13308_p6 = por %p13307_p9, %p13306_p4 }
0x5754   : > { %p13309_p3 = pnand %p13308_p6, %p13302_p10 }
0x5756   : > { %13312 = shalt.err (!%p13309_p3)
}
0x5757   : > { %12977 = dma.vmem_to_hbm [thread:$0]  (%p14560_p12), %s14472_s7, 128, %s14470_s1, %s10614_s9  }
0x5758 PF: > { %s14561_s23 = sld [smem:[#allocation15_spill]]  ;;  %s14562_s18 = sld [smem:[#allocation20_spill]] }
0x5759   : > { %s14563_s8 = sld [smem:[#allocation17_spill]] }
0x575e   : > { %s10639_s25 = sand.u32 1, %s14561_s23   ;;  %p14564_p5 = scmp.ne.s32.totalorder %s14562_s18, 0 }
0x575f   : > { %p14565_p7 = scmp.ge.s32.totalorder %s14563_s8, 2  ;;  %s10640_s13 = scalar_lea.sflag [#allocation4], %s10639_s25 }
0x5761   : > { %p12994_p11 = pnand %p14565_p7, %p14564_p5 }
0x5763   : > { %13342 = dma.done.wait (!%p12994_p11), %s10640_s13, 128  }
0x5764   : > { %13344 = vsyncadd (!%p12994_p11), %s10640_s13, 4294967168  ;;  %s14566_s21 = sld [smem:[#allocation18_spill]]  ;;  %s14567_s11 = sld [smem:[#allocation16_spill]] }
0x5765   : > { %s14568_s20 = sld [smem:[#allocation19_spill]]  ;;  %s14569_s18 = smov %s13351_s19 }
0x576a   : > { %p22_p13 = scmp.ge.s32.totalorder %s14566_s21, 4   ;;  %s14570_s19 = smov %s14567_s11 }
0x576c   :  { %24 = sbr.rel (!%p22_p13) target bundleno = 10 (0xa), region = 116 }
0x5773   :  { %10645 = vsyncpa [#allocation3], 1 }
0x5774   :  { %10647 = vsyncpa [#allocation3 + $0x1], 1 }
0x5775   :  { %10648 = vsyncpa [#allocation6], 1 }
0x5776   :  { %10650 = vsyncpa [#allocation6 + $0x1], 1 }
0x5777   :  { %10651 = vsyncpa [#allocation9], 1 }
0x5778   :  { %10652 = vsyncpa [#allocation4], 1 }
0x5779   :  { %10654 = vsyncpa [#allocation4 + $0x1], 1 }

</bundles_post_ra>
